<compile_context>
chip_gen: v5e
topology: v5e:2x2
jax: 0.10.0
libtpu: 0.0.40
codegen_flags: <defaults>
</compile_context>

<pallas_src>
import functools

import jax
import jax.numpy as jnp
from jax import lax
from jax.experimental import pallas as pl
from jax.experimental.pallas import tpu as pltpu


def _sepconv_fused_kernel(x_ref, dw1_ref, pw1_ref, g1_ref, b1_ref,
                          dw2_ref, pw2_ref, g2_ref, b2_ref,
                          o_ref, xp1_ref, xp2_ref,
                          *, k, stride, pad, h1, w1, h2, w2, eps):
    """One batch sample: two fused (ReLU -> depthwise -> 1x1 -> GroupNorm) stages.

    x_ref:   (1, Cin, H, W)      unpadded NCHW sample
    dw*_ref: (C, k, k)           depthwise filters (channel-major)
    pw*_ref: (Cout_stage, Cin)   pointwise (1x1) filters
    g*/b*:   (Cout_stage, 1)     GroupNorm affine (broadcast over lanes)
    o_ref:   (1, Cout, h2*w2)    lane-dense output slab
    xp*_ref: VMEM scratch for the zero-padded stage inputs
    """

    def stage(x, xp_ref, dw, pw, g, b, s, ho, wo):
        # x: (C, Hi, Wi) pre-activation, float32.
        c_in, hi, wi = x.shape

        # ReLU + zero halo, built entirely in VMEM (no HBM pad round-trip).
        xp_ref[...] = jnp.zeros_like(xp_ref)
        xp_ref[:, pad:pad + hi, pad:pad + wi] = jnp.maximum(x, 0.0)
        xp = xp_ref[...]

        # Depthwise conv: k*k shift-multiply-accumulate taps on the VPU.
        acc = jnp.zeros((c_in, ho, wo), jnp.float32)
        for i in range(k):
            for j in range(k):
                patch = lax.slice(
                    xp,
                    (0, i, j),
                    (c_in, i + s * (ho - 1) + 1, j + s * (wo - 1) + 1),
                    (1, s, s),
                )
                acc = acc + patch * dw[:, i, j][:, None, None]

        # Pointwise (1x1) conv as (Cout, Cin) @ (Cin, Ho*Wo): lanes = Ho*Wo.
        y = jnp.dot(pw, acc.reshape(c_in, ho * wo),
                    preferred_element_type=jnp.float32)

        # GroupNorm(1, C): single-pass sum / sum-of-squares over the sample.
        n = y.size
        s1 = jnp.sum(y)
        s2 = jnp.sum(y * y)
        mean = s1 / n
        var = s2 / n - mean * mean
        rstd = lax.rsqrt(var + eps)
        return (y - mean) * rstd * g + b          # (Cout_stage, ho*wo)

    x = x_ref[0].astype(jnp.float32)              # (Cin, H, W)

    z1 = stage(x, xp1_ref,
               dw1_ref[...].astype(jnp.float32), pw1_ref[...].astype(jnp.float32),
               g1_ref[...].astype(jnp.float32), b1_ref[...].astype(jnp.float32),
               stride, h1, w1)                    # (Cin, h1*w1)

    z2 = stage(z1.reshape(z1.shape[0], h1, w1), xp2_ref,
               dw2_ref[...].astype(jnp.float32), pw2_ref[...].astype(jnp.float32),
               g2_ref[...].astype(jnp.float32), b2_ref[...].astype(jnp.float32),
               1, h2, w2)                         # (Cout, h2*w2)

    o_ref[0] = z2.astype(o_ref.dtype)


def sep_conv(x_nchw, params, *, kernel_size, stride, padding, eps=1e-5):
    """Fused SepConv forward. Input/output are NCHW like the PyTorch module."""
    b, cin, h, w = x_nchw.shape
    cout = params["pw2"].shape[0]
    k, p = kernel_size, padding
    h1 = (h + 2 * p - k) // stride + 1
    w1 = (w + 2 * p - k) // stride + 1
    h2 = (h1 + 2 * p - k) + 1
    w2 = (w1 + 2 * p - k) + 1

    kernel = functools.partial(_sepconv_fused_kernel, k=k, stride=stride, pad=p,
                               h1=h1, w1=w1, h2=h2, w2=w2, eps=eps)

    out_flat = pl.pallas_call(
        kernel,
        out_shape=jax.ShapeDtypeStruct((b, cout, h2 * w2), x_nchw.dtype),
        grid_spec=pltpu.PrefetchScalarGridSpec(
            num_scalar_prefetch=0,
            grid=(b,),
            in_specs=[
                pl.BlockSpec((1, cin, h, w), lambda i: (i, 0, 0, 0)),
                pl.BlockSpec((cin, k, k), lambda i: (0, 0, 0)),
                pl.BlockSpec((cin, cin), lambda i: (0, 0)),
                pl.BlockSpec((cin, 1), lambda i: (0, 0)),
                pl.BlockSpec((cin, 1), lambda i: (0, 0)),
                pl.BlockSpec((cin, k, k), lambda i: (0, 0, 0)),
                pl.BlockSpec((cout, cin), lambda i: (0, 0)),
                pl.BlockSpec((cout, 1), lambda i: (0, 0)),
                pl.BlockSpec((cout, 1), lambda i: (0, 0)),
            ],
            out_specs=pl.BlockSpec((1, cout, h2 * w2), lambda i: (i, 0, 0)),
            scratch_shapes=[
                pltpu.VMEM((cin, h + 2 * p, w + 2 * p), jnp.float32),
                pltpu.VMEM((cin, h1 + 2 * p, w1 + 2 * p), jnp.float32),
            ],
        ),
        compiler_params=pltpu.CompilerParams(
            dimension_semantics=("parallel",)),
    )(x_nchw, params["dw1"], params["pw1"], params["g1"], params["b1"],
      params["dw2"], params["pw2"], params["g2"], params["b2"])

    # Free reshape (contiguous) back to NCHW.
    return out_flat.reshape(b, cout, h2, w2)


def sep_conv_ref(x, params, *, kernel_size, stride, padding, eps=1e-5):
    """Pure-JAX reference matching PyTorch SepConv semantics (NCHW)."""

    def stage(x, dw, pw, g, b, s):
        c = x.shape[1]
        x = jax.nn.relu(x)
        y = lax.conv_general_dilated(
            x, dw.reshape(c, 1, kernel_size, kernel_size),
            window_strides=(s, s), padding=[(padding, padding)] * 2,
            dimension_numbers=("NCHW", "OIHW", "NCHW"),
            feature_group_count=c)
        y = lax.conv_general_dilated(
            y, pw[:, :, None, None],
            window_strides=(1, 1), padding="VALID",
            dimension_numbers=("NCHW", "OIHW", "NCHW"))
        mean = jnp.mean(y, axis=(1, 2, 3), keepdims=True)
        var = jnp.var(y, axis=(1, 2, 3), keepdims=True)
        y = (y - mean) / jnp.sqrt(var + eps)
        return y * g.reshape(1, -1, 1, 1) + b.reshape(1, -1, 1, 1)

    y = stage(x, params["dw1"], params["pw1"], params["g1"], params["b1"], stride)
    y = stage(y, params["dw2"], params["pw2"], params["g2"], params["b2"], 1)
    return y


def init_params(key, c_in, c_out, k):
    k1, k2, k3, k4 = jax.random.split(key, 4)
    return {
        # depthwise: PyTorch (C,1,k,k) stored channel-major as (C,k,k)
        "dw1": jax.random.normal(k1, (c_in, k, k), jnp.float32) * 0.2,
        # pointwise: PyTorch (C_out,C_in,1,1) stored as (C_out,C_in)
        "pw1": jax.random.normal(k2, (c_in, c_in), jnp.float32) * 0.2,
        "g1": jnp.ones((c_in, 1), jnp.float32),   # GroupNorm affine init
        "b1": jnp.zeros((c_in, 1), jnp.float32),
        "dw2": jax.random.normal(k3, (c_in, k, k), jnp.float32) * 0.2,
        "pw2": jax.random.normal(k4, (c_out, c_in), jnp.float32) * 0.2,
        "g2": jnp.ones((c_out, 1), jnp.float32),
        "b2": jnp.zeros((c_out, 1), jnp.float32),
    }


if __name__ == "__main__":
    B, C_IN, C_OUT, H, W = 2, 4, 8, 16, 16
    K, STRIDE, PAD = 3, 1, 1

    key = jax.random.PRNGKey(0)
    kx, kp = jax.random.split(key)
    x = jax.random.normal(kx, (B, C_IN, H, W), jnp.float32)   # PyTorch NCHW input
    params = init_params(kp, C_IN, C_OUT, K)

    out = sep_conv(x, params, kernel_size=K, stride=STRIDE, padding=PAD)
    out = jax.block_until_ready(out)

    ref = sep_conv_ref(x, params, kernel_size=K, stride=STRIDE, padding=PAD)
    ref = jax.block_until_ready(ref)

    assert out.shape == ref.shape, (out.shape, ref.shape)
    max_err = float(jnp.max(jnp.abs(out - ref)))
    assert jnp.allclose(out, ref, atol=1e-4, rtol=1e-4), max_err

    print("KERNEL_OK")
</pallas_src>

<mosaic_0001>
module attributes {stable_mosaic.version = 11 : i64} {
  func.func @_sepconv_fused_kernel(%arg0: i32, %arg1: memref<1x4x16x16xf32, #tpu.memory_space<vmem>>, %arg2: memref<4x3x3xf32, #tpu.memory_space<vmem>>, %arg3: memref<4x4xf32, #tpu.memory_space<vmem>>, %arg4: memref<4x1xf32, #tpu.memory_space<vmem>>, %arg5: memref<4x1xf32, #tpu.memory_space<vmem>>, %arg6: memref<4x3x3xf32, #tpu.memory_space<vmem>>, %arg7: memref<8x4xf32, #tpu.memory_space<vmem>>, %arg8: memref<8x1xf32, #tpu.memory_space<vmem>>, %arg9: memref<8x1xf32, #tpu.memory_space<vmem>>, %arg10: memref<1x8x256xf32, #tpu.memory_space<vmem>>, %arg11: memref<4x18x18xf32, #tpu.memory_space<vmem>>, %arg12: memref<4x18x18xf32, #tpu.memory_space<vmem>>) attributes {dimension_semantics = [#tpu.dimension_semantics<parallel>], iteration_bounds = array<i64: 2>, scalar_prefetch = 0 : i64, scratch_operands = 2 : i64, tpu.core_type = #tpu.core_type<tc>, window_params = [{transform_indices = @transform_0, window_bounds = array<i64: 1, 4, 16, 16>}, {pipeline_mode = #tpu.pipeline_mode<synchronous>, transform_indices = @transform_1, window_bounds = array<i64: 4, 3, 3>}, {pipeline_mode = #tpu.pipeline_mode<synchronous>, transform_indices = @transform_2, window_bounds = array<i64: 4, 4>}, {pipeline_mode = #tpu.pipeline_mode<synchronous>, transform_indices = @transform_3, window_bounds = array<i64: 4, 1>}, {pipeline_mode = #tpu.pipeline_mode<synchronous>, transform_indices = @transform_4, window_bounds = array<i64: 4, 1>}, {pipeline_mode = #tpu.pipeline_mode<synchronous>, transform_indices = @transform_5, window_bounds = array<i64: 4, 3, 3>}, {pipeline_mode = #tpu.pipeline_mode<synchronous>, transform_indices = @transform_6, window_bounds = array<i64: 8, 4>}, {pipeline_mode = #tpu.pipeline_mode<synchronous>, transform_indices = @transform_7, window_bounds = array<i64: 8, 1>}, {pipeline_mode = #tpu.pipeline_mode<synchronous>, transform_indices = @transform_8, window_bounds = array<i64: 8, 1>}, {transform_indices = @transform_9, window_bounds = array<i64: 1, 8, 256>}]} {
    %c0 = arith.constant 0 : index
    %c0_0 = arith.constant 0 : index
    %c0_1 = arith.constant 0 : index
    %c0_2 = arith.constant 0 : index
    %0 = vector.load %arg1[%c0, %c0_0, %c0_1, %c0_2] : memref<1x4x16x16xf32, #tpu.memory_space<vmem>>, vector<1x4x16x16xf32>
    %1 = vector.shape_cast %0 : vector<1x4x16x16xf32> to vector<4x16x16xf32>
    %c0_3 = arith.constant 0 : index
    %c0_4 = arith.constant 0 : index
    %c0_5 = arith.constant 0 : index
    %2 = vector.load %arg2[%c0_3, %c0_4, %c0_5] : memref<4x3x3xf32, #tpu.memory_space<vmem>>, vector<4x3x3xf32>
    %c0_6 = arith.constant 0 : index
    %c0_7 = arith.constant 0 : index
    %3 = vector.load %arg3[%c0_6, %c0_7] : memref<4x4xf32, #tpu.memory_space<vmem>>, vector<4x4xf32>
    %c0_8 = arith.constant 0 : index
    %c0_9 = arith.constant 0 : index
    %4 = vector.load %arg4[%c0_8, %c0_9] : memref<4x1xf32, #tpu.memory_space<vmem>>, vector<4x1xf32>
    %c0_10 = arith.constant 0 : index
    %c0_11 = arith.constant 0 : index
    %5 = vector.load %arg5[%c0_10, %c0_11] : memref<4x1xf32, #tpu.memory_space<vmem>>, vector<4x1xf32>
    %cst = arith.constant 0.000000e+00 : f32
    %6 = vector.broadcast %cst : f32 to vector<4x18x18xf32>
    %c0_12 = arith.constant 0 : index
    %c0_13 = arith.constant 0 : index
    %c0_14 = arith.constant 0 : index
    %7 = vector.load %arg11[%c0_12, %c0_13, %c0_14] : memref<4x18x18xf32, #tpu.memory_space<vmem>>, vector<4x18x18xf32>
    tpu.vector_store %arg11[%c0_12, %c0_13, %c0_14], %6 {strides = array<i32>} : memref<4x18x18xf32, #tpu.memory_space<vmem>>, vector<4x18x18xf32>,
    %cst_15 = arith.constant 0.000000e+00 : f32
    %8 = vector.broadcast %cst_15 : f32 to vector<4x16x16xf32>
    %9 = arith.maximumf %1, %8 : vector<4x16x16xf32>
    %c0_16 = arith.constant 0 : index
    %c1 = arith.constant 1 : index
    %c1_17 = arith.constant 1 : index
    %10 = vector.load %arg11[%c0_16, %c1, %c1_17] : memref<4x18x18xf32, #tpu.memory_space<vmem>>, vector<4x16x16xf32>
    tpu.vector_store %arg11[%c0_16, %c1, %c1_17], %9 {strides = array<i32>} : memref<4x18x18xf32, #tpu.memory_space<vmem>>, vector<4x16x16xf32>,
    %c0_18 = arith.constant 0 : index
    %c0_19 = arith.constant 0 : index
    %c0_20 = arith.constant 0 : index
    %11 = vector.load %arg11[%c0_18, %c0_19, %c0_20] : memref<4x18x18xf32, #tpu.memory_space<vmem>>, vector<4x18x18xf32>
    %cst_21 = arith.constant 0.000000e+00 : f32
    %12 = vector.broadcast %cst_21 : f32 to vector<4x16x16xf32>
    %13 = vector.extract_strided_slice %11 {offsets = [0, 0, 0], sizes = [4, 16, 16], strides = [1, 1, 1]} : vector<4x18x18xf32> to vector<4x16x16xf32>
    %14 = vector.extract_strided_slice %2 {offsets = [0, 0, 0], sizes = [4, 1, 1], strides = [1, 1, 1]} : vector<4x3x3xf32> to vector<4x1x1xf32>
    %15 = vector.shape_cast %14 : vector<4x1x1xf32> to vector<4xf32>
    %16 = vector.shape_cast %15 : vector<4xf32> to vector<4x1x1xf32>
    %17 = vector.broadcast %16 : vector<4x1x1xf32> to vector<4x16x16xf32>
    %18 = arith.mulf %13, %17 : vector<4x16x16xf32>
    %19 = arith.addf %12, %18 : vector<4x16x16xf32>
    %20 = vector.extract_strided_slice %11 {offsets = [0, 0, 1], sizes = [4, 16, 16], strides = [1, 1, 1]} : vector<4x18x18xf32> to vector<4x16x16xf32>
    %21 = vector.extract_strided_slice %2 {offsets = [0, 0, 1], sizes = [4, 1, 1], strides = [1, 1, 1]} : vector<4x3x3xf32> to vector<4x1x1xf32>
    %22 = vector.shape_cast %21 : vector<4x1x1xf32> to vector<4xf32>
    %23 = vector.shape_cast %22 : vector<4xf32> to vector<4x1x1xf32>
    %24 = vector.broadcast %23 : vector<4x1x1xf32> to vector<4x16x16xf32>
    %25 = arith.mulf %20, %24 : vector<4x16x16xf32>
    %26 = arith.addf %19, %25 : vector<4x16x16xf32>
    %27 = vector.extract_strided_slice %11 {offsets = [0, 0, 2], sizes = [4, 16, 16], strides = [1, 1, 1]} : vector<4x18x18xf32> to vector<4x16x16xf32>
    %28 = vector.extract_strided_slice %2 {offsets = [0, 0, 2], sizes = [4, 1, 1], strides = [1, 1, 1]} : vector<4x3x3xf32> to vector<4x1x1xf32>
    %29 = vector.shape_cast %28 : vector<4x1x1xf32> to vector<4xf32>
    %30 = vector.shape_cast %29 : vector<4xf32> to vector<4x1x1xf32>
    %31 = vector.broadcast %30 : vector<4x1x1xf32> to vector<4x16x16xf32>
    %32 = arith.mulf %27, %31 : vector<4x16x16xf32>
    %33 = arith.addf %26, %32 : vector<4x16x16xf32>
    %34 = vector.extract_strided_slice %11 {offsets = [0, 1, 0], sizes = [4, 16, 16], strides = [1, 1, 1]} : vector<4x18x18xf32> to vector<4x16x16xf32>
    %35 = vector.extract_strided_slice %2 {offsets = [0, 1, 0], sizes = [4, 1, 1], strides = [1, 1, 1]} : vector<4x3x3xf32> to vector<4x1x1xf32>
    %36 = vector.shape_cast %35 : vector<4x1x1xf32> to vector<4xf32>
    %37 = vector.shape_cast %36 : vector<4xf32> to vector<4x1x1xf32>
    %38 = vector.broadcast %37 : vector<4x1x1xf32> to vector<4x16x16xf32>
    %39 = arith.mulf %34, %38 : vector<4x16x16xf32>
    %40 = arith.addf %33, %39 : vector<4x16x16xf32>
    %41 = vector.extract_strided_slice %11 {offsets = [0, 1, 1], sizes = [4, 16, 16], strides = [1, 1, 1]} : vector<4x18x18xf32> to vector<4x16x16xf32>
    %42 = vector.extract_strided_slice %2 {offsets = [0, 1, 1], sizes = [4, 1, 1], strides = [1, 1, 1]} : vector<4x3x3xf32> to vector<4x1x1xf32>
    %43 = vector.shape_cast %42 : vector<4x1x1xf32> to vector<4xf32>
    %44 = vector.shape_cast %43 : vector<4xf32> to vector<4x1x1xf32>
    %45 = vector.broadcast %44 : vector<4x1x1xf32> to vector<4x16x16xf32>
    %46 = arith.mulf %41, %45 : vector<4x16x16xf32>
    %47 = arith.addf %40, %46 : vector<4x16x16xf32>
    %48 = vector.extract_strided_slice %11 {offsets = [0, 1, 2], sizes = [4, 16, 16], strides = [1, 1, 1]} : vector<4x18x18xf32> to vector<4x16x16xf32>
    %49 = vector.extract_strided_slice %2 {offsets = [0, 1, 2], sizes = [4, 1, 1], strides = [1, 1, 1]} : vector<4x3x3xf32> to vector<4x1x1xf32>
    %50 = vector.shape_cast %49 : vector<4x1x1xf32> to vector<4xf32>
    %51 = vector.shape_cast %50 : vector<4xf32> to vector<4x1x1xf32>
    %52 = vector.broadcast %51 : vector<4x1x1xf32> to vector<4x16x16xf32>
    %53 = arith.mulf %48, %52 : vector<4x16x16xf32>
    %54 = arith.addf %47, %53 : vector<4x16x16xf32>
    %55 = vector.extract_strided_slice %11 {offsets = [0, 2, 0], sizes = [4, 16, 16], strides = [1, 1, 1]} : vector<4x18x18xf32> to vector<4x16x16xf32>
    %56 = vector.extract_strided_slice %2 {offsets = [0, 2, 0], sizes = [4, 1, 1], strides = [1, 1, 1]} : vector<4x3x3xf32> to vector<4x1x1xf32>
    %57 = vector.shape_cast %56 : vector<4x1x1xf32> to vector<4xf32>
    %58 = vector.shape_cast %57 : vector<4xf32> to vector<4x1x1xf32>
    %59 = vector.broadcast %58 : vector<4x1x1xf32> to vector<4x16x16xf32>
    %60 = arith.mulf %55, %59 : vector<4x16x16xf32>
    %61 = arith.addf %54, %60 : vector<4x16x16xf32>
    %62 = vector.extract_strided_slice %11 {offsets = [0, 2, 1], sizes = [4, 16, 16], strides = [1, 1, 1]} : vector<4x18x18xf32> to vector<4x16x16xf32>
    %63 = vector.extract_strided_slice %2 {offsets = [0, 2, 1], sizes = [4, 1, 1], strides = [1, 1, 1]} : vector<4x3x3xf32> to vector<4x1x1xf32>
    %64 = vector.shape_cast %63 : vector<4x1x1xf32> to vector<4xf32>
    %65 = vector.shape_cast %64 : vector<4xf32> to vector<4x1x1xf32>
    %66 = vector.broadcast %65 : vector<4x1x1xf32> to vector<4x16x16xf32>
    %67 = arith.mulf %62, %66 : vector<4x16x16xf32>
    %68 = arith.addf %61, %67 : vector<4x16x16xf32>
    %69 = vector.extract_strided_slice %11 {offsets = [0, 2, 2], sizes = [4, 16, 16], strides = [1, 1, 1]} : vector<4x18x18xf32> to vector<4x16x16xf32>
    %70 = vector.extract_strided_slice %2 {offsets = [0, 2, 2], sizes = [4, 1, 1], strides = [1, 1, 1]} : vector<4x3x3xf32> to vector<4x1x1xf32>
    %71 = vector.shape_cast %70 : vector<4x1x1xf32> to vector<4xf32>
    %72 = vector.shape_cast %71 : vector<4xf32> to vector<4x1x1xf32>
    %73 = vector.broadcast %72 : vector<4x1x1xf32> to vector<4x16x16xf32>
    %74 = arith.mulf %69, %73 : vector<4x16x16xf32>
    %75 = arith.addf %68, %74 : vector<4x16x16xf32>
    %76 = vector.shape_cast %75 : vector<4x16x16xf32> to vector<4x256xf32>
    %cst_22 = arith.constant dense<0.000000e+00> : vector<4x256xf32>
    %77 = tpu.matmul %3, %76, %cst_22 {dimension_numbers = #tpu.dot_dimension_numbers<[1], [0], [0], [1], [0, 0, 1, 1], [], []>} : vector<4x4xf32>, vector<4x256xf32>, vector<4x256xf32> -> vector<4x256xf32>
    %78 = vector.shape_cast %77 : vector<4x256xf32> to vector<1x4x256xf32>
    %cst_23 = arith.constant dense<0.000000e+00> : vector<1xf32>
    %79 = vector.multi_reduction <add>, %78, %cst_23 [1, 2] : vector<1x4x256xf32> to vector<1xf32>
    %80 = vector.shape_cast %79 : vector<1xf32> to vector<1x1x1xf32>
    %81 = vector.extract %80[0, 0, 0] : f32 from vector<1x1x1xf32>
    %82 = arith.mulf %77, %77 : vector<4x256xf32>
    %83 = vector.shape_cast %82 : vector<4x256xf32> to vector<1x4x256xf32>
    %cst_24 = arith.constant dense<0.000000e+00> : vector<1xf32>
    %84 = vector.multi_reduction <add>, %83, %cst_24 [1, 2] : vector<1x4x256xf32> to vector<1xf32>
    %85 = vector.shape_cast %84 : vector<1xf32> to vector<1x1x1xf32>
    %86 = vector.extract %85[0, 0, 0] : f32 from vector<1x1x1xf32>
    %cst_25 = arith.constant 1.024000e+03 : f32
    %87 = arith.divf %81, %cst_25 : f32
    %cst_26 = arith.constant 1.024000e+03 : f32
    %88 = arith.divf %86, %cst_26 : f32
    %89 = arith.mulf %87, %87 : f32
    %90 = arith.subf %88, %89 : f32
    %cst_27 = arith.constant 9.99999974E-6 : f32
    %91 = arith.addf %90, %cst_27 : f32
    %92 = math.rsqrt %91 : f32
    %93 = vector.broadcast %87 : f32 to vector<4x256xf32>
    %94 = arith.subf %77, %93 : vector<4x256xf32>
    %95 = vector.broadcast %92 : f32 to vector<4x256xf32>
    %96 = arith.mulf %94, %95 : vector<4x256xf32>
    %97 = vector.broadcast %4 : vector<4x1xf32> to vector<4x256xf32>
    %98 = arith.mulf %96, %97 : vector<4x256xf32>
    %99 = vector.broadcast %5 : vector<4x1xf32> to vector<4x256xf32>
    %100 = arith.addf %98, %99 : vector<4x256xf32>
    %101 = vector.shape_cast %100 : vector<4x256xf32> to vector<4x16x16xf32>
    %c0_28 = arith.constant 0 : index
    %c0_29 = arith.constant 0 : index
    %c0_30 = arith.constant 0 : index
    %102 = vector.load %arg6[%c0_28, %c0_29, %c0_30] : memref<4x3x3xf32, #tpu.memory_space<vmem>>, vector<4x3x3xf32>
    %c0_31 = arith.constant 0 : index
    %c0_32 = arith.constant 0 : index
    %103 = vector.load %arg7[%c0_31, %c0_32] : memref<8x4xf32, #tpu.memory_space<vmem>>, vector<8x4xf32>
    %c0_33 = arith.constant 0 : index
    %c0_34 = arith.constant 0 : index
    %104 = vector.load %arg8[%c0_33, %c0_34] : memref<8x1xf32, #tpu.memory_space<vmem>>, vector<8x1xf32>
    %c0_35 = arith.constant 0 : index
    %c0_36 = arith.constant 0 : index
    %105 = vector.load %arg9[%c0_35, %c0_36] : memref<8x1xf32, #tpu.memory_space<vmem>>, vector<8x1xf32>
    %cst_37 = arith.constant 0.000000e+00 : f32
    %106 = vector.broadcast %cst_37 : f32 to vector<4x18x18xf32>
    %c0_38 = arith.constant 0 : index
    %c0_39 = arith.constant 0 : index
    %c0_40 = arith.constant 0 : index
    %107 = vector.load %arg12[%c0_38, %c0_39, %c0_40] : memref<4x18x18xf32, #tpu.memory_space<vmem>>, vector<4x18x18xf32>
    tpu.vector_store %arg12[%c0_38, %c0_39, %c0_40], %106 {strides = array<i32>} : memref<4x18x18xf32, #tpu.memory_space<vmem>>, vector<4x18x18xf32>,
    %cst_41 = arith.constant 0.000000e+00 : f32
    %108 = vector.broadcast %cst_41 : f32 to vector<4x16x16xf32>
    %109 = arith.maximumf %101, %108 : vector<4x16x16xf32>
    %c0_42 = arith.constant 0 : index
    %c1_43 = arith.constant 1 : index
    %c1_44 = arith.constant 1 : index
    %110 = vector.load %arg12[%c0_42, %c1_43, %c1_44] : memref<4x18x18xf32, #tpu.memory_space<vmem>>, vector<4x16x16xf32>
    tpu.vector_store %arg12[%c0_42, %c1_43, %c1_44], %109 {strides = array<i32>} : memref<4x18x18xf32, #tpu.memory_space<vmem>>, vector<4x16x16xf32>,
    %c0_45 = arith.constant 0 : index
    %c0_46 = arith.constant 0 : index
    %c0_47 = arith.constant 0 : index
    %111 = vector.load %arg12[%c0_45, %c0_46, %c0_47] : memref<4x18x18xf32, #tpu.memory_space<vmem>>, vector<4x18x18xf32>
    %cst_48 = arith.constant 0.000000e+00 : f32
    %112 = vector.broadcast %cst_48 : f32 to vector<4x16x16xf32>
    %113 = vector.extract_strided_slice %111 {offsets = [0, 0, 0], sizes = [4, 16, 16], strides = [1, 1, 1]} : vector<4x18x18xf32> to vector<4x16x16xf32>
    %114 = vector.extract_strided_slice %102 {offsets = [0, 0, 0], sizes = [4, 1, 1], strides = [1, 1, 1]} : vector<4x3x3xf32> to vector<4x1x1xf32>
    %115 = vector.shape_cast %114 : vector<4x1x1xf32> to vector<4xf32>
    %116 = vector.shape_cast %115 : vector<4xf32> to vector<4x1x1xf32>
    %117 = vector.broadcast %116 : vector<4x1x1xf32> to vector<4x16x16xf32>
    %118 = arith.mulf %113, %117 : vector<4x16x16xf32>
    %119 = arith.addf %112, %118 : vector<4x16x16xf32>
    %120 = vector.extract_strided_slice %111 {offsets = [0, 0, 1], sizes = [4, 16, 16], strides = [1, 1, 1]} : vector<4x18x18xf32> to vector<4x16x16xf32>
    %121 = vector.extract_strided_slice %102 {offsets = [0, 0, 1], sizes = [4, 1, 1], strides = [1, 1, 1]} : vector<4x3x3xf32> to vector<4x1x1xf32>
    %122 = vector.shape_cast %121 : vector<4x1x1xf32> to vector<4xf32>
    %123 = vector.shape_cast %122 : vector<4xf32> to vector<4x1x1xf32>
    %124 = vector.broadcast %123 : vector<4x1x1xf32> to vector<4x16x16xf32>
    %125 = arith.mulf %120, %124 : vector<4x16x16xf32>
    %126 = arith.addf %119, %125 : vector<4x16x16xf32>
    %127 = vector.extract_strided_slice %111 {offsets = [0, 0, 2], sizes = [4, 16, 16], strides = [1, 1, 1]} : vector<4x18x18xf32> to vector<4x16x16xf32>
    %128 = vector.extract_strided_slice %102 {offsets = [0, 0, 2], sizes = [4, 1, 1], strides = [1, 1, 1]} : vector<4x3x3xf32> to vector<4x1x1xf32>
    %129 = vector.shape_cast %128 : vector<4x1x1xf32> to vector<4xf32>
    %130 = vector.shape_cast %129 : vector<4xf32> to vector<4x1x1xf32>
    %131 = vector.broadcast %130 : vector<4x1x1xf32> to vector<4x16x16xf32>
    %132 = arith.mulf %127, %131 : vector<4x16x16xf32>
    %133 = arith.addf %126, %132 : vector<4x16x16xf32>
    %134 = vector.extract_strided_slice %111 {offsets = [0, 1, 0], sizes = [4, 16, 16], strides = [1, 1, 1]} : vector<4x18x18xf32> to vector<4x16x16xf32>
    %135 = vector.extract_strided_slice %102 {offsets = [0, 1, 0], sizes = [4, 1, 1], strides = [1, 1, 1]} : vector<4x3x3xf32> to vector<4x1x1xf32>
    %136 = vector.shape_cast %135 : vector<4x1x1xf32> to vector<4xf32>
    %137 = vector.shape_cast %136 : vector<4xf32> to vector<4x1x1xf32>
    %138 = vector.broadcast %137 : vector<4x1x1xf32> to vector<4x16x16xf32>
    %139 = arith.mulf %134, %138 : vector<4x16x16xf32>
    %140 = arith.addf %133, %139 : vector<4x16x16xf32>
    %141 = vector.extract_strided_slice %111 {offsets = [0, 1, 1], sizes = [4, 16, 16], strides = [1, 1, 1]} : vector<4x18x18xf32> to vector<4x16x16xf32>
    %142 = vector.extract_strided_slice %102 {offsets = [0, 1, 1], sizes = [4, 1, 1], strides = [1, 1, 1]} : vector<4x3x3xf32> to vector<4x1x1xf32>
    %143 = vector.shape_cast %142 : vector<4x1x1xf32> to vector<4xf32>
    %144 = vector.shape_cast %143 : vector<4xf32> to vector<4x1x1xf32>
    %145 = vector.broadcast %144 : vector<4x1x1xf32> to vector<4x16x16xf32>
    %146 = arith.mulf %141, %145 : vector<4x16x16xf32>
    %147 = arith.addf %140, %146 : vector<4x16x16xf32>
    %148 = vector.extract_strided_slice %111 {offsets = [0, 1, 2], sizes = [4, 16, 16], strides = [1, 1, 1]} : vector<4x18x18xf32> to vector<4x16x16xf32>
    %149 = vector.extract_strided_slice %102 {offsets = [0, 1, 2], sizes = [4, 1, 1], strides = [1, 1, 1]} : vector<4x3x3xf32> to vector<4x1x1xf32>
    %150 = vector.shape_cast %149 : vector<4x1x1xf32> to vector<4xf32>
    %151 = vector.shape_cast %150 : vector<4xf32> to vector<4x1x1xf32>
    %152 = vector.broadcast %151 : vector<4x1x1xf32> to vector<4x16x16xf32>
    %153 = arith.mulf %148, %152 : vector<4x16x16xf32>
    %154 = arith.addf %147, %153 : vector<4x16x16xf32>
    %155 = vector.extract_strided_slice %111 {offsets = [0, 2, 0], sizes = [4, 16, 16], strides = [1, 1, 1]} : vector<4x18x18xf32> to vector<4x16x16xf32>
    %156 = vector.extract_strided_slice %102 {offsets = [0, 2, 0], sizes = [4, 1, 1], strides = [1, 1, 1]} : vector<4x3x3xf32> to vector<4x1x1xf32>
    %157 = vector.shape_cast %156 : vector<4x1x1xf32> to vector<4xf32>
    %158 = vector.shape_cast %157 : vector<4xf32> to vector<4x1x1xf32>
    %159 = vector.broadcast %158 : vector<4x1x1xf32> to vector<4x16x16xf32>
    %160 = arith.mulf %155, %159 : vector<4x16x16xf32>
    %161 = arith.addf %154, %160 : vector<4x16x16xf32>
    %162 = vector.extract_strided_slice %111 {offsets = [0, 2, 1], sizes = [4, 16, 16], strides = [1, 1, 1]} : vector<4x18x18xf32> to vector<4x16x16xf32>
    %163 = vector.extract_strided_slice %102 {offsets = [0, 2, 1], sizes = [4, 1, 1], strides = [1, 1, 1]} : vector<4x3x3xf32> to vector<4x1x1xf32>
    %164 = vector.shape_cast %163 : vector<4x1x1xf32> to vector<4xf32>
    %165 = vector.shape_cast %164 : vector<4xf32> to vector<4x1x1xf32>
    %166 = vector.broadcast %165 : vector<4x1x1xf32> to vector<4x16x16xf32>
    %167 = arith.mulf %162, %166 : vector<4x16x16xf32>
    %168 = arith.addf %161, %167 : vector<4x16x16xf32>
    %169 = vector.extract_strided_slice %111 {offsets = [0, 2, 2], sizes = [4, 16, 16], strides = [1, 1, 1]} : vector<4x18x18xf32> to vector<4x16x16xf32>
    %170 = vector.extract_strided_slice %102 {offsets = [0, 2, 2], sizes = [4, 1, 1], strides = [1, 1, 1]} : vector<4x3x3xf32> to vector<4x1x1xf32>
    %171 = vector.shape_cast %170 : vector<4x1x1xf32> to vector<4xf32>
    %172 = vector.shape_cast %171 : vector<4xf32> to vector<4x1x1xf32>
    %173 = vector.broadcast %172 : vector<4x1x1xf32> to vector<4x16x16xf32>
    %174 = arith.mulf %169, %173 : vector<4x16x16xf32>
    %175 = arith.addf %168, %174 : vector<4x16x16xf32>
    %176 = vector.shape_cast %175 : vector<4x16x16xf32> to vector<4x256xf32>
    %cst_49 = arith.constant dense<0.000000e+00> : vector<8x256xf32>
    %177 = tpu.matmul %103, %176, %cst_49 {dimension_numbers = #tpu.dot_dimension_numbers<[1], [0], [0], [1], [0, 0, 1, 1], [], []>} : vector<8x4xf32>, vector<4x256xf32>, vector<8x256xf32> -> vector<8x256xf32>
    %178 = vector.shape_cast %177 : vector<8x256xf32> to vector<1x8x256xf32>
    %cst_50 = arith.constant dense<0.000000e+00> : vector<1xf32>
    %179 = vector.multi_reduction <add>, %178, %cst_50 [1, 2] : vector<1x8x256xf32> to vector<1xf32>
    %180 = vector.shape_cast %179 : vector<1xf32> to vector<1x1x1xf32>
    %181 = vector.extract %180[0, 0, 0] : f32 from vector<1x1x1xf32>
    %182 = arith.mulf %177, %177 : vector<8x256xf32>
    %183 = vector.shape_cast %182 : vector<8x256xf32> to vector<1x8x256xf32>
    %cst_51 = arith.constant dense<0.000000e+00> : vector<1xf32>
    %184 = vector.multi_reduction <add>, %183, %cst_51 [1, 2] : vector<1x8x256xf32> to vector<1xf32>
    %185 = vector.shape_cast %184 : vector<1xf32> to vector<1x1x1xf32>
    %186 = vector.extract %185[0, 0, 0] : f32 from vector<1x1x1xf32>
    %cst_52 = arith.constant 2.048000e+03 : f32
    %187 = arith.divf %181, %cst_52 : f32
    %cst_53 = arith.constant 2.048000e+03 : f32
    %188 = arith.divf %186, %cst_53 : f32
    %189 = arith.mulf %187, %187 : f32
    %190 = arith.subf %188, %189 : f32
    %cst_54 = arith.constant 9.99999974E-6 : f32
    %191 = arith.addf %190, %cst_54 : f32
    %192 = math.rsqrt %191 : f32
    %193 = vector.broadcast %187 : f32 to vector<8x256xf32>
    %194 = arith.subf %177, %193 : vector<8x256xf32>
    %195 = vector.broadcast %192 : f32 to vector<8x256xf32>
    %196 = arith.mulf %194, %195 : vector<8x256xf32>
    %197 = vector.broadcast %104 : vector<8x1xf32> to vector<8x256xf32>
    %198 = arith.mulf %196, %197 : vector<8x256xf32>
    %199 = vector.broadcast %105 : vector<8x1xf32> to vector<8x256xf32>
    %200 = arith.addf %198, %199 : vector<8x256xf32>
    %c0_55 = arith.constant 0 : index
    %c0_56 = arith.constant 0 : index
    %c0_57 = arith.constant 0 : index
    %201 = vector.load %arg10[%c0_55, %c0_56, %c0_57] : memref<1x8x256xf32, #tpu.memory_space<vmem>>, vector<1x8x256xf32>
    %202 = vector.shape_cast %201 : vector<1x8x256xf32> to vector<8x256xf32>
    %203 = vector.shape_cast %200 : vector<8x256xf32> to vector<1x8x256xf32>
    tpu.vector_store %arg10[%c0_55, %c0_56, %c0_57], %203 {strides = array<i32>} : memref<1x8x256xf32, #tpu.memory_space<vmem>>, vector<1x8x256xf32>,
    return
  }
  func.func @transform_0(%arg0: i32) -> (i32, i32, i32, i32) {
    %c0_i32 = arith.constant 0 : i32
    %c0_i32_0 = arith.constant 0 : i32
    %c0_i32_1 = arith.constant 0 : i32
    %c0_i32_2 = arith.constant 0 : i32
    return %arg0, %c0_i32, %c0_i32_0, %c0_i32_1 : i32, i32, i32, i32
  }
  func.func @transform_1(%arg0: i32) -> (i32, i32, i32) {
    %c0_i32 = arith.constant 0 : i32
    %c0_i32_0 = arith.constant 0 : i32
    %c0_i32_1 = arith.constant 0 : i32
    %c0_i32_2 = arith.constant 0 : i32
    return %c0_i32, %c0_i32_0, %c0_i32_1 : i32, i32, i32
  }
  func.func @transform_2(%arg0: i32) -> (i32, i32) {
    %c0_i32 = arith.constant 0 : i32
    %c0_i32_0 = arith.constant 0 : i32
    %c0_i32_1 = arith.constant 0 : i32
    return %c0_i32, %c0_i32_0 : i32, i32
  }
  func.func @transform_3(%arg0: i32) -> (i32, i32) {
    %c0_i32 = arith.constant 0 : i32
    %c0_i32_0 = arith.constant 0 : i32
    %c0_i32_1 = arith.constant 0 : i32
    return %c0_i32, %c0_i32_0 : i32, i32
  }
  func.func @transform_4(%arg0: i32) -> (i32, i32) {
    %c0_i32 = arith.constant 0 : i32
    %c0_i32_0 = arith.constant 0 : i32
    %c0_i32_1 = arith.constant 0 : i32
    return %c0_i32, %c0_i32_0 : i32, i32
  }
  func.func @transform_5(%arg0: i32) -> (i32, i32, i32) {
    %c0_i32 = arith.constant 0 : i32
    %c0_i32_0 = arith.constant 0 : i32
    %c0_i32_1 = arith.constant 0 : i32
    %c0_i32_2 = arith.constant 0 : i32
    return %c0_i32, %c0_i32_0, %c0_i32_1 : i32, i32, i32
  }
  func.func @transform_6(%arg0: i32) -> (i32, i32) {
    %c0_i32 = arith.constant 0 : i32
    %c0_i32_0 = arith.constant 0 : i32
    %c0_i32_1 = arith.constant 0 : i32
    return %c0_i32, %c0_i32_0 : i32, i32
  }
  func.func @transform_7(%arg0: i32) -> (i32, i32) {
    %c0_i32 = arith.constant 0 : i32
    %c0_i32_0 = arith.constant 0 : i32
    %c0_i32_1 = arith.constant 0 : i32
    return %c0_i32, %c0_i32_0 : i32, i32
  }
  func.func @transform_8(%arg0: i32) -> (i32, i32) {
    %c0_i32 = arith.constant 0 : i32
    %c0_i32_0 = arith.constant 0 : i32
    %c0_i32_1 = arith.constant 0 : i32
    return %c0_i32, %c0_i32_0 : i32, i32
  }
  func.func @transform_9(%arg0: i32) -> (i32, i32, i32) {
    %c0_i32 = arith.constant 0 : i32
    %c0_i32_0 = arith.constant 0 : i32
    %c0_i32_1 = arith.constant 0 : i32
    return %arg0, %c0_i32, %c0_i32_0 : i32, i32, i32
  }
}

</mosaic_0001>

<bundles_post_ra>
// kernel: tpu_custom_call.1
= control target key start
LH: loop header
LB: loop body
LE: loop exit
PB: predicated region body
PF: predicated region fallthrough
CT: control target
= control target key end

     0   :  { %s5060_s0 = inlined_call_operand.hbm [shape: f32[2,4,16,16], index: 0, kind: input, shape index: {}]   ;;  %s5061_s1 = inlined_call_operand.vmem [shape: f32[4,3,3], index: 1, kind: input, shape index: {}]   ;;  %s5062_s2 = inlined_call_operand.vmem [shape: f32[4,4], index: 2, kind: input, shape index: {}]   ;;  %s5063_s3 = inlined_call_operand.vmem [shape: f32[4,1], index: 3, kind: input, shape index: {}]   ;;  %s5064_s4 = inlined_call_operand.vmem [shape: f32[4,1], index: 4, kind: input, shape index: {}]   ;;  %s5065_s5 = inlined_call_operand.vmem [shape: f32[4,3,3], index: 5, kind: input, shape index: {}]   ;;  %s5066_s6 = inlined_call_operand.vmem [shape: f32[8,4], index: 6, kind: input, shape index: {}]   ;;  %s5067_s7 = inlined_call_operand.vmem [shape: f32[8,1], index: 7, kind: input, shape index: {}]   ;;  %s5068_s8 = inlined_call_operand.vmem [shape: f32[8,1], index: 8, kind: input, shape index: {}]   ;;  %s5069_s9 = inlined_call_operand.hbm [shape: f32[2,8,256], index: 9, kind: output, shape index: {}]  }
   0x1   :  { %5130 = sst [smem:[#allocation36_spill]] %s5060_s0 }
   0x2   :  { %5131 = sst [smem:[#allocation37_spill]] %s5061_s1 }
   0x3   :  { %5132 = sst [smem:[#allocation38_spill]] %s5062_s2 }
   0x4   :  { %5133 = sst [smem:[#allocation39_spill]] %s5063_s3 }
   0x5   :  { %5134 = sst [smem:[#allocation40_spill]] %s5064_s4 }
   0x6   :  { %5135 = sst [smem:[#allocation41_spill]] %s5065_s5 }
   0x7   :  { %5136 = sst [smem:[#allocation42_spill]] %s5069_s9 }
   0x8   :  { %14 = vsyncpa [#allocation5], 0 }
   0x9   :  { %16 = vsyncpa [#allocation5 + $0x1], 0 }
   0xa   :  { %17 = vsyncpa [#allocation6], 0 }
   0xb   :  { %19 = vsyncpa [#allocation6 + $0x1], 0  ;;  %s3227_s30 = smov 0   ;;  %s3229_s10 = smov 0  }
   0xc   :  { %s3231_s11 = smov 0   ;;  %s3233_s12 = smov 0  }
   0xd LB: > { %5137 = sst [smem:[#allocation10_spill]] %s3145_s30  ;;  %s3248_s13 = sadd.s32 4294967295, %s3157_s12   ;;  %s3157_s12 = sphi %s3233_s12, %s5285_s12   ;;  %s3153_s11 = sphi %s3231_s11, %s5288_s11   ;;  %s3149_s10 = sphi %s3229_s10, %s5287_s10   ;;  %s3145_s30 = sphi %s3227_s30, %s5286_s30  }
   0xe   : > { %5138 = sst [smem:[#allocation11_spill]] %s3149_s10  ;;  %s2803_s14 = sadd.s32 4294967294, %s3157_s12  }
   0xf   : > { %5139 = sst [smem:[#allocation12_spill]] %s3153_s11  ;;  %s3252_s15 = sadd.s32 1, %s3157_s12  }
  0x10   : > { %5140 = sst [smem:[#allocation13_spill]] %s3157_s12  ;;  %s32_s16 = sadd.s32 1, %s3153_s11 }
  0x11   : > { %5141 = sst [smem:[#allocation14_spill]] %s3248_s13  ;;  %s29_s17 = ssub.s32 %s3157_s12, %s3252_s15 }
  0x12   : > { %5142 = sst [smem:[#allocation15_spill]] %s3252_s15  ;;  %p39_p0 = scmp.ne.s32.totalorder %s3153_s11, %s3149_s10 }
  0x13   : > { %p30_p1 = scmp.eq.s32.totalorder %s29_s17, 0  ;;  %p40_p2 = scmp.eq.s32.totalorder %s3157_s12, 0 }
  0x14   : > { %p45_p3 = scmp.ne.s32.totalorder %s3149_s10, %s3145_s30  ;;  %p46_p4 = scmp.eq.s32.totalorder %s3248_s13, 0 }
  0x15   : > { %s3264_s18 = scalar_select %p30_p1, %s3153_s11, %s32_s16  }
  0x16   : > { %p3266_p5 = por %p40_p2, %p39_p0  ;;  %p3270_p6 = por %p46_p4, %p45_p3 }
  0x17   : > { %5143 = sst [smem:[#allocation16_spill]] %s3264_s18  ;;  %p237_p7 = scmp.eq.s32.totalorder %s3248_s13, 1 }
  0x18   : > { %p243_p8 = scmp.eq.s32.totalorder %s2803_s14, 1  ;;  %p2999_p10 = scmp.lt.s32.totalorder %s3157_s12, 2 }
  0x19   : > { %p3277_p11 = por %p237_p7, %p39_p0  ;;  %s287_s23 = sand.u32 1, %s3153_s11  }
  0x1a   : > { %p3281_p12 = por %p243_p8, %p45_p3  ;;  %s2825_s24 = sshll.u32 %s3157_s12, 6 }
  0x1b   : > { %s5146_s21 = scalar_select %p3277_p11, 1, 0 }
  0x1c   : > { %s5148_s22 = scalar_select %p3281_p12, 1, 0 }
  0x1d   : > { %5147 = sst [smem:[#allocation17_spill]] %s5146_s21  ;;  %s2806_s25 = sshll.u32 %s287_s23, 6 }
  0x1e   : > { %5149 = sst [smem:[#allocation18_spill]] %s5148_s22  ;;  %s291_s14 = scalar_lea.vmem [#allocation4], %s2806_s25 }
  0x1f   : > { %s5150_s0 = sld [smem:[#allocation36_spill]]  ;;  %s299_s16 = sshll.u32 %s291_s14, 4  ;;  %s300_s16 = int_to_ptr.vmem [resolvable:$true] %s299_s16 }
  0x20   : > { %p3292_p13 = pnand %p2999_p10, %p3266_p5  ;;  %p2809_p0 = scmp.ge.s32.totalorder %s3157_s12, 1 }
  0x21   : > { %p307_p1 = scmp.lt.s32.totalorder %s3157_s12, 3  ;;  %s288_s18 = scalar_lea.sflag [#allocation5], %s287_s23 }
  0x22   : > { %p3065_p3 = pneg %p3292_p13 }
  0x25   : > { %s296_s28 = scalar_lea.hbm %s5150_s0, %s2825_s24  ;;  %s3068_s19 = scalar_lea.hbm %s5150_s0, 128 }
  0x26   : > { %s297_s29 = sshll.u32 %s296_s28, 4  ;;  %s298_s29 = int_to_ptr.hbm [resolvable:$true] %s297_s29 }
  0x27   : > { %s3061_s11 = sshra.s32 %s298_s29, 4  ;;  %s3062_s11 = int_to_ptr.hbm [resolvable:$true] %s3061_s11 }
  0x28   : > { %s3063_s15 = scalar_lea.hbm %s3062_s11, 64  ;;  %p3069_p5 = scmp.lt.s32.totalorder %s3062_s11, %s5150_s0 }
  0x29   : > { %p3064_p2 = scmp.ne.s32.totalorder %s3062_s11, %s3063_s15  ;;  %p3070_p8 = scmp.lt.s32.totalorder %s3068_s19, %s3063_s15 }
  0x2b   : > { %p3066_p4 = pnand %p3065_p3, %p3064_p2  ;;  %p3071_p10 = por %p3070_p8, %p3069_p5 }
  0x2d   : > { %p3067_p7 = pneg %p3066_p4 }
  0x2f   : > { %p3072_p9 = pnand %p3071_p10, %p3067_p7 }
  0x31   : > { %3075 = shalt.err (!%p3072_p9)
}
  0x32   : > { %s3159_s23 = smov 128   ;;  %s3160_s28 = smov 8  }
  0x33   : > { %2994 = dma.hbm_to_vmem [thread:$0]  (!%p3292_p13), %s298_s29, 1024, %s300_s16, %s288_s18, %s3159_s23, %s3159_s23, %s3160_s28  }
  0x34   : > { %p308_p2 = pnand %p2809_p0, %p307_p1 }
  0x36   : > { %311 = sbr.rel (%p308_p2) target bundleno = 2144 (0x860), region = 56 }
  0x3b   : > { %s3313_s14 = sand.u32 1, %s3149_s10  }
  0x3c   : > { %5152 = sst [smem:[#allocation19_spill]] %s3313_s14  ;;  %s2810_s11 = sshll.u32 %s3313_s14, 6 }
  0x3d   : > { %s314_s15 = scalar_lea.sflag [#allocation5], %s3313_s14  ;;  %s3317_s24 = scalar_lea.vmem [#allocation4], %s2810_s11 }
  0x3e   : > { %3136 = dma.done.wait (%p3270_p6), %s314_s15, 1024  }
  0x3f   : > { %3138 = vsyncadd (%p3270_p6), %s314_s15, 4294966272  ;;  %s5153_s1 = sld [smem:[#allocation37_spill]]  ;;  %s5077_s25 = smov 127   ;;  %v360_v12 = vld [vmem:[%s3317_s24 + $0x38] sm:$0xff]  ;;  %v359_v13 = vld [vmem:[%s3317_s24 + $0x30] sm:$0xff]  ;;  %vm368_vm0 = vcmask 146432  }
  0x40   : > { %s5075_s20 = smov 126   ;;  %v355_v14 = vld [vmem:[%s3317_s24 + $0x10] sm:$0xff]  ;;  %v389_v15 = vmax.f32 %v360_v12, 0.0  ;;  %v388_v16 = vmax.f32 %v359_v13, 0.0  ;;  %s5073_s28 = smov 1   ;;  %v357_v18 = vld [vmem:[%s3317_s24 + $0x20] sm:$0xff] }
  0x41   : > { %v384_v17 = vmax.f32 %v355_v14, 0.0  ;;  %v356_v19 = vld [vmem:[%s3317_s24 + $0x18] sm:$0xff]  ;;  %v358_v20 = vld [vmem:[%s3317_s24 + $0x28] sm:$0xff]  ;;  %v386_v21 = vmax.f32 %v357_v18, 0.0  ;;  %v353_v25 = vld [vmem:[%s3317_s24] sm:$0xff]  ;;  %v3164_v42 = vmov 0.0  }
  0x42   : > { %v385_v22 = vmax.f32 %v356_v19, 0.0  ;;  %v387_v23 = vmax.f32 %v358_v20, 0.0  ;;  %v354_v24 = vld [vmem:[%s3317_s24 + $0x8] sm:$0xff]  ;;  %v382_v27 = vmax.f32 %v353_v25, 0.0  ;;  %373 = vst.msk [vmem:[#allocation2 + $0x18] sm:$0xff] %vm368_vm0, %v3164_v42  ;;  %vm422_vm1 = vcmask 138248  }
  0x43   : > { %v383_v26 = vmax.f32 %v354_v24, 0.0  ;;  %374 = vst.msk [vmem:[#allocation2 + $0x20] sm:$0xff] %vm368_vm0, %v3164_v42  ;;  %vm371_vm2 = vcmask 140288   ;;  %vm651_vm3 = vcmask 1046528   ;;  %vm920_vm4 = vcmask 1045504   ;;  %s5226_s2 = sld [smem:[#allocation38_spill]] }
  0x44   : > { %369 = vst.msk [vmem:[#allocation2] sm:$0xff] %vm368_vm0, %v3164_v42  ;;  %vm1150_vm5 = vcmask 1047556   ;;  %vm1318_vm6 = vcmask 130048   ;;  %vm1320_vm7 = vcmask 261120   ;;  %vm1322_vm8 = vcmask 392192   ;;  %s5227_s3 = sld [smem:[#allocation39_spill]] }
  0x45   : > { %v363_v0 = vld [vmem:[%s5153_s1 + $0x8] sm:$0x7]  ;;  %v361_v1 = vld [vmem:[%s5153_s1] sm:$0x7]  ;;  %v362_v2 = vld [vmem:[%s5153_s1 + $0x4] sm:$0x7] }
  0x46   : > { %479 = vrot.lane.b32.xlu1 %v363_v0, %s5077_s25  ;;  %475 = vrot.lane.b32.xlu0 %v361_v1, %s5077_s25  ;;  %2827 = vpush %v361_v1  ;;  %v364_v3 = vld [vmem:[%s5153_s1 + $0xc] sm:$0x7]  ;;  %v3341_v4 = vrot.slane %v361_v1, 1  ;;  %v3347_v5 = vrot.slane %v363_v0, 1  ;;  %v3349_v6 = vrot.slane %v362_v2, 1  ;;  %v3365_v8 = vrot.slane %v361_v1, 2 }
  0x47   : > { %543 = vrot.lane.b32.xlu2 %v361_v1, %s5075_s20  ;;  %2829 = vpush %v362_v2  ;;  %v3351_v7 = vrot.slane %v364_v3, 1  ;;  %v3367_v9 = vrot.slane %v362_v2, 2  ;;  %v3375_v10 = vrot.slane %v364_v3, 2  ;;  %v3377_v11 = vrot.slane %v363_v0, 2  ;;  %s5155_s1 = smov 127   ;;  %s5228_s4 = sld [smem:[#allocation40_spill]] }
  0x48   : > { %2831 = vpush %v363_v0  ;;  %vm1324_vm9 = vcmask 523264   ;;  %vm1326_vm10 = vcmask 654336   ;;  %vm1330_vm11 = vcmask 916480   ;;  %vm1328_vm12 = vcmask 785408   ;;  %s5229_s5 = sld [smem:[#allocation41_spill]] }
  0x49   : > { %2833 = vpush %v364_v3  ;;  %vm1343_vm13 = vcmask 1043456   ;;  %vm1339_vm14 = vcmask 31744  }
  0x4a   : > { %370 = vst.msk [vmem:[#allocation2 + $0x8] sm:$0xff] %vm368_vm0, %v3164_v42 }
  0x4b   : > { %376 = vst.msk [vmem:[#allocation2 + $0x30] sm:$0xff] %vm368_vm0, %v3164_v42 }
  0x4c   : > { %377 = vst.msk [vmem:[#allocation2 + $0x38] sm:$0xff] %vm368_vm0, %v3164_v42 }
  0x4d   : > { %379 = vst.msk [vmem:[#allocation2 + $0x48] sm:$0xff] %vm368_vm0, %v3164_v42 }
  0x4e   : > { %481 = vrot.lane.b32.xlu1 %v364_v3, %s5077_s25  ;;  %477 = vrot.lane.b32.xlu0 %v362_v2, %s5077_s25  ;;  %380 = vst.msk [vmem:[#allocation2 + $0x50] sm:$0xff] %vm368_vm0, %v3164_v42 }
  0x4f   : > { %545 = vrot.lane.b32.xlu2 %v362_v2, %s5075_s20  ;;  %1632 = vst.msk [vmem:[#allocation3] sm:$0xff] %vm368_vm0, %v3164_v42 }
  0x50   : > { %1633 = vst.msk [vmem:[#allocation3 + $0x8] sm:$0xff] %vm368_vm0, %v3164_v42 }
  0x51   : > { %1635 = vst.msk [vmem:[#allocation3 + $0x18] sm:$0xff] %vm368_vm0, %v3164_v42 }
  0x52   : > { %1636 = vst.msk [vmem:[#allocation3 + $0x20] sm:$0xff] %vm368_vm0, %v3164_v42 }
  0x53   : > { %1638 = vst.msk [vmem:[#allocation3 + $0x30] sm:$0xff] %vm368_vm0, %v3164_v42 }
  0x54   : > { %1639 = vst.msk [vmem:[#allocation3 + $0x38] sm:$0xff] %vm368_vm0, %v3164_v42 }
  0x55   : > { %1641 = vst.msk [vmem:[#allocation3 + $0x48] sm:$0xff] %vm368_vm0, %v3164_v42 }
  0x56   : > { %549 = vrot.lane.b32.xlu1 %v364_v3, %s5075_s20  ;;  %547 = vrot.lane.b32.xlu0 %v363_v0, %s5075_s20  ;;  %1642 = vst.msk [vmem:[#allocation3 + $0x50] sm:$0xff] %vm368_vm0, %v3164_v42 }
  0x57   : > { %688 = vrot.lane.b32.xlu2 %v3341_v4, %s5077_s25  ;;  %381 = vst.msk [vmem:[#allocation2 + $0x58] sm:$0x3] %vm371_vm2, %v3164_v42 }
  0x58   : > { %372 = vst.msk [vmem:[#allocation2 + $0x10] sm:$0x3] %vm371_vm2, %v3164_v42 }
  0x59   : > { %375 = vst.msk [vmem:[#allocation2 + $0x28] sm:$0x3] %vm371_vm2, %v3164_v42 }
  0x5a   : > { %378 = vst.msk [vmem:[#allocation2 + $0x40] sm:$0x3] %vm371_vm2, %v3164_v42 }
  0x5b   : > { %1634 = vst.msk [vmem:[#allocation3 + $0x10] sm:$0x3] %vm371_vm2, %v3164_v42 }
  0x5c   : > { %1637 = vst.msk [vmem:[#allocation3 + $0x28] sm:$0x3] %vm371_vm2, %v3164_v42 }
  0x5d   : > { %1640 = vst.msk [vmem:[#allocation3 + $0x40] sm:$0x3] %vm371_vm2, %v3164_v42 }
  0x5e   : > { %692 = vrot.lane.b32.xlu1 %v3347_v5, %s5077_s25  ;;  %690 = vrot.lane.b32.xlu0 %v3349_v6, %s5077_s25  ;;  %1643 = vst.msk [vmem:[#allocation3 + $0x58] sm:$0x3] %vm371_vm2, %v3164_v42 }
  0x5f   : > { %694 = vrot.lane.b32.xlu2 %v3351_v7, %s5077_s25 }
  0x66   : > { %786 = vrot.lane.b32.xlu1 %v3349_v6, %s5075_s20  ;;  %784 = vrot.lane.b32.xlu0 %v3341_v4, %s5075_s20 }
  0x67   : > { %788 = vrot.lane.b32.xlu2 %v3347_v5, %s5075_s20 }
  0x6e   : > { %957 = vrot.lane.b32.xlu1 %v3365_v8, %s5077_s25  ;;  %790 = vrot.lane.b32.xlu0 %v3351_v7, %s5075_s20 }
  0x6f   : > { %959 = vrot.lane.b32.xlu2 %v3367_v9, %s5077_s25 }
  0x76   : > { %963 = vrot.lane.b32.xlu1 %v3375_v10, %s5077_s25  ;;  %961 = vrot.lane.b32.xlu0 %v3377_v11, %s5077_s25 }
  0x77   : > { %1053 = vrot.lane.b32.xlu2 %v3365_v8, %s5075_s20  ;;  %s3438_s11 = spop %2827 }
  0x78   : > { %s3440_s15 = spop %2829 }
  0x79   : > { %s3444_s24 = spop %2831 }
  0x7a   : > { %s3450_s18 = spop %2833 }
  0x7e   : > { %1057 = vrot.lane.b32.xlu1 %v3377_v11, %s5075_s20  ;;  %1055 = vrot.lane.b32.xlu0 %v3367_v9, %s5075_s20 }
  0x7f   : > { %1059 = vrot.lane.b32.xlu2 %v3375_v10, %s5075_s20 }
  0x86   : > { %412 = vrot.lane.b32.xlu1 %v389_v15, %s5073_s28  ;;  %410 = vrot.lane.b32.xlu0 %v388_v16, %s5073_s28 }
  0x87   : > { %402 = vrot.lane.b32.xlu2 %v384_v17, %s5073_s28 }
  0x8e   : > { %406 = vrot.lane.b32.xlu1 %v386_v21, %s5073_s28  ;;  %404 = vrot.lane.b32.xlu0 %v385_v22, %s5073_s28 }
  0x8f   : > { %408 = vrot.lane.b32.xlu2 %v387_v23, %s5073_s28 }
  0x96   : > { %400 = vrot.lane.b32.xlu1 %v383_v26, %s5073_s28  ;;  %398 = vrot.lane.b32.xlu0 %v382_v27, %s5073_s28 }
  0xa1   : > { %v544_v28 = vpop.permute.xlu2 %543 }
  0xa9   : > { %v546_v29 = vpop.permute.xlu2 %545 }
  0xb1   : > { %v689_v30 = vpop.permute.xlu2 %688 }
  0xb8   : > { %v480_v31 = vpop.permute.xlu1 %479  ;;  %v476_v32 = vpop.permute.xlu0 %475 }
  0xb9   : > { %2835 = vpush %v476_v32  ;;  %v695_v33 = vpop.permute.xlu2 %694 }
  0xc0   : > { %v482_v34 = vpop.permute.xlu1 %481  ;;  %v478_v35 = vpop.permute.xlu0 %477 }
  0xc1   : > { %2837 = vpush %v478_v35  ;;  %v789_v36 = vpop.permute.xlu2 %788 }
  0xc2   : > { %2839 = vpush %v480_v31 }
  0xc3   : > { %2841 = vpush %v482_v34 }
  0xc4   : > { %2843 = vpush %v544_v28 }
  0xc5   : > { %2845 = vpush %v546_v29 }
  0xc8   : > { %v550_v37 = vpop.permute.xlu1 %549  ;;  %v548_v38 = vpop.permute.xlu0 %547 }
  0xc9   : > { %2847 = vpush %v548_v38  ;;  %v960_v39 = vpop.permute.xlu2 %959 }
  0xca   : > { %2849 = vpush %v550_v37 }
  0xcb   : > { %2851 = vpush %v3341_v4 }
  0xcc   : > { %2853 = vpush %v3349_v6 }
  0xcd   : > { %2855 = vpush %v3347_v5  ;;  %v5083_v5 = vstv %s3450_s18 }
  0xce   : > { %2857 = vpush %v3351_v7 }
  0xcf   : > { %2859 = vpush %v689_v30 }
  0xd0   : > { %v693_v40 = vpop.permute.xlu1 %692  ;;  %v691_v41 = vpop.permute.xlu0 %690 }
  0xd1   : > { %2861 = vpush %v691_v41  ;;  %v1054_v43 = vpop.permute.xlu2 %1053 }
  0xd2   : > { %2863 = vpush %v693_v40 }
  0xd3   : > { %2865 = vpush %v695_v33 }
  0xd8   : > { %v787_v44 = vpop.permute.xlu1 %786  ;;  %v785_v45 = vpop.permute.xlu0 %784 }
  0xd9   : > { %2867 = vpush %v785_v45  ;;  %v1060_v46 = vpop.permute.xlu2 %1059 }
  0xda   : > { %2869 = vpush %v787_v44 }
  0xdb   : > { %2871 = vpush %v789_v36 }
  0xe0   : > { %v958_v47 = vpop.permute.xlu1 %957  ;;  %v791_v48 = vpop.permute.xlu0 %790 }
  0xe1   : > { %2873 = vpush %v791_v48  ;;  %v403_v49 = vpop.permute.xlu2 %402 }
  0xe2   : > { %2875 = vpush %v3365_v8 }
  0xe3   : > { %2877 = vpush %v3367_v9 }
  0xe4   : > { %2879 = vpush %v3377_v11 }
  0xe5   : > { %2881 = vpush %v3375_v10 }
  0xe6   : > { %2883 = vpush %v958_v47 }
  0xe7   : > { %2885 = vpush %v960_v39 }
  0xe8   : > { %v964_v50 = vpop.permute.xlu1 %963  ;;  %v962_v51 = vpop.permute.xlu0 %961  ;;  %425 = vst.msk [vmem:[#allocation2 + $0x19] sm:$0xff] %vm422_vm1, %v403_v49 }
  0xe9   : > { %2887 = vpush %v962_v51  ;;  %v409_v59 = vpop.permute.xlu2 %408 }
  0xea   : > { %2889 = vpush %v964_v50  ;;  %s3456_s29 = spop %2835 }
  0xeb   : > { %2891 = vpush %v1054_v43  ;;  %v484_v22 = vstv %s3456_s29 }
  0xec   : > { %428 = vst.msk [vmem:[#allocation2 + $0x39] sm:$0xff] %vm422_vm1, %v409_v59 }
  0xef   : > { %v3458_v54 = vld [vmem:[#allocation2 + $0x18] sm:$0xff] }
  0xf0   : > { %v1058_v52 = vpop.permute.xlu1 %1057  ;;  %v1056_v53 = vpop.permute.xlu0 %1055  ;;  %5154 = vst [vmem:[#allocation20_spill] sm:$0xff] %v3458_v54 }
  0xf1   : > { %2893 = vpush %v1056_v53 }
  0xf2   : > { %2895 = vpush %v1058_v52  ;;  %s3460_s16 = spop %2837 }
  0xf3   : > { %2897 = vpush %v1060_v46  ;;  %v487_v55 = vstv %s3460_s16  ;;  %s3463_s17 = spop %2839  ;;  %v3580_v34 = vld [vmem:[#allocation2 + $0x40] sm:$0x3] }
  0xf4   : > { %v497_v56 = vmul.f32 %v487_v55, %v3458_v54  ;;  %s3468_s19 = spop %2841  ;;  %v490_v16 = vstv %s3463_s17 }
  0xf5   : > { %s3475_s26 = spop %2843  ;;  %v493_v6 = vstv %s3468_s19 }
  0xf6   : > { %515 = vrot.lane.b32.xlu1 %v497_v56, %s5077_s25  ;;  %s3481_s27 = spop %2845  ;;  %v552_v24 = vstv %s3475_s26 }
  0xf7   : > { %v555_v21 = vstv %s3481_s27 }
  0xf8   : > { %v413_v57 = vpop.permute.xlu1 %412  ;;  %v411_v58 = vpop.permute.xlu0 %410  ;;  %v3568_v27 = vmul.f32 %v555_v21, %v3458_v54 }
  0xf9   : > { %430 = vst.msk [vmem:[#allocation2 + $0x51] sm:$0xff] %vm422_vm1, %v413_v57 }
  0xfa   : > { %s3486_s23 = spop %2847  ;;  %429 = vst.msk [vmem:[#allocation2 + $0x49] sm:$0xff] %vm422_vm1, %v411_v58 }
  0xfb   : > { %s3490_s16 = spop %2849  ;;  %v558_v28 = vstv %s3486_s23 }
  0xfc   : > { %s3494_s28 = spop %2851  ;;  %v561_v29 = vstv %s3490_s16 }
  0xfd   : > { %s2854_s20 = spop %2853  ;;  %v3573_v30 = vstv %s3494_s28 }
  0xfe   : > { %v3497_v60 = vstv %s2854_s20  ;;  %s3499_s25 = spop %2855 }
  0xff   : > { %v3504_v61 = vmul.f32 %v3497_v60, %v3458_v54  ;;  %s2858_s0 = spop %2857  ;;  %v3577_v32 = vstv %s3499_s25  ;;  %s5162_s25 = smov 126  }
 0x100   : > { %v3506_v62 = vld [vmem:[#allocation2 + $0x58] sm:$0x3]  ;;  %v625_v63 = vstv %s2858_s0  ;;  %v407_v0 = vpop.permute.xlu1 %406  ;;  %v405_v1 = vpop.permute.xlu0 %404  ;;  %s3526_s0 = spop %2859 }
 0x101   : > { %v3509_v2 = vmul.f32 %v625_v63, %v3506_v62  ;;  %427 = vst.msk [vmem:[#allocation2 + $0x31] sm:$0xff] %vm422_vm1, %v407_v0  ;;  %v3513_v3 = vld [vmem:[#allocation2 + $0x48] sm:$0xff]  ;;  %v3515_v4 = vld [vmem:[#allocation2 + $0x50] sm:$0xff] }
 0x102   : > { %426 = vst.msk [vmem:[#allocation2 + $0x21] sm:$0xff] %vm422_vm1, %v405_v1  ;;  %v3520_v7 = vmul.f32 %v625_v63, %v3513_v3  ;;  %v3523_v8 = vmul.f32 %v625_v63, %v3515_v4  ;;  %v501_v9 = vmul.f32 %v493_v6, %v3513_v3  ;;  %s2862_s20 = spop %2861  ;;  %v502_v11 = vmul.f32 %v493_v6, %v3515_v4 }
 0x103   : > { %v3535_v14 = vmul.f32 %v5083_v5, %v3513_v3  ;;  %s2864_s19 = spop %2863  ;;  %v700_v25 = vstv %s2862_s20  ;;  %v569_v41 = vmul.f32 %v561_v29, %v3513_v3  ;;  %v570_v42 = vmul.f32 %v561_v29, %v3515_v4 }
 0x104   : > { %523 = vrot.lane.b32.xlu2 %v501_v9, %s5155_s1  ;;  %525 = vrot.lane.b32.xlu0 %v502_v11, %s5155_s1  ;;  %s2866_s10 = spop %2865  ;;  %v703_v35 = vstv %s2864_s19  ;;  %v3583_v36 = vmul.f32 %v700_v25, %v3458_v54 }
 0x105   : > { %5156 = vst [vmem:[#allocation21_spill] sm:$0xff] %v3535_v14  ;;  %v706_v37 = vstv %s2866_s10  ;;  %v3601_v47 = vmul.f32 %v703_v35, %v3580_v34 }
 0x106   : > { %v717_v51 = vmul.f32 %v706_v37, %v3513_v3  ;;  %v718_v52 = vmul.f32 %v706_v37, %v3515_v4  ;;  %v719_v58 = vmul.f32 %v706_v37, %v3506_v62 }
 0x107   : > { %5160 = vst [vmem:[#allocation25_spill] sm:$0xff] %v3601_v47 }
 0x108   : > { %v3528_v10 = vld [vmem:[#allocation2 + $0x38] sm:$0xff]  ;;  %v401_v12 = vpop.permute.xlu1 %400  ;;  %v399_v13 = vpop.permute.xlu0 %398  ;;  %v3543_v17 = vld [vmem:[#allocation2 + $0x30] sm:$0xff]  ;;  %v750_v29 = vrot.slane %v719_v58, 1 }
 0x109   : > { %v3537_v15 = vld [vmem:[#allocation2 + $0x20] sm:$0xff]  ;;  %424 = vst.msk [vmem:[#allocation2 + $0x9] sm:$0xff] %vm422_vm1, %v401_v12  ;;  %v500_v18 = vmul.f32 %v490_v16, %v3528_v10  ;;  %v499_v20 = vmul.f32 %v490_v16, %v3543_v17  ;;  %v3590_v43 = vld [vmem:[#allocation2 + $0x28] sm:$0x3]  ;;  %v3625_v63 = vmul.f32 %v703_v35, %v3543_v17  ;;  %v3647_v16 = vmul.f32 %v703_v35, %v3528_v10 }
 0x10a   : > { %5157 = vst [vmem:[#allocation22_spill] sm:$0xff] %v3537_v15  ;;  %v498_v19 = vmul.f32 %v487_v55, %v3537_v15  ;;  %s3547_s12 = spop %2867  ;;  %v712_v56 = vmul.f32 %v700_v25, %v3537_v15  ;;  %v713_v57 = vmul.f32 %v700_v25, %v3590_v43 }
 0x10b   : > { %423 = vst.msk [vmem:[#allocation2 + $0x1] sm:$0xff] %vm422_vm1, %v399_v13  ;;  %521 = vrot.lane.b32.xlu1 %v500_v18, %s5155_s1  ;;  %s3551_s17 = spop %2869  ;;  %v566_v13 = vmul.f32 %v555_v21, %v3537_v15  ;;  %v747_v18 = vrot.slane %v717_v51, 1 }
 0x10c   : > { %517 = vrot.lane.b32.xlu2 %v498_v19, %s5155_s1  ;;  %s3558_s22 = spop %2871  ;;  %519 = vrot.lane.b32.xlu0 %v499_v20, %s5155_s1  ;;  %v748_v19 = vrot.slane %v718_v52, 1  ;;  %v738_v25 = vrot.slane %v712_v56, 1  ;;  %v3653_v37 = vstv %s3551_s17  ;;  %v568_v56 = vmul.f32 %v558_v28, %v3528_v10 }
 0x10d   : > { %5163 = vst [vmem:[#allocation27_spill] sm:$0xff] %v3653_v37 }
 0x10e   : > { %v3691_v58 = vsel %vm651_vm3, %v747_v18, %v748_v19 }
 0x110   : > { %v3592_v44 = vld [vmem:[#allocation2 + $0x10] sm:$0x3] }
 0x112   : > { %v3556_v23 = vld [vmem:[#allocation2] sm:$0xff]  ;;  %s3562_s30 = spop %2873  ;;  %v3585_v38 = vld [vmem:[#allocation2 + $0x8] sm:$0xff] }
 0x113   : > { %v495_v26 = vmul.f32 %v484_v22, %v3556_v23  ;;  %s2876_s27 = spop %2875  ;;  %v802_v20 = vstv %s3562_s30  ;;  %v564_v18 = vmul.f32 %v552_v24, %v3585_v38 }
 0x114   : > { %s2878_s20 = spop %2877  ;;  %v885_v39 = vstv %s2876_s27  ;;  %591 = vrot.lane.b32.xlu2 %v569_v41, %s5162_s25  ;;  %593 = vrot.lane.b32.xlu0 %v570_v42, %s5162_s25  ;;  %v3667_v51 = vmul.f32 %v802_v20, %v3515_v4  ;;  %v3670_v52 = vmul.f32 %v802_v20, %v3506_v62 }
 0x115   : > { %v888_v40 = vstv %s2878_s20  ;;  %s2880_s28 = spop %2879  ;;  %511 = vrot.lane.b32.xlu1 %v495_v26, %s5155_s1  ;;  %v3595_v45 = vmul.f32 %v885_v39, %v3556_v23  ;;  %v3598_v46 = vmul.f32 %v885_v39, %v3585_v38  ;;  %v3604_v48 = vmul.f32 %v885_v39, %v3592_v44 }
 0x116   : > { %v3607_v49 = vmul.f32 %v888_v40, %v3458_v54  ;;  %v3610_v50 = vmul.f32 %v888_v40, %v3537_v15  ;;  %s2882_s10 = spop %2881  ;;  %v3615_v53 = vmul.f32 %v888_v40, %v3590_v43  ;;  %v891_v55 = vstv %s2880_s28  ;;  %s5230_s28 = smov 1  }
 0x117   : > { %5158 = vst [vmem:[#allocation23_spill] sm:$0xff] %v3595_v45  ;;  %v3622_v59 = vmul.f32 %v891_v55, %v3543_v17  ;;  %v3628_v0 = vmul.f32 %v891_v55, %v3528_v10  ;;  %v3631_v1 = vmul.f32 %v891_v55, %v3580_v34  ;;  %v894_v6 = vstv %s2882_s10  ;;  %s3633_s16 = spop %2883 }
 0x118   : > { %5159 = vst [vmem:[#allocation24_spill] sm:$0xff] %v3598_v46  ;;  %v3637_v9 = vmul.f32 %v894_v6, %v3513_v3  ;;  %v3640_v11 = vmul.f32 %v894_v6, %v3515_v4  ;;  %v3643_v12 = vmul.f32 %v894_v6, %v3506_v62  ;;  %s3650_s19 = spop %2885  ;;  %v740_v26 = vrot.slane %v713_v57, 1 }
 0x119   : > { %5161 = vst [vmem:[#allocation26_spill] sm:$0xff] %v3604_v48  ;;  %v737_v39 = vrot.slane %v3583_v36, 1  ;;  %v496_v40 = vmul.f32 %v484_v22, %v3585_v38  ;;  %v3675_v36 = vmul.f32 %v3653_v37, %v3458_v54  ;;  %v3679_v22 = vmul.f32 %v3653_v37, %v3537_v15 }
 0x11a   : > { %s3655_s27 = spop %2887  ;;  %v567_v57 = vmul.f32 %v558_v28, %v3543_v17  ;;  %v751_v6 = vsel %vm651_vm3, %v748_v19, %v750_v29  ;;  %v3701_v42 = vstv %s3633_s16  ;;  %v563_v28 = vmul.f32 %v552_v24, %v3556_v23 }
 0x11b   : > { %s2890_s30 = spop %2889  ;;  %5164 = vst [vmem:[#allocation28_spill] sm:$0xff] %v3675_v36  ;;  %v3717_v29 = vsel %vm651_vm3, %v737_v39, %v738_v25  ;;  %v3722_v21 = vstv %s3650_s19  ;;  %v3725_v35 = vstv %s3655_s27  ;;  %v3739_v31 = vmul.f32 %v3701_v42, %v3585_v38 }
 0x11c   : > { %5165 = vst [vmem:[#allocation29_spill] sm:$0xff] %v3679_v22  ;;  %513 = vrot.lane.b32.xlu2 %v496_v40, %s5155_s1  ;;  %s3685_s29 = spop %2891  ;;  %v3698_v40 = vmul.f32 %v802_v20, %v3513_v3  ;;  %583 = vrot.lane.b32.xlu0 %v3568_v27, %s5162_s25  ;;  %v977_v20 = vmul.f32 %v3701_v42, %v3556_v23  ;;  %v3731_v19 = vstv %s2890_s30  ;;  %v937_v47 = vrot.slane %v3640_v11, 2 }
 0x11d   : > { %585 = vrot.lane.b32.xlu1 %v566_v13, %s5162_s25  ;;  %v3695_v13 = vsel %vm651_vm3, %v738_v25, %v740_v26  ;;  %5166 = vst [vmem:[#allocation30_spill] sm:$0xff] %v3701_v42  ;;  %v980_v33 = vmul.f32 %v3722_v21, %v3458_v54  ;;  %v3746_v26 = vmul.f32 %v3722_v21, %v3537_v15  ;;  %v3757_v27 = vstv %s3685_s29 }
 0x11e   : > { %5167 = vst [vmem:[#allocation31_spill] sm:$0xff] %v3722_v21  ;;  %v986_v25 = vmul.f32 %v3731_v19, %v3513_v3  ;;  %v3754_v39 = vmul.f32 %v3731_v19, %v3515_v4  ;;  %v1001_v55 = vrot.slane %v977_v20, 2  ;;  %v3763_v5 = vmul.f32 %v3725_v35, %v3528_v10 }
 0x11f   : > { %5168 = vst [vmem:[#allocation32_spill] sm:$0xff] %v3725_v35  ;;  %v1006_v22 = vrot.slane %v980_v33, 2  ;;  %v1073_v20 = vmul.f32 %v3757_v27, %v3556_v23  ;;  %v3775_v41 = vmul.f32 %v3757_v27, %v3585_v38 }
 0x120   : > { %5169 = vst [vmem:[#allocation33_spill] sm:$0xff] %v3731_v19  ;;  %v1016_v36 = vrot.slane %v986_v25, 2  ;;  %v5173_v42 = vrot.slane %v3763_v5, 2 }
 0x121   : > { %5170 = vst [vmem:[#allocation34_spill] sm:$0xff] %v3757_v27  ;;  %v1097_v46 = vrot.slane %v1073_v20, 2 }
 0x122   : > { %s3705_s23 = spop %2893 }
 0x123   : > { %s2896_s17 = spop %2895  ;;  %v1065_v14 = vstv %s3705_s23 }
 0x124   : > { %s2898_s26 = spop %2897  ;;  %587 = vrot.lane.b32.xlu2 %v567_v57, %s5162_s25  ;;  %v1068_v21 = vstv %s2896_s17  ;;  %589 = vrot.lane.b32.xlu0 %v568_v56, %s5162_s25  ;;  %v1077_v56 = vmul.f32 %v1065_v14, %v3537_v15  ;;  %v1078_v33 = vmul.f32 %v1065_v14, %v3590_v43 }
 0x125   : > { %579 = vrot.lane.b32.xlu1 %v563_v28, %s5162_s25  ;;  %v983_v28 = vmul.f32 %v3725_v35, %v3543_v17  ;;  %v1071_v24 = vstv %s2898_s26  ;;  %v1079_v57 = vmul.f32 %v1068_v21, %v3543_v17  ;;  %v1080_v45 = vmul.f32 %v1068_v21, %v3528_v10 }
 0x126   : > { %v1082_v37 = vmul.f32 %v1071_v24, %v3513_v3  ;;  %v1083_v19 = vmul.f32 %v1071_v24, %v3515_v4  ;;  %v1076_v3 = vmul.f32 %v1065_v14, %v3458_v54  ;;  %v1084_v27 = vmul.f32 %v1071_v24, %v3506_v62 }
 0x127   : > { %v1011_v35 = vrot.slane %v983_v28, 2  ;;  %v1081_v54 = vmul.f32 %v1068_v21, %v3580_v34  ;;  %v1103_v24 = vrot.slane %v1077_v56, 2  ;;  %v1105_v20 = vrot.slane %v1078_v33, 2 }
 0x128   : > { %v1112_v28 = vrot.slane %v1082_v37, 2  ;;  %v1113_v25 = vrot.slane %v1083_v19, 2  ;;  %v1102_v14 = vrot.slane %v1076_v3, 2  ;;  %v5172_v37 = vrot.slane %v3746_v26, 2 }
 0x129   : > { %v1107_v21 = vrot.slane %v1079_v57, 2  ;;  %v3803_v11 = vsel %vm920_vm4, %v1011_v35, %v5173_v42  ;;  %v1108_v3 = vrot.slane %v1080_v45, 2  ;;  %v939_v57 = vrot.slane %v3643_v12, 2 }
 0x12a   : > { %v3798_v19 = vsel %vm920_vm4, %v1006_v22, %v5172_v37  ;;  %v1110_v56 = vrot.slane %v1081_v54, 2  ;;  %v5175_v33 = vstv %s3450_s18  ;;  %v5177_v45 = vrot.slane %v3775_v41, 2  ;;  %s5099_s18 = smov 80  }
 0x12b   : > { %v3819_v35 = vmul.f32 %v5175_v33, %v3515_v4  ;;  %v5181_v12 = vrot.slane %v3667_v51, 1  ;;  %v631_v4 = vmul.f32 %v3497_v60, %v3537_v15  ;;  %v634_v37 = vmul.f32 %v3577_v32, %v3528_v10 }
 0x12c   : > { %581 = vrot.lane.b32.xlu2 %v564_v18, %s5162_s25  ;;  %v1115_v18 = vrot.slane %v1084_v27, 2  ;;  %764 = vrot.lane.b32.xlu0 %v3691_v58, %s5155_s1  ;;  %v3824_v42 = vsel %vm920_vm4, %v1097_v46, %v5177_v45  ;;  %v5178_v58 = vrot.slane %v3647_v16, 1  ;;  %v5179_v27 = vrot.slane %v3625_v63, 1 }
 0x12d   : > { %766 = vrot.lane.b32.xlu1 %v751_v6, %s5155_s1  ;;  %v5171_v6 = vrot.slane %v3754_v39, 2  ;;  %5176 = vst [vmem:[#allocation35_spill] sm:$0xff] %v3819_v35  ;;  %v635_v46 = vmul.f32 %v3577_v32, %v3580_v34  ;;  %v628_v63 = vmul.f32 %v3573_v30, %v3585_v38  ;;  %v5183_v33 = vrot.slane %v3523_v8, 1 }
 0x12e   : > { %v663_v15 = vrot.slane %v634_v37, 1  ;;  %v3888_v8 = vsel %vm920_vm4, %v937_v47, %v939_v57  ;;  %v5188_v57 = vrot.slane %v3628_v0, 2  ;;  %v5193_v0 = vrot.slane %v3610_v50, 2 }
 0x12f   : > { %v3793_v48 = vsel %vm920_vm4, %v1016_v36, %v5171_v6  ;;  %v3808_v36 = vsel %vm920_vm4, %v1112_v28, %v1113_v25  ;;  %v5174_v6 = vrot.slane %v3739_v31, 2  ;;  %v744_v28 = vsel %vm651_vm3, %v5179_v27, %v5178_v58 }
 0x130   : > { %v3855_v58 = vsel %vm920_vm4, %v1113_v25, %v1115_v18  ;;  %v3858_v27 = vsel %vm920_vm4, %v1103_v24, %v1105_v20  ;;  %v653_v35 = vrot.slane %v628_v63, 1  ;;  %v5184_v25 = vmov %v5183_v33 }
 0x131   : > { %v3813_v22 = vsel %vm920_vm4, %v1001_v55, %v5174_v6  ;;  %v5180_v55 = vrot.slane %v3670_v52, 1  ;;  %v627_v52 = vmul.f32 %v3573_v30, %v3556_v23  ;;  %v5182_v6 = vrot.slane %v3509_v2, 1 }
 0x132   : > { %v665_v2 = vrot.slane %v635_v46, 1  ;;  %v5185_v18 = vrot.slane %v3520_v7, 1  ;;  %v629_v7 = vmul.f32 %v3573_v30, %v3592_v44  ;;  %v5187_v63 = vrot.slane %v3631_v1, 2 }
 0x133   : > { %v847_v54 = vsel %vm651_vm3, %v5181_v12, %v5180_v55  ;;  %v3852_v45 = vsel %vm651_vm3, %v5183_v33, %v5182_v6  ;;  %v3864_v55 = vsel %vm920_vm4, %v1107_v21, %v1108_v3  ;;  %v658_v12 = vrot.slane %v631_v4, 1 }
 0x134   : > { %756 = vrot.lane.b32.xlu2 %v3717_v29, %s5155_s1  ;;  %v652_v6 = vrot.slane %v627_v52, 1  ;;  %v3873_v20 = vsel %vm651_vm3, %v5185_v18, %v5184_v25  ;;  %v5186_v21 = vrot.slane %v3504_v61, 1  ;;  %v3885_v29 = vsel %vm651_vm3, %v663_v15, %v665_v2  ;;  %758 = vrot.lane.b32.xlu0 %v3695_v13, %s5155_s1 }
 0x135   : > { %760 = vrot.lane.b32.xlu1 %v744_v28, %s5155_s1  ;;  %v3861_v28 = vsel %vm920_vm4, %v1102_v14, %v1103_v24  ;;  %v633_v14 = vmul.f32 %v3577_v32, %v3543_v17  ;;  %v632_v24 = vmul.f32 %v3497_v60, %v3590_v43  ;;  %v3895_v32 = vsel %vm920_vm4, %v1108_v3, %v1110_v56 }
 0x136   : > { %v3882_v4 = vsel %vm651_vm3, %v5186_v21, %v658_v12  ;;  %v3898_v60 = vsel %vm651_vm3, %v652_v6, %v653_v35  ;;  %v655_v46 = vrot.slane %v629_v7, 1  ;;  %v3905_v52 = vsel %vm920_vm4, %v5188_v57, %v5187_v63 }
 0x137   : > { %v662_v61 = vrot.slane %v633_v14, 1  ;;  %v660_v37 = vrot.slane %v632_v24, 1  ;;  %v5189_v30 = vmov %v5188_v57  ;;  %v5190_v13 = vrot.slane %v3622_v59, 2  ;;  %v5198_v14 = vld [vmem:[#allocation24_spill] sm:$0xff] }
 0x138   : > { %v5191_v56 = vrot.slane %v3637_v9, 2  ;;  %v5192_v6 = vrot.slane %v3615_v53, 2  ;;  %v5194_v25 = vmov %v5193_v0  ;;  %v5195_v9 = vrot.slane %v3607_v49, 2  ;;  %v5196_v53 = vld [vmem:[#allocation26_spill] sm:$0xff]  ;;  %v5201_v49 = vld [vmem:[#allocation23_spill] sm:$0xff] }
 0x139   : > { %v3912_v3 = vsel %vm920_vm4, %v5190_v13, %v5189_v30  ;;  %v3920_v2 = vsel %vm651_vm3, %v662_v61, %v663_v15  ;;  %v3923_v1 = vsel %vm651_vm3, %v658_v12, %v660_v37  ;;  %v843_v15 = vrot.slane %v3698_v40, 1  ;;  %v5203_v37 = vld [vmem:[#allocation25_spill] sm:$0xff]  ;;  %v5206_v30 = vld [vmem:[#allocation28_spill] sm:$0xff] }
 0x13a   : > { %v3917_v33 = vsel %vm920_vm4, %v5191_v56, %v937_v47  ;;  %v3930_v59 = vsel %vm920_vm4, %v5193_v0, %v5192_v6  ;;  %v3937_v47 = vsel %vm920_vm4, %v5195_v9, %v5194_v25  ;;  %v3942_v12 = vsel %vm651_vm3, %v653_v35, %v655_v46  ;;  %v5207_v56 = vld [vmem:[#allocation29_spill] sm:$0xff] }
 0x13b   : > { %v5197_v18 = vrot.slane %v5196_v53, 2  ;;  %v5199_v24 = vrot.slane %v5198_v14, 2  ;;  %v5202_v7 = vrot.slane %v5201_v49, 2  ;;  %v697_v40 = vstv %s3526_s0  ;;  %s5097_s0 = smov 112  }
 0x13c   : > { %v5205_v35 = vrot.slane %v3647_v16, 1  ;;  %v709_v63 = vmul.f32 %v697_v40, %v3585_v38  ;;  %v708_v57 = vmul.f32 %v697_v40, %v3556_v23  ;;  %v833_v13 = vrot.slane %v5206_v30, 1 }
 0x13d   : > { %862 = vrot.lane.b32.xlu1 %v847_v54, %s5162_s25  ;;  %v3949_v21 = vsel %vm920_vm4, %v5199_v24, %v5197_v18  ;;  %v5200_v50 = vmov %v5199_v24  ;;  %v5204_v54 = vrot.slane %v5203_v37, 1  ;;  %v834_v6 = vrot.slane %v5207_v56, 1 }
 0x13e   : > { %v3956_v61 = vsel %vm920_vm4, %v5202_v7, %v5200_v50  ;;  %v799_v0 = vstv %s3558_s22  ;;  %v5208_v25 = vrot.slane %v3667_v51, 1  ;;  %v710_v53 = vmul.f32 %v697_v40, %v3592_v44  ;;  %v5209_v51 = vld [vmem:[#allocation27_spill] sm:$0xff]  ;;  %s5107_s22 = smov 32  }
 0x13f   : > { %v746_v46 = vsel %vm651_vm3, %v5205_v35, %v5204_v54  ;;  %v733_v16 = vrot.slane %v709_v63, 1  ;;  %v732_v18 = vrot.slane %v708_v57, 1  ;;  %v811_v14 = vmul.f32 %v799_v0, %v3528_v10 }
 0x140   : > { %762 = vrot.lane.b32.xlu2 %v746_v46, %s5155_s1  ;;  %v845_v9 = vsel %vm651_vm3, %v843_v15, %v5208_v25  ;;  %v812_v24 = vmul.f32 %v799_v0, %v3580_v34  ;;  %v835_v50 = vsel %vm651_vm3, %v833_v13, %v834_v6  ;;  %v735_v49 = vrot.slane %v710_v53, 1 }
 0x141   : > { %860 = vrot.lane.b32.xlu0 %v845_v9, %s5162_s25  ;;  %v809_v7 = vmul.f32 %v5209_v51, %v3590_v43  ;;  %v734_v15 = vsel %vm651_vm3, %v732_v18, %v733_v16  ;;  %v839_v40 = vrot.slane %v811_v14, 1  ;;  %v810_v54 = vmul.f32 %v799_v0, %v3543_v17  ;;  %v5210_v18 = vld [vmem:[#allocation31_spill] sm:$0xff] }
 0x142   : > { %v841_v37 = vrot.slane %v812_v24, 1  ;;  %v736_v35 = vsel %vm651_vm3, %v733_v16, %v735_v49  ;;  %v793_v30 = vstv %s3547_s12  ;;  %v982_v14 = vmul.f32 %v5210_v18, %v3590_v43  ;;  %s5109_s12 = smov 64  }
 0x143   : > { %v836_v46 = vrot.slane %v809_v7, 1  ;;  %v838_v57 = vrot.slane %v810_v54, 1  ;;  %v804_v13 = vmul.f32 %v793_v30, %v3556_v23  ;;  %v805_v56 = vmul.f32 %v793_v30, %v3585_v38 }
 0x144   : > { %v842_v63 = vsel %vm651_vm3, %v839_v40, %v841_v37  ;;  %v806_v0 = vmul.f32 %v793_v30, %v3592_v44  ;;  %v1009_v51 = vrot.slane %v982_v14, 2  ;;  %v5214_v37 = vld [vmem:[#allocation32_spill] sm:$0xff] }
 0x145   : > { %852 = vrot.lane.b32.xlu1 %v835_v50, %s5162_s25  ;;  %v837_v25 = vsel %vm651_vm3, %v834_v6, %v836_v46  ;;  %v840_v9 = vsel %vm651_vm3, %v838_v57, %v839_v40  ;;  %v828_v53 = vrot.slane %v804_v13, 1  ;;  %v829_v16 = vrot.slane %v805_v56, 1  ;;  %v5211_v50 = vld [vmem:[#allocation33_spill] sm:$0xff]  ;;  %v5215_v46 = vld [vmem:[#allocation30_spill] sm:$0xff] }
 0x146   : > { %v831_v24 = vrot.slane %v806_v0, 1  ;;  %v988_v6 = vmul.f32 %v5211_v50, %v3506_v62  ;;  %v5212_v40 = vrot.slane %v3746_v26, 2  ;;  %v985_v54 = vmul.f32 %v5214_v37, %v3580_v34  ;;  %v5223_v37 = vld [vmem:[#allocation20_spill] sm:$0xff] }
 0x147   : > { %v830_v49 = vsel %vm651_vm3, %v828_v53, %v829_v16  ;;  %v979_v26 = vmul.f32 %v5215_v46, %v3592_v44 }
 0x148   : > { %752 = vrot.lane.b32.xlu2 %v734_v15, %s5155_s1  ;;  %v832_v7 = vsel %vm651_vm3, %v829_v16, %v831_v24  ;;  %v1019_v15 = vrot.slane %v988_v6, 2  ;;  %v1010_v43 = vsel %vm920_vm4, %v5212_v40, %v1009_v51  ;;  %v449_v51 = vstv %s3440_s15  ;;  %s5103_s15 = smov 48  }
 0x149   : > { %754 = vrot.lane.b32.xlu0 %v736_v35, %s5155_s1  ;;  %v1004_v57 = vrot.slane %v979_v26, 2 }
 0x14d   : > { %858 = vrot.lane.b32.xlu1 %v842_v63, %s5162_s25  ;;  %v1014_v63 = vrot.slane %v985_v54, 2  ;;  %v461_v54 = vmul.f32 %v449_v51, %v5223_v37 }
 0x150   : > { %854 = vrot.lane.b32.xlu2 %v837_v25, %s5162_s25 }
 0x151   : > { %856 = vrot.lane.b32.xlu0 %v840_v9, %s5162_s25  ;;  %v5220_v9 = vld [vmem:[#allocation21_spill] sm:$0xff] }
 0x155   : > { %1033 = vrot.lane.b32.xlu1 %v3793_v48, %s5155_s1  ;;  %v5213_v48 = vrot.slane %v3754_v39, 2  ;;  %v5216_v39 = vrot.slane %v3763_v5, 2  ;;  %v5218_v5 = vld [vmem:[#allocation34_spill] sm:$0xff] }
 0x157   : > { %v1020_v62 = vsel %vm920_vm4, %v5213_v48, %v1019_v15  ;;  %v1015_v30 = vsel %vm920_vm4, %v5216_v39, %v1014_v63  ;;  %v5222_v15 = vld [vmem:[#allocation22_spill] sm:$0xff] }
 0x158   : > { %848 = vrot.lane.b32.xlu2 %v830_v49, %s5162_s25  ;;  %v462_v40 = vmul.f32 %v449_v51, %v5222_v15 }
 0x159   : > { %850 = vrot.lane.b32.xlu0 %v832_v7, %s5162_s25 }
 0x15d   : > { %1027 = vrot.lane.b32.xlu1 %v1010_v43, %s5155_s1 }
 0x15e   : > { %v524_v35 = vpop.permute.xlu2 %523 }
 0x15f   : > { %v541_v53 = vadd.f32 %v524_v35, %v5220_v9  ;;  %v445_v35 = vstv %s3438_s11  ;;  %s5105_s11 = smov 96  }
 0x160   : > { %1035 = vrot.lane.b32.xlu2 %v1020_v62, %s5155_s1  ;;  %v460_v63 = vmul.f32 %v445_v35, %v3585_v38 }
 0x161   : > { %1025 = vrot.lane.b32.xlu0 %v3798_v19, %s5155_s1  ;;  %v5217_v19 = vrot.slane %v3739_v31, 2 }
 0x163   : > { %v1005_v13 = vsel %vm920_vm4, %v5217_v19, %v1004_v57  ;;  %v459_v57 = vmul.f32 %v445_v35, %v3556_v23 }
 0x165   : > { %1129 = vrot.lane.b32.xlu1 %v3808_v36, %s5162_s25  ;;  %v1075_v36 = vmul.f32 %v5218_v5, %v3592_v44 }
 0x166   : > { %v518_v34 = vpop.permute.xlu2 %517 }
 0x167   : > { %v1100_v31 = vrot.slane %v1075_v36, 2  ;;  %v538_v48 = vadd.f32 %v518_v34, %v462_v40 }
 0x168   : > { %1029 = vrot.lane.b32.xlu2 %v3803_v11, %s5155_s1  ;;  %v516_v56 = vpop.permute.xlu1 %515 }
 0x169   : > { %1031 = vrot.lane.b32.xlu0 %v1015_v30, %s5155_s1 }
 0x16d   : > { %1023 = vrot.lane.b32.xlu1 %v1005_v13, %s5155_s1 }
 0x16e   : > { %v592_v11 = vpop.permute.xlu2 %591 }
 0x16f   : > { %v609_v44 = vadd.f32 %v592_v11, %v541_v53 }
 0x170   : > { %1131 = vrot.lane.b32.xlu2 %v3855_v58, %s5162_s25 }
 0x171   : > { %1021 = vrot.lane.b32.xlu0 %v3813_v22, %s5155_s1  ;;  %v5219_v22 = vrot.slane %v3775_v41, 2  ;;  %v686_v41 = vadd.f32 %v3873_v20, %v609_v44 }
 0x173   : > { %v1101_v0 = vsel %vm920_vm4, %v5219_v22, %v1100_v31 }
 0x175   : > { %1125 = vrot.lane.b32.xlu1 %v3864_v55, %s5162_s25 }
 0x176   : > { %v514_v58 = vpop.permute.xlu2 %513  ;;  %v526_v25 = vpop.permute.xlu0 %525 }
 0x177   : > { %v536_v30 = vadd.f32 %v514_v58, %v460_v63 }
 0x178   : > { %1121 = vrot.lane.b32.xlu2 %v3861_v28, %s5162_s25  ;;  %v453_v28 = vstv %s3444_s24  ;;  %s5101_s24 = smov 16  }
 0x179   : > { %1123 = vrot.lane.b32.xlu0 %v3858_v27, %s5162_s25  ;;  %v463_v16 = vmul.f32 %v453_v28, %v3543_v17  ;;  %v464_v36 = vmul.f32 %v453_v28, %v3528_v10 }
 0x17d   : > { %1119 = vrot.lane.b32.xlu1 %v1101_v0, %s5162_s25  ;;  %v522_v55 = vpop.permute.xlu1 %521 }
 0x17e   : > { %v588_v27 = vpop.permute.xlu2 %587  ;;  %v520_v18 = vpop.permute.xlu0 %519 }
 0x17f   : > { %v539_v14 = vadd.f32 %v520_v18, %v463_v16 }
 0x180   : > { %1127 = vrot.lane.b32.xlu2 %v3895_v32, %s5162_s25  ;;  %v5221_v32 = vld [vmem:[#allocation35_spill] sm:$0xff] }
 0x181   : > { %1117 = vrot.lane.b32.xlu0 %v3824_v42, %s5162_s25  ;;  %v607_v24 = vadd.f32 %v588_v27, %v539_v14  ;;  %v542_v7 = vadd.f32 %v526_v25, %v5221_v32 }
 0x183   : > { %v4057_v49 = vadd.f32 %v3920_v2, %v607_v24  ;;  %v537_v2 = vadd.f32 %v516_v56, %v461_v54 }
 0x186   : > { %v582_v6 = vpop.permute.xlu2 %581  ;;  %v594_v42 = vpop.permute.xlu0 %593 }
 0x187   : > { %v512_v50 = vpop.permute.xlu1 %511  ;;  %v610_v43 = vadd.f32 %v594_v42, %v542_v7  ;;  %v604_v34 = vadd.f32 %v582_v6, %v536_v30 }
 0x188   : > { %v535_v13 = vadd.f32 %v512_v50, %v459_v57 }
 0x189   : > { %v687_v20 = vadd.f32 %v3852_v45, %v610_v43  ;;  %v681_v56 = vadd.f32 %v3942_v12, %v604_v34 }
 0x18e   : > { %v757_v46 = vpop.permute.xlu2 %756  ;;  %v584_v39 = vpop.permute.xlu0 %583 }
 0x18f   : > { %v586_v17 = vpop.permute.xlu1 %585  ;;  %v605_v19 = vadd.f32 %v584_v39, %v537_v2 }
 0x190   : > { %v606_v62 = vadd.f32 %v586_v17, %v538_v48 }
 0x191   : > { %v682_v11 = vadd.f32 %v3882_v4, %v605_v19 }
 0x192   : > { %v683_v26 = vadd.f32 %v3923_v1, %v606_v62  ;;  %v540_v1 = vadd.f32 %v522_v55, %v464_v36 }
 0x196   : > { %v590_v38 = vpop.permute.xlu0 %589 }
 0x197   : > { %v580_v45 = vpop.permute.xlu1 %579  ;;  %v608_v22 = vadd.f32 %v590_v38, %v540_v1  ;;  %v3165_v38 = vmov 1983009808  }
 0x198   : > { %v603_v5 = vadd.f32 %v580_v45, %v535_v13 }
 0x199   : > { %v685_v23 = vadd.f32 %v3885_v29, %v608_v22  ;;  %v778_v29 = vadd.f32 %v757_v46, %v682_v11  ;;  %v1155_v22 = vunpack.c.l.s4 %v3165_v38 }
 0x19a   : > { %v763_v31 = vpop.permute.xlu2 %762  ;;  %v680_v25 = vadd.f32 %v3898_v60, %v603_v5 }
 0x19b   : > { %v781_v48 = vadd.f32 %v763_v31, %v685_v23 }
 0x19e   : > { %v765_v9 = vpop.permute.xlu0 %764 }
 0x19f   : > { %v767_v58 = vpop.permute.xlu1 %766  ;;  %v782_v55 = vadd.f32 %v765_v9, %v686_v41 }
 0x1a0   : > { %v783_v16 = vadd.f32 %v767_v58, %v687_v20 }
 0x1a2   : > { %v753_v0 = vpop.permute.xlu2 %752 }
 0x1a3   : > { %v776_v40 = vadd.f32 %v753_v0, %v680_v25 }
 0x1a6   : > { %v759_v4 = vpop.permute.xlu0 %758 }
 0x1a7   : > { %v761_v53 = vpop.permute.xlu1 %760  ;;  %v779_v27 = vadd.f32 %v759_v4, %v683_v26  ;;  %v4084_v4 = vunpack.c.0.s8 %v1155_v22 }
 0x1a8   : > { %v780_v62 = vadd.f32 %v761_v53, %v4057_v49 }
 0x1a9   : > { %5224 = vst [vmem:[#allocation26_spill] sm:$0xff] %v4084_v4 }
 0x1aa   : > { %v855_v44 = vpop.permute.xlu2 %854 }
 0x1ab   : > { %v875_v18 = vadd.f32 %v855_v44, %v779_v27 }
 0x1ad   : > { %v952_v12 = vadd.f32 %v3930_v59, %v875_v18 }
 0x1af   : > { %v863_v10 = vpop.permute.xlu1 %862 }
 0x1b0   : > { %v879_v28 = vadd.f32 %v863_v10, %v783_v16 }
 0x1b2   : > { %v849_v14 = vpop.permute.xlu2 %848  ;;  %v956_v60 = vadd.f32 %v3888_v8, %v879_v28 }
 0x1b3   : > { %v861_v24 = vpop.permute.xlu0 %860  ;;  %v872_v43 = vadd.f32 %v849_v14, %v776_v40 }
 0x1b4   : > { %v878_v50 = vadd.f32 %v861_v24, %v782_v55 }
 0x1b5   : > { %v949_v8 = vadd.f32 %v3956_v61, %v872_v43 }
 0x1b6   : > { %v955_v51 = vadd.f32 %v3917_v33, %v878_v50 }
 0x1b7   : > { %v853_v6 = vpop.permute.xlu1 %852 }
 0x1b8   : > { %v874_v32 = vadd.f32 %v853_v6, %v778_v29 }
 0x1ba   : > { %v1036_v7 = vpop.permute.xlu2 %1035  ;;  %v951_v15 = vadd.f32 %v3937_v47, %v874_v32 }
 0x1bb   : > { %v755_v42 = vpop.permute.xlu0 %754  ;;  %v1052_v25 = vadd.f32 %v1036_v7, %v956_v60 }
 0x1bc   : > { %v777_v46 = vadd.f32 %v755_v42, %v681_v56 }
 0x1bf   : > { %v859_v17 = vpop.permute.xlu1 %858 }
 0x1c0   : > { %v877_v20 = vadd.f32 %v859_v17, %v781_v48 }
 0x1c2   : > { %v1030_v59 = vpop.permute.xlu2 %1029  ;;  %v954_v41 = vadd.f32 %v3905_v52, %v877_v20 }
 0x1c3   : > { %v857_v37 = vpop.permute.xlu0 %856 }
 0x1c4   : > { %v876_v54 = vadd.f32 %v857_v37, %v780_v62 }
 0x1c6   : > { %v953_v33 = vadd.f32 %v3912_v3, %v876_v54 }
 0x1c7   : > { %v1034_v35 = vpop.permute.xlu1 %1033 }
 0x1c8   : > { %v1051_v61 = vadd.f32 %v1034_v35, %v955_v51  ;;  %v1049_v16 = vadd.f32 %v1030_v59, %v953_v33  ;;  %v3166_v51 = vmov 1934713408  }
 0x1c9   : > { %v1179_v32 = vunpack.c.l.s4 %v3166_v51 }
 0x1ca   : > { %v1132_v47 = vpop.permute.xlu2 %1131 }
 0x1cb   : > { %v851_v26 = vpop.permute.xlu0 %850  ;;  %v1148_v56 = vadd.f32 %v1132_v47, %v1052_v25  ;;  %v4097_v33 = vunpack.c.0.s8 %v1179_v32 }
 0x1cc   : > { %v873_v2 = vadd.f32 %v851_v26, %v777_v46 }
 0x1cd   : > { %v1218_v53 = vrot.slane %v1148_v56, 4  ;;  %5225 = vst [vmem:[#allocation24_spill] sm:$0xff] %v4097_v33 }
 0x1ce   : > { %v950_v57 = vadd.f32 %v3949_v21, %v873_v2 }
 0x1cf   : > { %v1028_v63 = vpop.permute.xlu1 %1027 }
 0x1d0   : > { %v1048_v23 = vadd.f32 %v1028_v63, %v952_v12 }
 0x1d2   : > { %v1122_v19 = vpop.permute.xlu2 %1121 }
 0x1d3   : > { %v1026_v39 = vpop.permute.xlu0 %1025 }
 0x1d4   : > { %v1047_v30 = vadd.f32 %v1026_v39, %v951_v15 }
 0x1d6   : > { %v1143_v13 = vadd.f32 %v1122_v19, %v1047_v30 }
 0x1d7   : > { %v1130_v52 = vpop.permute.xlu1 %1129 }
 0x1d8   : > { %v1147_v49 = vadd.f32 %v1130_v52, %v1051_v61  ;;  %v1164_v34 = vrot.slane %v1143_v13, 4 }
 0x1da   : > { %v1162_v11 = vrot.slane %v1147_v49, 4  ;;  %v1165_v3 = vsel %vm1150_vm5, %v1147_v49, %v1164_v34  ;;  %v1128_v58 = vpop.permute.xlu2 %1127 }
 0x1db   : > { %v1032_v5 = vpop.permute.xlu0 %1031  ;;  %v1173_v54 = vperm.slane %v1165_v3, %v4084_v4 }
 0x1dc   : > { %v1163_v45 = vsel %vm1150_vm5, %v1162_v11, %v1143_v13  ;;  %v1050_v21 = vadd.f32 %v1032_v5, %v954_v41 }
 0x1dd   : > { %v1169_v42 = vperm.slane %v1163_v45, %v4084_v4  ;;  %v1186_v61 = vrot.slane %v1173_v54, 4 }
 0x1de   : > { %v1146_v0 = vadd.f32 %v1128_v58, %v1050_v21 }
 0x1df   : > { %v1024_v36 = vpop.permute.xlu1 %1023 }
 0x1e0   : > { %v1046_v27 = vadd.f32 %v1024_v36, %v950_v57  ;;  %v1206_v14 = vrot.slane %v1146_v0, 4  ;;  %v1174_v57 = vrot.slane %v1169_v42, 4 }
 0x1e3   : > { %v1022_v31 = vpop.permute.xlu0 %1021 }
 0x1e4   : > { %v1045_v7 = vadd.f32 %v1022_v31, %v949_v8 }
 0x1e7   : > { %v1126_v1 = vpop.permute.xlu1 %1125 }
 0x1e8   : > { %v1145_v60 = vadd.f32 %v1126_v1, %v1049_v16 }
 0x1ea   : > { %v1149_v43 = vrot.slane %v1145_v60, 4 }
 0x1eb   : > { %v1124_v9 = vpop.permute.xlu0 %1123 }
 0x1ec   : > { %v1144_v44 = vadd.f32 %v1124_v9, %v1048_v23 }
 0x1ee   : > { %v1219_v18 = vsel %vm1150_vm5, %v1218_v53, %v1144_v44  ;;  %v1220_v10 = vrot.slane %v1144_v44, 4 }
 0x1ef   : > { %v1120_v28 = vpop.permute.xlu1 %1119  ;;  %v1225_v55 = vperm.slane %v1219_v18, %v4084_v4 }
 0x1f0   : > { %v1142_v24 = vadd.f32 %v1120_v28, %v1046_v27  ;;  %v1221_v12 = vsel %vm1150_vm5, %v1148_v56, %v1220_v10 }
 0x1f1   : > { %v1229_v50 = vperm.slane %v1221_v12, %v4084_v4  ;;  %v1230_v15 = vrot.slane %v1225_v55, 4 }
 0x1f2   : > { %v1207_v29 = vsel %vm1150_vm5, %v1206_v14, %v1142_v24  ;;  %v1208_v6 = vrot.slane %v1142_v24, 4 }
 0x1f3   : > { %v1213_v40 = vperm.slane %v1207_v29, %v4084_v4  ;;  %v1118_v17 = vpop.permute.xlu0 %1117  ;;  %v1242_v20 = vrot.slane %v1229_v50, 4 }
 0x1f4   : > { %v1209_v48 = vsel %vm1150_vm5, %v1146_v0, %v1208_v6  ;;  %v1141_v62 = vadd.f32 %v1118_v17, %v1045_v7 }
 0x1f5   : > { %v1217_v59 = vperm.slane %v1209_v48, %v4084_v4  ;;  %v1232_v41 = vrot.slane %v1213_v40, 4  ;;  %v1231_v37 = vsel %vm1150_vm5, %v1230_v15, %v1213_v40 }
 0x1f6   : > { %v1151_v8 = vsel %vm1150_vm5, %v1149_v43, %v1141_v62  ;;  %v1152_v35 = vrot.slane %v1141_v62, 4  ;;  %v1237_v25 = vperm.slane %v1231_v37, %v4097_v33 }
 0x1f7   : > { %v1243_v46 = vsel %vm1150_vm5, %v1242_v20, %v1217_v59  ;;  %v1233_v47 = vsel %vm1150_vm5, %v1225_v55, %v1232_v41  ;;  %v1157_v26 = vperm.slane %v1151_v8, %v4084_v4  ;;  %v1244_v30 = vrot.slane %v1217_v59, 4 }
 0x1f8   : > { %v1249_v2 = vperm.slane %v1243_v46, %v4097_v33  ;;  %v1241_v63 = vperm.slane %v1233_v47, %v4097_v33  ;;  %v1153_v39 = vsel %vm1150_vm5, %v1145_v60, %v1152_v35  ;;  %v1254_v56 = vrot.slane %v1237_v25, 4  ;;  %v365_v35 = vld [vmem:[%s5226_s2] sm:$0xf] }
 0x1f9   : > { %v1161_v19 = vperm.slane %v1153_v39, %v4084_v4  ;;  %v1176_v13 = vrot.slane %v1157_v26, 4  ;;  %v1175_v52 = vsel %vm1150_vm5, %v1174_v57, %v1157_v26  ;;  %v1245_v49 = vsel %vm1150_vm5, %v1229_v50, %v1244_v30 }
 0x1fa   : > { %1303 = vrot.lane.b32.xlu0 %v1249_v2, %s5109_s12  ;;  %1295 = vrot.lane.b32.xlu2 %v1241_v63, %s5107_s22  ;;  %v1181_v1 = vperm.slane %v1175_v52, %v4097_v33  ;;  %v1256_v21 = vrot.slane %v1241_v63, 4  ;;  %v1255_v23 = vsel %vm1150_vm5, 0.0, %v1254_v56  ;;  %v1258_v53 = vrot.slane %v1249_v2, 4 }
 0x1fb   : > { %v1177_v34 = vsel %vm1150_vm5, %v1169_v42, %v1176_v13  ;;  %v1188_v11 = vrot.slane %v1161_v19, 4  ;;  %v1187_v3 = vsel %vm1150_vm5, %v1186_v61, %v1161_v19  ;;  %v1253_v27 = vperm.slane %v1245_v49, %v4097_v33 }
 0x1fc   : > { %v1185_v45 = vperm.slane %v1177_v34, %v4097_v33  ;;  %v1193_v31 = vperm.slane %v1187_v3, %v4097_v33  ;;  %v1198_v38 = vrot.slane %v1181_v1, 4  ;;  %v1257_v22 = vsel %vm1150_vm5, 0.0, %v1256_v21 }
 0x1fd   : > { %v1189_v5 = vsel %vm1150_vm5, %v1173_v54, %v1188_v11  ;;  %v1259_v18 = vsel %vm1150_vm5, 0.0, %v1258_v53  ;;  %v1260_v10 = vrot.slane %v1253_v27, 4 }
 0x1fe   : > { %1267 = vrot.lane.b32.xlu1 %v1185_v45, %s5107_s22  ;;  %v1197_v36 = vperm.slane %v1189_v5, %v4097_v33  ;;  %v1199_v58 = vsel %vm1150_vm5, 0.0, %v1198_v38  ;;  %v1202_v0 = vrot.slane %v1193_v31, 4  ;;  %v1200_v9 = vrot.slane %v1185_v45, 4  ;;  %v366_v5 = vld [vmem:[%s5227_s3] sm:$0xf] }
 0x1ff   : > { %v1261_v14 = vsel %vm1150_vm5, 0.0, %v1260_v10  ;;  %v3174_v45 = vmov 0  }
 0x200   : > { %v1203_v44 = vsel %vm1150_vm5, 0.0, %v1202_v0  ;;  %v1201_v16 = vsel %vm1150_vm5, 0.0, %v1200_v9  ;;  %v1204_v28 = vrot.slane %v1197_v36, 4  ;;  %3051 = vset.pattern.permute.xlu0 %v3174_v45  ;;  %3052 = vset.pattern.permute.xlu1 %v3174_v45 }
 0x202   : > { %1283 = vrot.lane.b32.xlu0 %v1197_v36, %s5105_s11  ;;  %1275 = vrot.lane.b32.xlu2 %v1193_v31, %s5109_s12  ;;  %v1205_v60 = vsel %vm1150_vm5, 0.0, %v1204_v28  ;;  %v3175_v36 = vmov 1024.0   ;;  %v367_v31 = vld [vmem:[%s5228_s4] sm:$0xf] }
 0x203   : > { %3053 = vrcp.f32 %v3175_v36 }
 0x206   : > { %1299 = vrot.lane.b32.xlu1 %v1257_v22, %s5103_s15 }
 0x20a   : > { %1291 = vrot.lane.b32.xlu0 %v1255_v23, %s5101_s24  ;;  %1263 = vrot.lane.b32.xlu2 %v1199_v58, %s5101_s24 }
 0x20e   : > { %1279 = vrot.lane.b32.xlu1 %v1203_v44, %s5099_s18 }
 0x212   : > { %1271 = vrot.lane.b32.xlu0 %v1201_v16, %s5103_s15  ;;  %1307 = vrot.lane.b32.xlu2 %v1259_v18, %s5099_s18 }
 0x216   : > { %1311 = vrot.lane.b32.xlu1 %v1253_v27, %s5105_s11 }
 0x21a   : > { %1315 = vrot.lane.b32.xlu0 %v1261_v14, %s5097_s0  ;;  %1287 = vrot.lane.b32.xlu2 %v1205_v60, %s5097_s0 }
 0x222   : > { %1457 = vperm.xlu0 %3051, %v366_v5  }
 0x22a   : > { %1464 = vperm.xlu0 %3051, %v367_v31  }
 0x254   : > { %v1296_v55 = vpop.permute.xlu2 %1295 }
 0x25c   : > { %v1276_v24 = vpop.permute.xlu2 %1275 }
 0x264   : > { %v1264_v29 = vpop.permute.xlu2 %1263 }
 0x265   : > { %v1319_v43 = vsel %vm1318_vm6, %v1181_v1, %v1264_v29  ;;  %v1628_v29 = vld [vmem:[%s5229_s5 + $0xc] sm:$0x7] }
 0x26c   : > { %v1304_v12 = vpop.permute.xlu0 %1303  ;;  %v1308_v7 = vpop.permute.xlu2 %1307 }
 0x270   : > { %v1268_v50 = vpop.permute.xlu1 %1267 }
 0x271   : > { %v1321_v48 = vsel %vm1320_vm7, %v1319_v43, %v1268_v50  ;;  %v1625_v50 = vld [vmem:[%s5229_s5] sm:$0x7] }
 0x274   : > { %v1284_v6 = vpop.permute.xlu0 %1283  ;;  %v1288_v37 = vpop.permute.xlu2 %1287 }
 0x278   : > { %v1300_v51 = vpop.permute.xlu1 %1299 }
 0x27c   : > { %v1292_v32 = vpop.permute.xlu0 %1291 }
 0x27d   : > { %v1332_v15 = vsel %vm1318_vm6, %v1237_v25, %v1292_v32  ;;  %v3054_v25 = vpop.eup %3053  ;;  %v4211_v32 = vrot.slane %v1628_v29, 1 }
 0x27e   : > { %v1333_v42 = vsel %vm1320_vm7, %v1332_v15, %v1296_v55  ;;  %v1417_v1 = vmul.f32 1024.0, %v3054_v25  ;;  %vm1421_vm15 = vweird.f32 %v3054_v25 }
 0x27f   : > { %v1334_v20 = vsel %vm1322_vm8, %v1333_v42, %v1300_v51 }
 0x280   : > { %v1280_v40 = vpop.permute.xlu1 %1279  ;;  %v1335_v54 = vsel %vm1324_vm9, %v1334_v20, %v1304_v12  ;;  %v1418_v38 = vsub.f32 1.0, %v1417_v1  ;;  %v1627_v12 = vld [vmem:[%s5229_s5 + $0x8] sm:$0x7] }
 0x281   : > { %v1336_v26 = vsel %vm1326_vm10, %v1335_v54, %v1308_v7  ;;  %v4209_v51 = vrot.slane %v1627_v12, 1  ;;  %v4239_v54 = vrot.slane %v1627_v12, 2 }
 0x282   : > { %v1419_v53 = vmul.f32 %v3054_v25, %v1418_v38 }
 0x284   : > { %v1272_v17 = vpop.permute.xlu0 %1271  ;;  %v1420_v10 = vadd.f32 %v3054_v25, %v1419_v53 }
 0x285   : > { %v1323_v59 = vsel %vm1322_vm8, %v1321_v48, %v1272_v17  ;;  %v4227_v17 = vrot.slane %v1625_v50, 2 }
 0x286   : > { %v1325_v41 = vsel %vm1324_vm9, %v1323_v59, %v1276_v24  ;;  %v1422_v55 = vsel %vm1421_vm15, %v3054_v25, %v1420_v10  ;;  %v1626_v24 = vld [vmem:[%s5229_s5 + $0x4] sm:$0x7] }
 0x287   : > { %v1327_v62 = vsel %vm1326_vm10, %v1325_v41, %v1280_v40  ;;  %1738 = vrot.lane.b32.xlu0 %v1626_v24, %s5155_s1  ;;  %v4213_v15 = vrot.slane %v1626_v24, 1  ;;  %v4229_v20 = vrot.slane %v1626_v24, 2 }
 0x288   : > { %v1329_v8 = vsel %vm1328_vm12, %v1327_v62, %v1284_v6  ;;  %v1312_v46 = vpop.permute.xlu1 %1311  ;;  %v4199_v6 = vrot.slane %v1625_v50, 1 }
 0x289   : > { %v1331_v47 = vsel %vm1330_vm11, %v1329_v8, %v1288_v37  ;;  %v1337_v2 = vsel %vm1328_vm12, %v1336_v26, %v1312_v46  ;;  %v4237_v37 = vrot.slane %v1628_v29, 2 }
 0x28a   : > { %2812 = vmatpush.msk.msra.mxu0 %vm1343_vm13, %v1331_v47 }
 0x28b   : > { %2813 = vmatmul.msk.f32.vlgmr.msra.gmra.mxu0 %vm1339_vm14, %v365_v35 }
 0x28c   : > { %v1316_v63 = vpop.permute.xlu0 %1315 }
 0x28d   : > { %v1338_v57 = vsel %vm1330_vm11, %v1337_v2, %v1316_v63 }
 0x28e   : > { %2814 = vmatpush.msk.msra.mxu1 %vm1343_vm13, %v1338_v57 }
 0x28f   : > { %2815 = vmatmul.msk.f32.vlgmr.msra.gmra.mxu1 %vm1339_vm14, %v365_v35  ;;  %1804 = vrot.lane.b32.xlu0 %v1625_v50, %s5162_s25 }
 0x294   : > { %v1458_v8 = vpop.permute.xlu0 %1457 }
 0x297   : > { %1810 = vrot.lane.b32.xlu0 %v1628_v29, %s5162_s25 }
 0x29c   : > { %v1465_v63 = vpop.permute.xlu0 %1464 }
 0x29f   : > { %1952 = vrot.lane.b32.xlu0 %v4209_v51, %s5155_s1 }
 0x2a7   : > { %2046 = vrot.lane.b32.xlu0 %v4213_v15, %s5162_s25 }
 0x2af   : > { %2216 = vrot.lane.b32.xlu0 %v4227_v17, %s5155_s1 }
 0x2b7   : > { %2222 = vrot.lane.b32.xlu0 %v4237_v37, %s5155_s1 }
 0x2bf   : > { %2316 = vrot.lane.b32.xlu0 %v4239_v54, %s5162_s25 }
 0x308   : > { %v4161_v39 = vpop.f32.mrf.mxu0 }
 0x309   : > { %v1402_v30 = vmul.f32 %v4161_v39, %v4161_v39  ;;  %v1390_v61 = vsel %vm1343_vm13, %v4161_v39, 0.0 }
 0x30b   : > { %v1404_v49 = vsel %vm1343_vm13, %v1402_v30, 0.0 }
 0x30c   : > { %v4167_v19 = vpop.f32.mrf.mxu1 }
 0x30d   : > { %v1391_v13 = vsel %vm1343_vm13, %v4167_v19, 0.0  ;;  %v1403_v52 = vmul.f32 %v4167_v19, %v4167_v19 }
 0x30e   : > { %v1392_v34 = vadd.f32 %v1391_v13, %v1390_v61 }
 0x30f   : > { %v1405_v11 = vsel %vm1343_vm13, %v1403_v52, 0.0 }
 0x310   : > { %1393 = vadd.xlane.f32.xlu1 %v1392_v34  ;;  %v1406_v3 = vadd.f32 %v1405_v11, %v1404_v49  ;;  %v1739_v34 = vpop.permute.xlu0 %1738 }
 0x312   : > { %1407 = vadd.xlane.f32.xlu2 %v1406_v3 }
 0x318   : > { %v1805_v45 = vpop.permute.xlu0 %1804 }
 0x320   : > { %v1811_v36 = vpop.permute.xlu0 %1810 }
 0x328   : > { %v1953_v1 = vpop.permute.xlu0 %1952 }
 0x329   : > { %1736 = vrot.lane.b32.xlu1 %v1625_v50, %s5155_s1 }
 0x32a   : > { %1740 = vrot.lane.b32.xlu2 %v1627_v12, %s5155_s1 }
 0x330   : > { %v2047_v38 = vpop.permute.xlu0 %2046 }
 0x331   : > { %1742 = vrot.lane.b32.xlu1 %v1628_v29, %s5155_s1 }
 0x332   : > { %1806 = vrot.lane.b32.xlu2 %v1626_v24, %s5162_s25 }
 0x339   : > { %1808 = vrot.lane.b32.xlu1 %v1627_v12, %s5162_s25 }
 0x33a   : > { %1948 = vrot.lane.b32.xlu2 %v4199_v6, %s5155_s1 }
 0x341   : > { %1950 = vrot.lane.b32.xlu1 %v4213_v15, %s5155_s1 }
 0x342   : > { %1954 = vrot.lane.b32.xlu2 %v4211_v32, %s5155_s1 }
 0x349   : > { %2044 = vrot.lane.b32.xlu1 %v4199_v6, %s5162_s25 }
 0x34a   : > { %2048 = vrot.lane.b32.xlu2 %v4209_v51, %s5162_s25 }
 0x351   : > { %2050 = vrot.lane.b32.xlu1 %v4211_v32, %s5162_s25 }
 0x352   : > { %2218 = vrot.lane.b32.xlu2 %v4229_v20, %s5155_s1 }
 0x359   : > { %2220 = vrot.lane.b32.xlu1 %v4239_v54, %s5155_s1 }
 0x35a   : > { %2312 = vrot.lane.b32.xlu2 %v4227_v17, %s5162_s25 }
 0x361   : > { %2314 = vrot.lane.b32.xlu1 %v4229_v20, %s5162_s25 }
 0x362   : > { %2318 = vrot.lane.b32.xlu2 %v4237_v37, %s5162_s25 }
 0x383   : > { %v1394_v21 = vpop.xlane.xlu1 %1393 }
 0x384   : > { %v1395_v56 = vrot.slane %v1394_v21, 4 }
 0x385   : > { %v1408_v22 = vpop.xlane.xlu2 %1407 }
 0x386   : > { %v1396_v23 = vadd.f32 %v1395_v56, %v1394_v21  ;;  %v1409_v58 = vrot.slane %v1408_v22, 4 }
 0x388   : > { %v1397_v0 = vrot.slane %v1396_v23, 2  ;;  %v1410_v9 = vadd.f32 %v1409_v58, %v1408_v22  ;;  %v2217_v58 = vpop.permute.xlu0 %2216 }
 0x38a   : > { %v1411_v44 = vrot.slane %v1410_v9, 2  ;;  %v1398_v27 = vadd.f32 %v1397_v0, %v1396_v23 }
 0x38c   : > { %v1399_v16 = vrot.slane %v1398_v27, 1  ;;  %v1412_v18 = vadd.f32 %v1411_v44, %v1410_v9 }
 0x38e   : > { %v1400_v28 = vadd.f32 %v1399_v16, %v1398_v27  ;;  %v1413_v14 = vrot.slane %v1412_v18, 1 }
 0x390   : > { %2899 = vpush %v1400_v28  ;;  %v1414_v60 = vadd.f32 %v1413_v14, %v1412_v18  ;;  %v2223_v53 = vpop.permute.xlu0 %2222 }
 0x392   : > { %2901 = vpush %v1414_v60 }
 0x393   : > { %2903 = vpush %v1422_v55 }
 0x398   : > { %v2317_v27 = vpop.permute.xlu0 %2316 }
 0x39b   : > { %v1737_v49 = vpop.permute.xlu1 %1736 }
 0x3a3   : > { %v1743_v3 = vpop.permute.xlu1 %1742 }
 0x3ab   : > { %v1809_v5 = vpop.permute.xlu1 %1808 }
 0x3b3   : > { %v1951_v25 = vpop.permute.xlu1 %1950 }
 0x3bb   : > { %v2045_v56 = vpop.permute.xlu1 %2044 }
 0x3c1   : > { %s2900_s16 = spop %2899 }
 0x3c3   : > { %s2902_s19 = spop %2901  ;;  %v2051_v23 = vpop.permute.xlu1 %2050 }
 0x3c4   : > { %s2904_s27 = spop %2903 }
 0x3c5   : > { %s4201_s30 = smul.f32 %s2904_s27, %s2900_s16 }
 0x3c6   : > { %s1433_s29 = smul.f32 %s2904_s27, %s2902_s19 }
 0x3c7   : > { %s1434_s23 = smul.f32 %s4201_s30, %s4201_s30  ;;  %v1449_v35 = vstv %s4201_s30 }
 0x3c8   : > { %v1450_v46 = vsub.f32 %v4161_v39, %v1449_v35  ;;  %v1451_v57 = vsub.f32 %v4167_v19, %v1449_v35  ;;  %v1741_v39 = vpop.permute.xlu2 %1740 }
 0x3c9   : > { %s1435_s17 = ssub.f32 %s1433_s29, %s1434_s23 }
 0x3cb   : > { %s1436_s26 = sadd.f32 1e-05, %s1435_s17  ;;  %v2221_v9 = vpop.permute.xlu1 %2220 }
 0x3cd   : > { %v1437_v7 = vstv %s1436_s26 }
 0x3ce   : > { %3055 = vrsqrt.f32 %v1437_v7  ;;  %vm1444_vm2 = vweird.f32 %v1437_v7 }
 0x3d0   : > { %v1807_v19 = vpop.permute.xlu2 %1806 }
 0x3d3   : > { %v2315_v44 = vpop.permute.xlu1 %2314 }
 0x3d4   : > { %v3056_v40 = vpop.eup %3055 }
 0x3d5   : > { %v1439_v42 = vmul.f32 %v3056_v40, %v1437_v7  ;;  %vm1445_vm0 = vweird.f32 %v3056_v40 }
 0x3d6   : > { %vm1446_vm15 = vmor %vm1444_vm2, %vm1445_vm0 }
 0x3d7   : > { %v1440_v43 = vmul.f32 %v3056_v40, %v1439_v42 }
 0x3d8   : > { %v1949_v11 = vpop.permute.xlu2 %1948 }
 0x3d9   : > { %v1441_v48 = vmul.f32 0.5, %v1440_v43 }
 0x3db   : > { %v1442_v59 = vsub.f32 1.5, %v1441_v48 }
 0x3dd   : > { %v1443_v41 = vmul.f32 %v3056_v40, %v1442_v59 }
 0x3df   : > { %v1447_v62 = vsel %vm1446_vm15, %v3056_v40, %v1443_v41 }
 0x3e0   : > { %2905 = vpush %v1447_v62  ;;  %v1955_v31 = vpop.permute.xlu2 %1954 }
 0x3e1   : > { %2907 = vpush %v1625_v50 }
 0x3e2   : > { %2909 = vpush %v1626_v24 }
 0x3e3   : > { %2911 = vpush %v1627_v12 }
 0x3e4   : > { %2913 = vpush %v1628_v29 }
 0x3e5   : > { %2915 = vpush %v1737_v49 }
 0x3e6   : > { %2917 = vpush %v1739_v34 }
 0x3e7   : > { %2919 = vpush %v1741_v39 }
 0x3e8   : > { %2921 = vpush %v1743_v3  ;;  %v2049_v21 = vpop.permute.xlu2 %2048 }
 0x3e9   : > { %2923 = vpush %v1805_v45 }
 0x3ea   : > { %2925 = vpush %v1807_v19 }
 0x3eb   : > { %2927 = vpush %v1809_v5 }
 0x3ec   : > { %2929 = vpush %v1811_v36 }
 0x3ed   : > { %2931 = vpush %v4199_v6 }
 0x3ee   : > { %2933 = vpush %v4213_v15 }
 0x3ef   : > { %2935 = vpush %v4209_v51 }
 0x3f0   : > { %2937 = vpush %v4211_v32  ;;  %v2219_v22 = vpop.permute.xlu2 %2218 }
 0x3f1   : > { %2939 = vpush %v1949_v11 }
 0x3f2   : > { %2941 = vpush %v1951_v25 }
 0x3f3   : > { %2943 = vpush %v1953_v1 }
 0x3f4   : > { %2945 = vpush %v1955_v31 }
 0x3f5   : > { %2947 = vpush %v2045_v56 }
 0x3f6   : > { %2949 = vpush %v2047_v38 }
 0x3f7   : > { %2951 = vpush %v2049_v21 }
 0x3f8   : > { %2953 = vpush %v2051_v23  ;;  %v2313_v0 = vpop.permute.xlu2 %2312 }
 0x3f9   : > { %2955 = vpush %v4227_v17 }
 0x3fa   : > { %2957 = vpush %v4229_v20 }
 0x3fb   : > { %2959 = vpush %v4239_v54 }
 0x3fc   : > { %2961 = vpush %v4237_v37 }
 0x3fd   : > { %2963 = vpush %v2217_v58 }
 0x3fe   : > { %2965 = vpush %v2219_v22 }
 0x3ff   : > { %2967 = vpush %v2221_v9 }
 0x400   : > { %2969 = vpush %v2223_v53  ;;  %v2319_v16 = vpop.permute.xlu2 %2318 }
 0x401   : > { %2971 = vpush %v2313_v0 }
 0x402   : > { %2973 = vpush %v2315_v44 }
 0x403   : > { %2975 = vpush %v2317_v27 }
 0x404   : > { %2977 = vpush %v2319_v16 }
 0x411   : > { %s2906_s20 = spop %2905 }
 0x412   : > { %v1452_v47 = vstv %s2906_s20  ;;  %s4346_s10 = spop %2907 }
 0x413   : > { %v1453_v26 = vmul.f32 %v1452_v47, %v1450_v46  ;;  %v1454_v61 = vmul.f32 %v1452_v47, %v1451_v57  ;;  %s4348_s16 = spop %2909 }
 0x414   : > { %s4350_s19 = spop %2911 }
 0x415   : > { %v1460_v2 = vmul.f32 %v1458_v8, %v1453_v26  ;;  %v1461_v13 = vmul.f32 %v1458_v8, %v1454_v61  ;;  %s4352_s27 = spop %2913 }
 0x416   : > { %s4354_s30 = spop %2915 }
 0x417   : > { %v4256_v30 = vadd.f32 %v1465_v63, %v1460_v2  ;;  %v4264_v52 = vadd.f32 %v1465_v63, %v1461_v13  ;;  %s4356_s29 = spop %2917 }
 0x418   : > { %s4358_s23 = spop %2919 }
 0x419   : > { %1485 = vrot.lane.b32.xlu1 %v4256_v30, %s5107_s22  ;;  %1476 = vrot.lane.b32.xlu2 %v4256_v30, %s5099_s18  ;;  %s4360_s17 = spop %2921 }
 0x41a   : > { %1473 = vrot.lane.b32.xlu0 %v4256_v30, %s5105_s11  ;;  %s4362_s26 = spop %2923 }
 0x41b   : > { %s4364_s20 = spop %2925 }
 0x421   : > { %1488 = vrot.lane.b32.xlu1 %v4256_v30, %s5101_s24  ;;  %1479 = vrot.lane.b32.xlu2 %v4256_v30, %s5109_s12 }
 0x422   : > { %1495 = vrot.lane.b32.xlu0 %v4264_v52, %s5105_s11 }
 0x429   : > { %1510 = vrot.lane.b32.xlu1 %v4264_v52, %s5101_s24  ;;  %1501 = vrot.lane.b32.xlu2 %v4264_v52, %s5109_s12 }
 0x42a   : > { %1498 = vrot.lane.b32.xlu0 %v4264_v52, %s5099_s18 }
 0x431   : > { %1504 = vrot.lane.b32.xlu2 %v4264_v52, %s5103_s15 }
 0x432   : > { %1507 = vrot.lane.b32.xlu0 %v4264_v52, %s5107_s22 }
 0x43a   : > { %1470 = vrot.lane.b32.xlu0 %v4256_v30, %s5097_s0 }
 0x442   : > { %1492 = vrot.lane.b32.xlu0 %v4264_v52, %s5097_s0 }
 0x44a   : > { %1482 = vrot.lane.b32.xlu0 %v4256_v30, %s5103_s15 }
 0x473   : > { %v1477_v10 = vpop.permute.xlu2 %1476 }
 0x474   : > { %v1519_v40 = vrot.slane %v1477_v10, 4 }
 0x47b   : > { %v1480_v55 = vpop.permute.xlu2 %1479 }
 0x483   : > { %v1502_v50 = vpop.permute.xlu2 %1501 }
 0x48b   : > { %v1486_v14 = vpop.permute.xlu1 %1485  ;;  %v1505_v59 = vpop.permute.xlu2 %1504 }
 0x48c   : > { %v1474_v18 = vpop.permute.xlu0 %1473  ;;  %v1525_v62 = vrot.slane %v1486_v14, 4 }
 0x48d   : > { %v1513_v7 = vrot.slane %v1474_v18, 4 }
 0x48f   : > { %v1514_v17 = vsel %vm1150_vm5, %v1513_v7, %v4256_v30  ;;  %v1526_v30 = vsel %vm1150_vm5, %v1525_v62, %v1480_v55 }
 0x490   : > { %v1518_v8 = vperm.slane %v1514_v17, %v4084_v4  ;;  %v1530_v49 = vperm.slane %v1526_v30, %v4084_v4 }
 0x492   : > { %v1539_v61 = vrot.slane %v1518_v8, 4  ;;  %v1551_v56 = vrot.slane %v1530_v49, 4 }
 0x493   : > { %v1489_v24 = vpop.permute.xlu1 %1488 }
 0x494   : > { %v1496_v28 = vpop.permute.xlu0 %1495  ;;  %v1531_v3 = vrot.slane %v1489_v24, 4 }
 0x495   : > { %v1569_v6 = vrot.slane %v1496_v28, 4 }
 0x497   : > { %v1570_v42 = vsel %vm1150_vm5, %v1569_v6, %v4264_v52 }
 0x498   : > { %v1574_v41 = vperm.slane %v1570_v42, %v4084_v4 }
 0x49a   : > { %v1595_v2 = vrot.slane %v1574_v41, 4 }
 0x49b   : > { %v1511_v51 = vpop.permute.xlu1 %1510 }
 0x49c   : > { %v1499_v60 = vpop.permute.xlu0 %1498  ;;  %v1587_v43 = vrot.slane %v1511_v51, 4 }
 0x49d   : > { %v1575_v54 = vrot.slane %v1499_v60, 4 }
 0x49e   : > { %v1588_v37 = vsel %vm1150_vm5, %v1587_v43, %v1505_v59 }
 0x49f   : > { %v1592_v63 = vperm.slane %v1588_v37, %v4084_v4 }
 0x4a1   : > { %v1605_v0 = vrot.slane %v1592_v63, 4 }
 0x4a4   : > { %v1508_v12 = vpop.permute.xlu0 %1507 }
 0x4a5   : > { %v1581_v29 = vrot.slane %v1508_v12, 4 }
 0x4a7   : > { %v1582_v15 = vsel %vm1150_vm5, %v1581_v29, %v1502_v50 }
 0x4a8   : > { %v1586_v48 = vperm.slane %v1582_v15, %v4084_v4 }
 0x4aa   : > { %v1607_v35 = vrot.slane %v1586_v48, 4  ;;  %v1606_v10 = vsel %vm1150_vm5, %v1605_v0, %v1586_v48 }
 0x4ab   : > { %v1612_v29 = vperm.slane %v1606_v10, %v4097_v33 }
 0x4ac   : > { %v1471_v32 = vpop.permute.xlu0 %1470  ;;  %v1608_v13 = vsel %vm1150_vm5, %v1592_v63, %v1607_v35 }
 0x4ad   : > { %v1520_v20 = vsel %vm1150_vm5, %v1519_v40, %v1471_v32  ;;  %v1616_v5 = vperm.slane %v1608_v13, %v4097_v33  ;;  %v1617_v7 = vrot.slane %v1612_v29, 4  ;;  %v1754_v13 = vstv %s4360_s17 }
 0x4ae   : > { %v1524_v46 = vperm.slane %v1520_v20, %v4084_v4 }
 0x4af   : > { %v1621_v40 = vrot.slane %v1616_v5, 4 }
 0x4b0   : > { %v1537_v39 = vrot.slane %v1524_v46, 4  ;;  %v1540_v34 = vsel %vm1150_vm5, %v1524_v46, %v1539_v61 }
 0x4b1   : > { %v1548_v25 = vperm.slane %v1540_v34, %v4097_v33 }
 0x4b2   : > { %v1538_v36 = vsel %vm1150_vm5, %v1537_v39, %v1518_v8 }
 0x4b3   : > { %v1544_v58 = vperm.slane %v1538_v36, %v4097_v33  ;;  %v1567_v16 = vrot.slane %v1548_v25, 4 }
 0x4b4   : > { %v1493_v47 = vpop.permute.xlu0 %1492 }
 0x4b5   : > { %v1576_v26 = vsel %vm1150_vm5, %v1575_v54, %v1493_v47  ;;  %v1563_v55 = vrot.slane %v1544_v58, 4  ;;  %v1748_v54 = vstv %s4356_s29 }
 0x4b6   : > { %v1580_v57 = vperm.slane %v1576_v26, %v4084_v4 }
 0x4b8   : > { %v1596_v52 = vsel %vm1150_vm5, %v1580_v57, %v1595_v2  ;;  %v1593_v11 = vrot.slane %v1580_v57, 4 }
 0x4b9   : > { %v1604_v19 = vperm.slane %v1596_v52, %v4097_v33 }
 0x4ba   : > { %v1594_v38 = vsel %vm1150_vm5, %v1593_v11, %v1574_v41  ;;  %v1751_v11 = vstv %s4358_s23 }
 0x4bb   : > { %v1623_v45 = vrot.slane %v1604_v19, 4  ;;  %v1600_v44 = vperm.slane %v1594_v38, %v4097_v33  ;;  %v1622_v43 = vsel %vm1150_vm5, %v1621_v40, %v1604_v19 }
 0x4bc   : > { %v1483_v31 = vpop.permute.xlu0 %1482  ;;  %v1649_v59 = vmax.f32 %v1622_v43, 0.0 }
 0x4bd   : > { %v1532_v1 = vsel %vm1150_vm5, %v1531_v3, %v1483_v31  ;;  %v1624_v21 = vsel %vm1150_vm5, %v1616_v5, %v1623_v45  ;;  %v1619_v6 = vrot.slane %v1600_v44, 4  ;;  %v1618_v42 = vsel %vm1150_vm5, %v1617_v7, %v1600_v44 }
 0x4be   : > { %v1536_v22 = vperm.slane %v1532_v1, %v4084_v4  ;;  %v1651_v23 = vmax.f32 %v1624_v21, 0.0  ;;  %v1645_v20 = vmax.f32 %v1618_v42, 0.0 }
 0x4bf   : > { %v1620_v15 = vsel %vm1150_vm5, %v1612_v29, %v1619_v6 }
 0x4c0   : > { %v1549_v9 = vrot.slane %v1536_v22, 4  ;;  %v1552_v53 = vsel %vm1150_vm5, %v1536_v22, %v1551_v56  ;;  %1674 = vrot.lane.b32.xlu0 %v1651_v23, %s5230_s28  ;;  %v1647_v48 = vmax.f32 %v1620_v15, 0.0 }
 0x4c1   : > { %v1560_v27 = vperm.slane %v1552_v53, %v4097_v33 }
 0x4c2   : > { %v1550_v18 = vsel %vm1150_vm5, %v1549_v9, %v1530_v49 }
 0x4c3   : > { %v1565_v28 = vrot.slane %v1560_v27, 4  ;;  %v1568_v14 = vsel %vm1150_vm5, %v1560_v27, %v1567_v16  ;;  %v1556_v60 = vperm.slane %v1550_v18, %v4097_v33  ;;  %v5118_v16 = vstv %s4352_s27 }
 0x4c4   : > { %v1650_v24 = vmax.f32 %v1568_v14, 0.0  ;;  %v1745_v18 = vstv %s4354_s30 }
 0x4c5   : > { %v1566_v12 = vsel %vm1150_vm5, %v1565_v28, %v1548_v25  ;;  %v1564_v50 = vsel %vm1150_vm5, %v1556_v60, %v1563_v55  ;;  %v1561_v17 = vrot.slane %v1556_v60, 4  ;;  %v1816_v28 = vstv %s4364_s20 }
 0x4c6   : > { %1672 = vrot.lane.b32.xlu1 %v1650_v24, %s5230_s28  ;;  %v1648_v51 = vmax.f32 %v1566_v12, 0.0  ;;  %v1646_v32 = vmax.f32 %v1564_v50, 0.0 }
 0x4c7   : > { %v1562_v41 = vsel %vm1150_vm5, %v1561_v17, %v1544_v58 }
 0x4c8   : > { %1668 = vrot.lane.b32.xlu0 %v1648_v51, %s5230_s28  ;;  %1664 = vrot.lane.b32.xlu2 %v1646_v32, %s5230_s28  ;;  %v1644_v62 = vmax.f32 %v1562_v41, 0.0 }
 0x4ce   : > { %1666 = vrot.lane.b32.xlu1 %v1647_v48, %s5230_s28 }
 0x4d0   : > { %1662 = vrot.lane.b32.xlu0 %v1645_v20, %s5230_s28  ;;  %1670 = vrot.lane.b32.xlu2 %v1649_v59, %s5230_s28 }
 0x4d6   : > { %1660 = vrot.lane.b32.xlu1 %v1644_v62, %s5230_s28  ;;  %s4366_s28 = spop %2927 }
 0x4d7   : > { %s4368_s0 = spop %2929  ;;  %v1819_v14 = vstv %s4366_s28 }
 0x4d8   : > { %s4370_s18 = spop %2931  ;;  %v1822_v60 = vstv %s4368_s0 }
 0x4d9   : > { %s2934_s24 = spop %2933  ;;  %v4486_v55 = vstv %s4370_s18 }
 0x4da   : > { %s4372_s15 = spop %2935  ;;  %v4402_v26 = vstv %s2934_s24 }
 0x4db   : > { %s4375_s11 = spop %2937  ;;  %v4426_v3 = vstv %s4372_s15 }
 0x4dc   : > { %s4377_s22 = spop %2939  ;;  %v4452_v38 = vstv %s4375_s11 }
 0x4dd   : > { %s4379_s12 = spop %2941 }
 0x4de   : > { %s4384_s2 = spop %2943  ;;  %v4489_v24 = vstv %s4379_s12 }
 0x4df   : > { %s4388_s3 = spop %2945  ;;  %v4494_v50 = vstv %s4384_s2  ;;  %s5271_s2 = smov 32  }
 0x4e0   : > { %s4391_s4 = spop %2947  ;;  %v1966_v29 = vstv %s4388_s3  ;;  %s5272_s3 = smov 96  }
 0x4e1   : > { %s4393_s5 = spop %2949 }
 0x4e2   : > { %s4395_s21 = spop %2951 }
 0x4e3   : > { %s4397_s29 = spop %2953 }
 0x4e4   : > { %s4400_s9 = spop %2955  ;;  %v4498_v6 = vstv %s4397_s29 }
 0x4e5   : > { %s2958_s13 = spop %2957  ;;  %v4505_v7 = vstv %s4400_s9  ;;  %s5275_s9 = smov 80  }
 0x4e6   : > { %v4404_v2 = vstv %s2958_s13  ;;  %s2960_s13 = spop %2959 }
 0x4e7   : > { %v4432_v31 = vstv %s2960_s13  ;;  %s2962_s24 = spop %2961 }
 0x4e8   : > { %s4443_s15 = spop %2963  ;;  %v4458_v23 = vstv %s2962_s24 }
 0x4e9   : > { %s4454_s23 = spop %2965 }
 0x4ea   : > { %s4462_s17 = spop %2967  ;;  %v4508_v15 = vstv %s4454_s23  ;;  %s5278_s23 = sld [smem:[#allocation14_spill]] }
 0x4eb   : > { %s2970_s11 = spop %2969 }
 0x4ec   : > { %s4477_s13 = spop %2971  ;;  %v4491_v12 = vstv %s2970_s11 }
 0x4ed   : > { %s2974_s24 = spop %2973 }
 0x4ee   : > { %s2976_s14 = spop %2975  ;;  %v4512_v43 = vstv %s2974_s24 }
 0x4ef   : > { %s2978_s12 = spop %2977 }
 0x4f0   : > { %s2826_s11 = sshll.u32 %s5278_s23, 4 }
 0x522   : > { %v1665_v37 = vpop.permute.xlu2 %1664 }
 0x523   : > { %1686 = vst.msk [vmem:[#allocation3 + $0x19] sm:$0xff] %vm422_vm1, %v1665_v37 }
 0x52a   : > { %v1671_v8 = vpop.permute.xlu2 %1670  ;;  %v4382_v35 = vld [vmem:[#allocation3 + $0x18] sm:$0xff] }
 0x52b   : > { %1689 = vst.msk [vmem:[#allocation3 + $0x39] sm:$0xff] %vm422_vm1, %v1671_v8  ;;  %v1758_v46 = vmul.f32 %v1748_v54, %v4382_v35  ;;  %v4410_v30 = vmul.f32 %v4402_v26, %v4382_v35  ;;  %v4414_v61 = vmul.f32 %v4404_v2, %v4382_v35  ;;  %v4517_v17 = vmul.f32 %v4489_v24, %v4382_v35 }
 0x52c   : > { %v2239_v20 = vmul.f32 %v4508_v15, %v4382_v35  ;;  %v4534_v37 = vmul.f32 %v4512_v43, %v4382_v35  ;;  %v4540_v8 = vstv %s4462_s17 }
 0x52d   : > { %1776 = vrot.lane.b32.xlu0 %v1758_v46, %s5155_s1  ;;  %v2330_v46 = vstv %s2978_s12 }
 0x532   : > { %v1675_v47 = vpop.permute.xlu0 %1674  ;;  %v4430_v36 = vld [vmem:[#allocation3 + $0x40] sm:$0x3] }
 0x533   : > { %1691 = vst.msk [vmem:[#allocation3 + $0x51] sm:$0xff] %vm422_vm1, %v1675_v47  ;;  %v4441_v1 = vmul.f32 %v4426_v3, %v4430_v36  ;;  %v4449_v56 = vmul.f32 %v4432_v31, %v4430_v36  ;;  %v4544_v47 = vstv %s4477_s13 }
 0x534   : > { %5232 = vst [vmem:[#allocation25_spill] sm:$0xff] %v4544_v47 }
 0x538   : > { %v1673_v63 = vpop.permute.xlu1 %1672 }
 0x539   : > { %1690 = vst.msk [vmem:[#allocation3 + $0x49] sm:$0xff] %vm422_vm1, %v1673_v63  ;;  %v2327_v63 = vstv %s2976_s14 }
 0x53a   : > { %v1669_v57 = vpop.permute.xlu0 %1668  ;;  %v4456_v22 = vld [vmem:[#allocation3 + $0x58] sm:$0x3] }
 0x53b   : > { %1688 = vst.msk [vmem:[#allocation3 + $0x31] sm:$0xff] %vm422_vm1, %v1669_v57  ;;  %v4469_v44 = vmul.f32 %v4452_v38, %v4456_v22  ;;  %v4475_v27 = vmul.f32 %v4458_v23, %v4456_v22 }
 0x540   : > { %v1667_v39 = vpop.permute.xlu1 %1666  ;;  %v4417_v52 = vld [vmem:[#allocation3 + $0x48] sm:$0xff]  ;;  %v4419_v19 = vld [vmem:[#allocation3 + $0x50] sm:$0xff] }
 0x541   : > { %1687 = vst.msk [vmem:[#allocation3 + $0x21] sm:$0xff] %vm422_vm1, %v1667_v39  ;;  %v1762_v49 = vmul.f32 %v1754_v13, %v4417_v52  ;;  %v1763_v34 = vmul.f32 %v1754_v13, %v4419_v19  ;;  %v2245_v32 = vmul.f32 %v4491_v12, %v4417_v52  ;;  %v1830_v40 = vmul.f32 %v1822_v60, %v4417_v52 }
 0x542   : > { %v1663_v45 = vpop.permute.xlu0 %1662  ;;  %v4428_v5 = vld [vmem:[#allocation3 + $0x38] sm:$0xff]  ;;  %v4445_v21 = vld [vmem:[#allocation3 + $0x30] sm:$0xff]  ;;  %v1831_v48 = vmul.f32 %v1822_v60, %v4419_v19  ;;  %v4525_v59 = vmul.f32 %v4491_v12, %v4419_v19  ;;  %v4530_v62 = vmul.f32 %v5118_v16, %v4417_v52  ;;  %v2341_v13 = vmul.f32 %v2330_v46, %v4417_v52 }
 0x543   : > { %1685 = vst.msk [vmem:[#allocation3 + $0x9] sm:$0xff] %vm422_vm1, %v1663_v45  ;;  %1784 = vrot.lane.b32.xlu2 %v1762_v49, %s5155_s1  ;;  %1786 = vrot.lane.b32.xlu1 %v1763_v34, %s5155_s1  ;;  %v1761_v25 = vmul.f32 %v1751_v11, %v4428_v5  ;;  %v1760_v53 = vmul.f32 %v1751_v11, %v4445_v21  ;;  %v2275_v41 = vrot.slane %v2245_v32, 2  ;;  %v2265_v11 = vrot.slane %v2239_v20, 2 }
 0x544   : > { %v5117_v57 = vrot.slane %v4525_v59, 2  ;;  %v1826_v39 = vmul.f32 %v1816_v28, %v4382_v35  ;;  %v2342_v45 = vmul.f32 %v2330_v46, %v4419_v19  ;;  %v1979_v32 = vmul.f32 %v1966_v29, %v4456_v22 }
 0x545   : > { %1782 = vrot.lane.b32.xlu0 %v1761_v25, %s5155_s1  ;;  %v1978_v25 = vmul.f32 %v1966_v29, %v4419_v19  ;;  %v2371_v20 = vrot.slane %v2341_v13, 2  ;;  %v1829_v34 = vmul.f32 %v1819_v14, %v4428_v5  ;;  %v1977_v33 = vmul.f32 %v1966_v29, %v4417_v52 }
 0x546   : > { %v2010_v10 = vrot.slane %v1979_v32, 1  ;;  %v4605_v29 = vmul.f32 %v4494_v50, %v4428_v5 }
 0x548   : > { %v1661_v58 = vpop.permute.xlu1 %1660  ;;  %v4460_v0 = vld [vmem:[#allocation3 + $0x20] sm:$0xff] }
 0x549   : > { %1684 = vst.msk [vmem:[#allocation3 + $0x1] sm:$0xff] %vm422_vm1, %v1661_v58  ;;  %v1759_v9 = vmul.f32 %v1748_v54, %v4460_v0  ;;  %v4537_v54 = vstv %s4443_s15  ;;  %v4557_v58 = vsel %vm920_vm4, %v2275_v41, %v5117_v57  ;;  %v1827_v60 = vmul.f32 %v1816_v28, %v4460_v0  ;;  %s5277_s15 = sld [smem:[#allocation19_spill]] }
 0x54a   : > { %5231 = vst [vmem:[#allocation23_spill] sm:$0xff] %v4537_v54  ;;  %v2372_v41 = vrot.slane %v2342_v45, 2  ;;  %v4573_v57 = vmul.f32 %v4540_v8, %v4428_v5  ;;  %v4578_v28 = vmul.f32 %v4494_v50, %v4430_v36 }
 0x54b   : > { %1778 = vrot.lane.b32.xlu2 %v1759_v9, %s5155_s1  ;;  %1780 = vrot.lane.b32.xlu1 %v1760_v53, %s5155_s1  ;;  %v4561_v53 = vmul.f32 %v2327_v63, %v4430_v36 }
 0x54c   : > { %5233 = vst [vmem:[#allocation28_spill] sm:$0xff] %v4573_v57  ;;  %v4587_v45 = vsel %vm920_vm4, %v2371_v20, %v2372_v41 }
 0x54d   : > { %5234 = vst [vmem:[#allocation29_spill] sm:$0xff] %v4587_v45  ;;  %v2369_v16 = vrot.slane %v4561_v53, 2  ;;  %v2007_v45 = vrot.slane %v1977_v33, 1  ;;  %v2336_v33 = vmul.f32 %v4512_v43, %v4460_v0 }
 0x54f   : > { %s2811_s17 = sshll.u32 %s5277_s15, 4 }
 0x550   : > { %v4500_v51 = vld [vmem:[#allocation3] sm:$0xff]  ;;  %v4549_v49 = vld [vmem:[#allocation3 + $0x8] sm:$0xff] }
 0x551   : > { %v1756_v42 = vmul.f32 %v1745_v18, %v4500_v51 }
 0x553   : > { %1852 = vrot.lane.b32.xlu2 %v1830_v40, %s5162_s25  ;;  %1772 = vrot.lane.b32.xlu0 %v1756_v42, %s5155_s1  ;;  %v4567_v40 = vmul.f32 %v4508_v15, %v4460_v0  ;;  %v2343_v42 = vmul.f32 %v2330_v46, %v4456_v22  ;;  %v2008_v46 = vrot.slane %v1978_v25, 1  ;;  %v2242_v25 = vmul.f32 %v4540_v8, %v4445_v21 }
 0x554   : > { %1854 = vrot.lane.b32.xlu1 %v1831_v48, %s5162_s25  ;;  %v1757_v48 = vmul.f32 %v1745_v18, %v4549_v49  ;;  %v1828_v18 = vmul.f32 %v1819_v14, %v4445_v21  ;;  %v5236_v14 = vstv %s4362_s26 }
 0x555   : > { %v5121_v13 = vrot.slane %v4567_v40, 2  ;;  %v2374_v9 = vrot.slane %v2343_v42, 2  ;;  %v2011_v32 = vsel %vm651_vm3, %v2008_v46, %v2010_v10  ;;  %v4612_v42 = vld [vmem:[#allocation3 + $0x28] sm:$0x3]  ;;  %v2270_v20 = vrot.slane %v2242_v25, 2 }
 0x556   : > { %v1824_v4 = vmul.f32 %v5236_v14, %v4500_v51  ;;  %v5237_v10 = vrot.slane %v4573_v57, 2  ;;  %v4632_v25 = vmul.f32 %v4537_v54, %v4549_v49 }
 0x557   : > { %v4608_v53 = vsel %vm920_vm4, %v2372_v41, %v2374_v9  ;;  %v4623_v9 = vmul.f32 %v4498_v6, %v4456_v22 }
 0x558   : > { %5235 = vst [vmem:[#allocation27_spill] sm:$0xff] %v4608_v53  ;;  %v4628_v41 = vsel %vm920_vm4, %v2270_v20, %v5237_v10  ;;  %v1973_v53 = vmul.f32 %v4489_v24, %v4612_v42  ;;  %v2337_v20 = vmul.f32 %v4512_v43, %v4612_v42  ;;  %v5126_v10 = vrot.slane %v4632_v25, 2 }
 0x559   : > { %5238 = vst [vmem:[#allocation31_spill] sm:$0xff] %v4628_v41  ;;  %v1930_v43 = vrot.slane %v4469_v44, 1 }
 0x55a   : > { %v2364_v44 = vrot.slane %v2337_v20, 2 }
 0x55b   : > { %1846 = vrot.lane.b32.xlu0 %v1827_v60, %s5162_s25  ;;  %1774 = vrot.lane.b32.xlu2 %v1757_v48, %s5155_s1  ;;  %v4595_v60 = vsel %vm920_vm4, %v2265_v11, %v5121_v13  ;;  %v2338_v13 = vmul.f32 %v2327_v63, %v4445_v21  ;;  %v2339_v48 = vmul.f32 %v2327_v63, %v4428_v5  ;;  %v5127_v11 = vrot.slane %v4605_v29, 1 }
 0x55c   : > { %1844 = vrot.lane.b32.xlu1 %v1826_v39, %s5162_s25  ;;  %v1974_v39 = vmul.f32 %v4494_v50, %v4445_v21  ;;  %v1972_v50 = vmul.f32 %v4489_v24, %v4460_v0  ;;  %v2236_v63 = vmul.f32 %v4537_v54, %v4500_v51  ;;  %v4650_v24 = vmul.f32 %v4498_v6, %v4419_v19 }
 0x55d   : > { %v2366_v41 = vrot.slane %v2338_v13, 2  ;;  %v2367_v57 = vrot.slane %v2339_v48, 2  ;;  %v5239_v48 = vstv %s4352_s27 }
 0x55e   : > { %v2002_v14 = vrot.slane %v1974_v39, 1  ;;  %v2260_v54 = vrot.slane %v2236_v63, 2  ;;  %v2009_v39 = vsel %vm651_vm3, %v2007_v45, %v2008_v46  ;;  %v4667_v45 = vmul.f32 %v4498_v6, %v4417_v52 }
 0x55f   : > { %v4660_v13 = vsel %vm920_vm4, %v2366_v41, %v2367_v57  ;;  %v5242_v6 = vstv %s4362_s26 }
 0x560   : > { %v4657_v63 = vsel %vm920_vm4, %v2260_v54, %v5126_v10  ;;  %v2004_v46 = vsel %vm651_vm3, %v2002_v14, %v5127_v11  ;;  %v5241_v54 = vrot.slane %v4534_v37, 2  ;;  %v2332_v14 = vmul.f32 %v4544_v47, %v4500_v51 }
 0x561   : > { %v1825_v20 = vmul.f32 %v5242_v6, %v4549_v49  ;;  %v4693_v37 = vsel %vm920_vm4, %v2367_v57, %v2369_v16  ;;  %v1895_v6 = vmul.f32 %v4426_v3, %v4428_v5  ;;  %v1898_v16 = vmul.f32 %v4452_v38, %v4419_v19 }
 0x562   : > { %5244 = vst [vmem:[#allocation30_spill] sm:$0xff] %v4693_v37 }
 0x563   : > { %1840 = vrot.lane.b32.xlu0 %v1824_v4, %s5162_s25  ;;  %1848 = vrot.lane.b32.xlu2 %v1828_v18, %s5162_s25  ;;  %v1998_v18 = vrot.slane %v1972_v50, 1  ;;  %v4672_v50 = vmul.f32 %v5239_v48, %v4419_v19  ;;  %v2000_v4 = vrot.slane %v1973_v53, 1  ;;  %v5245_v53 = vrot.slane %v4517_v17, 1 }
 0x564   : > { %1850 = vrot.lane.b32.xlu1 %v1829_v34, %s5162_s25  ;;  %v2362_v34 = vrot.slane %v2336_v33, 2  ;;  %v4681_v33 = vmul.f32 %v4544_v47, %v4549_v49  ;;  %v1892_v47 = vmul.f32 %v4402_v26, %v4460_v0  ;;  %v1888_v17 = vmul.f32 %v4486_v55, %v4500_v51 }
 0x565   : > { %5240 = vst [vmem:[#allocation33_spill] sm:$0xff] %v4672_v50  ;;  %v2356_v50 = vrot.slane %v2332_v14, 2  ;;  %v2001_v57 = vsel %vm651_vm3, %v1998_v18, %v2000_v4  ;;  %v1923_v10 = vrot.slane %v1895_v6, 1 }
 0x566   : > { %v4677_v41 = vsel %vm920_vm4, %v5241_v54, %v2362_v34  ;;  %v4690_v48 = vsel %vm920_vm4, %v2362_v34, %v2364_v44  ;;  %v1999_v54 = vsel %vm651_vm3, %v5245_v53, %v1998_v18  ;;  %v5129_v11 = vrot.slane %v4681_v33, 2  ;;  %v4712_v44 = vld [vmem:[#allocation3 + $0x10] sm:$0x3] }
 0x567   : > { %5243 = vst [vmem:[#allocation32_spill] sm:$0xff] %v4690_v48  ;;  %v1897_v34 = vmul.f32 %v4452_v38, %v4417_v52  ;;  %v1918_v53 = vrot.slane %v1892_v47, 1  ;;  %v1889_v38 = vmul.f32 %v4486_v55, %v4549_v49  ;;  %v1912_v48 = vrot.slane %v1888_v17, 1 }
 0x568   : > { %v4717_v14 = vsel %vm920_vm4, %v2356_v50, %v5129_v11  ;;  %v1893_v50 = vmul.f32 %v4402_v26, %v4612_v42  ;;  %v1894_v47 = vmul.f32 %v4426_v3, %v4445_v21  ;;  %v5247_v11 = vrot.slane %v4441_v1, 1 }
 0x569   : > { %v1927_v37 = vrot.slane %v1897_v34, 1  ;;  %v1913_v18 = vrot.slane %v1889_v38, 1  ;;  %v1890_v34 = vmul.f32 %v4486_v55, %v4712_v44  ;;  %v2166_v3 = vmul.f32 %v4458_v23, %v4419_v19 }
 0x56a   : > { %v1920_v26 = vrot.slane %v1893_v50, 1  ;;  %v1922_v17 = vrot.slane %v1894_v47, 1  ;;  %v2160_v19 = vmul.f32 %v4404_v2, %v4460_v0 }
 0x56b   : > { %2026 = vrot.lane.b32.xlu0 %v2011_v32, %s5155_s1  ;;  %1842 = vrot.lane.b32.xlu2 %v1825_v20, %s5162_s25  ;;  %v1928_v32 = vrot.slane %v1898_v16, 1  ;;  %v5246_v20 = vrot.slane %v4410_v30, 1  ;;  %v4745_v16 = vsel %vm651_vm3, %v1912_v48, %v1913_v18  ;;  %v1915_v1 = vrot.slane %v1890_v34, 1 }
 0x56c   : > { %2024 = vrot.lane.b32.xlu1 %v2009_v39, %s5155_s1  ;;  %v4734_v39 = vsel %vm651_vm3, %v1923_v10, %v5247_v11  ;;  %v2162_v11 = vmul.f32 %v4432_v31, %v4445_v21  ;;  %v4756_v55 = vsel %vm651_vm3, %v1918_v53, %v1920_v26  ;;  %v4759_v48 = vsel %vm651_vm3, %v1922_v17, %v1923_v10 }
 0x56d   : > { %v4725_v4 = vsel %vm651_vm3, %v5246_v20, %v1918_v53  ;;  %v4737_v6 = vsel %vm651_vm3, %v1927_v37, %v1928_v32  ;;  %v4740_v30 = vsel %vm651_vm3, %v1928_v32, %v1930_v43  ;;  %v2163_v37 = vmul.f32 %v4432_v31, %v4428_v5 }
 0x56e   : > { %v2165_v43 = vmul.f32 %v4458_v23, %v4417_v52  ;;  %v2196_v38 = vrot.slane %v2166_v3, 2  ;;  %v4764_v32 = vsel %vm651_vm3, %v1913_v18, %v1915_v1  ;;  %v2190_v20 = vrot.slane %v2162_v11, 2 }
 0x56f   : > { %v2191_v50 = vrot.slane %v2163_v37, 2  ;;  %v5248_v52 = vrot.slane %v4475_v27, 2  ;;  %v2186_v23 = vrot.slane %v2160_v19, 2  ;;  %v2161_v10 = vmul.f32 %v4404_v2, %v4612_v42 }
 0x570   : > { %v2195_v47 = vrot.slane %v2165_v43, 2  ;;  %v2156_v53 = vmul.f32 %v4505_v7, %v4500_v51  ;;  %v5249_v27 = vrot.slane %v4449_v56, 2  ;;  %v2157_v2 = vmul.f32 %v4505_v7, %v4549_v49 }
 0x571   : > { %v4771_v31 = vsel %vm920_vm4, %v2196_v38, %v5248_v52  ;;  %v4779_v18 = vsel %vm920_vm4, %v2190_v20, %v2191_v50  ;;  %v5250_v34 = vrot.slane %v4414_v61, 2  ;;  %v2188_v26 = vrot.slane %v2161_v10, 2 }
 0x572   : > { %v2180_v17 = vrot.slane %v2156_v53, 2  ;;  %v2158_v3 = vmul.f32 %v4505_v7, %v4712_v44  ;;  %v2181_v1 = vrot.slane %v2157_v2, 2  ;;  %v2106_v11 = vrot.slane %v4623_v9, 1 }
 0x573   : > { %2020 = vrot.lane.b32.xlu0 %v2004_v46, %s5155_s1  ;;  %2016 = vrot.lane.b32.xlu2 %v1999_v54, %s5155_s1  ;;  %v4782_v46 = vsel %vm920_vm4, %v2195_v47, %v2196_v38  ;;  %v4787_v54 = vsel %vm920_vm4, %v2191_v50, %v5249_v27  ;;  %v2103_v56 = vrot.slane %v4667_v45, 1  ;;  %v4801_v37 = vsel %vm920_vm4, %v2186_v23, %v2188_v26 }
 0x574   : > { %2018 = vrot.lane.b32.xlu1 %v2001_v57, %s5155_s1  ;;  %v4794_v57 = vsel %vm920_vm4, %v5250_v34, %v2186_v23  ;;  %v2183_v43 = vrot.slane %v2158_v3, 2  ;;  %v2005_v38 = vrot.slane %v4578_v28, 1  ;;  %v4805_v61 = vsel %vm920_vm4, %v2180_v17, %v2181_v1 }
 0x575   : > { %v1957_v19 = vstv %s4377_s22  ;;  %v2056_v20 = vstv %s4393_s5  ;;  %v5251_v50 = vrot.slane %v4650_v24, 1  ;;  %v5252_v45 = vrot.slane %v4605_v29, 1  ;;  %s5274_s5 = smov 16  }
 0x576   : > { %v4813_v9 = vsel %vm920_vm4, %v2181_v1, %v2183_v43  ;;  %v2068_v52 = vmul.f32 %v2056_v20, %v4460_v0  ;;  %v1969_v28 = vmul.f32 %v1957_v19, %v4549_v49  ;;  %v1968_v23 = vmul.f32 %v1957_v19, %v4500_v51 }
 0x577   : > { %v2107_v7 = vsel %vm651_vm3, %v5251_v50, %v2106_v11  ;;  %v2006_v47 = vsel %vm651_vm3, %v5252_v45, %v2005_v38  ;;  %v5253_v10 = vmov %v5251_v50  ;;  %v2067_v29 = vmul.f32 %v2056_v20, %v4382_v35 }
 0x578   : > { %v2105_v53 = vsel %vm651_vm3, %v2103_v56, %v5253_v10  ;;  %v1970_v27 = vmul.f32 %v1957_v19, %v4712_v44  ;;  %v2094_v2 = vrot.slane %v2068_v52, 1  ;;  %v1993_v34 = vrot.slane %v1969_v28, 1 }
 0x579   : > { %v1992_v26 = vrot.slane %v1968_v23, 1  ;;  %v2093_v17 = vrot.slane %v2067_v29, 1  ;;  %v2059_v3 = vstv %s4395_s21  ;;  %v2069_v43 = vmul.f32 %v2056_v20, %v4612_v42  ;;  %s5276_s21 = smov 112  }
 0x57a   : > { %v1995_v1 = vrot.slane %v1970_v27, 1  ;;  %v2071_v56 = vmul.f32 %v2059_v3, %v4428_v5  ;;  %v2070_v19 = vmul.f32 %v2059_v3, %v4445_v21  ;;  %v2072_v50 = vmul.f32 %v2059_v3, %v4430_v36 }
 0x57b   : > { %2122 = vrot.lane.b32.xlu0 %v2107_v7, %s5162_s25  ;;  %2022 = vrot.lane.b32.xlu2 %v2006_v47, %s5155_s1  ;;  %v2095_v11 = vsel %vm651_vm3, %v2093_v17, %v2094_v2  ;;  %v1994_v24 = vsel %vm651_vm3, %v1992_v26, %v1993_v34  ;;  %v2096_v45 = vrot.slane %v2069_v43, 1  ;;  %v2053_v28 = vstv %s4391_s4  ;;  %s5273_s4 = smov 48  }
 0x57c   : > { %2120 = vrot.lane.b32.xlu1 %v2105_v53, %s5162_s25  ;;  %v1996_v38 = vsel %vm651_vm3, %v1993_v34, %v1995_v1  ;;  %v2099_v7 = vrot.slane %v2071_v56, 1  ;;  %v2098_v47 = vrot.slane %v2070_v19, 1  ;;  %v2101_v52 = vrot.slane %v2072_v50, 1 }
 0x57d   : > { %v2097_v20 = vsel %vm651_vm3, %v2094_v2, %v2096_v45  ;;  %v2065_v10 = vmul.f32 %v2053_v28, %v4549_v49  ;;  %v2064_v53 = vmul.f32 %v2053_v28, %v4500_v51  ;;  %v2066_v27 = vmul.f32 %v2053_v28, %v4712_v44  ;;  %v5256_v45 = vld [vmem:[#allocation29_spill] sm:$0xff] }
 0x57e   : > { %v2102_v23 = vsel %vm651_vm3, %v2099_v7, %v2101_v52  ;;  %v2100_v29 = vsel %vm651_vm3, %v2098_v47, %v2099_v7  ;;  %v2241_v3 = vmul.f32 %v4508_v15, %v4612_v42  ;;  %v5254_v43 = vrot.slane %v4567_v40, 2  ;;  %v5257_v47 = vld [vmem:[#allocation28_spill] sm:$0xff] }
 0x57f   : > { %v2089_v34 = vrot.slane %v2065_v10, 1  ;;  %v2088_v26 = vrot.slane %v2064_v53, 1  ;;  %v2091_v17 = vrot.slane %v2066_v27, 1  ;;  %v5255_v15 = vrot.slane %v4525_v59, 2 }
 0x580   : > { %v5258_v52 = vrot.slane %v5257_v47, 2  ;;  %v5261_v10 = vrot.slane %v4632_v25, 2  ;;  %v5263_v25 = vld [vmem:[#allocation32_spill] sm:$0xff] }
 0x581   : > { %v2090_v2 = vsel %vm651_vm3, %v2088_v26, %v2089_v34  ;;  %v2092_v1 = vsel %vm651_vm3, %v2089_v34, %v2091_v17  ;;  %v1706_v34 = vstv %s4346_s10  ;;  %v5264_v17 = vld [vmem:[#allocation25_spill] sm:$0xff] }
 0x582   : > { %v1721_v26 = vmul.f32 %v1706_v34, %v4549_v49  ;;  %v5267_v49 = vld [vmem:[#allocation30_spill] sm:$0xff] }
 0x583   : > { %2112 = vrot.lane.b32.xlu0 %v2095_v11, %s5162_s25  ;;  %2012 = vrot.lane.b32.xlu2 %v1994_v24, %s5155_s1  ;;  %v2247_v11 = vmul.f32 %v4491_v12, %v4456_v22  ;;  %v2268_v24 = vrot.slane %v2241_v3, 2  ;;  %v2244_v22 = vmul.f32 %v4540_v8, %v4430_v36  ;;  %v1714_v3 = vstv %s4350_s19 }
 0x584   : > { %2014 = vrot.lane.b32.xlu1 %v1996_v38, %s5155_s1 }
 0x585   : > { %v2278_v56 = vrot.slane %v2247_v11, 2  ;;  %v2269_v38 = vsel %vm920_vm4, %v5254_v43, %v2268_v24  ;;  %v2273_v7 = vrot.slane %v2244_v22, 2  ;;  %v5265_v11 = vld [vmem:[#allocation33_spill] sm:$0xff]  ;;  %v1725_v43 = vmul.f32 %v1714_v3, %v4428_v5 }
 0x587   : > { %v2279_v42 = vsel %vm920_vm4, %v5255_v15, %v2278_v56  ;;  %v2274_v28 = vsel %vm920_vm4, %v5258_v52, %v2273_v7 }
 0x58b   : > { %2118 = vrot.lane.b32.xlu0 %v2102_v23, %s5162_s25  ;;  %2114 = vrot.lane.b32.xlu2 %v2097_v20, %s5162_s25 }
 0x58c   : > { %2116 = vrot.lane.b32.xlu1 %v2100_v29, %s5162_s25  ;;  %v5262_v29 = vld [vmem:[#allocation27_spill] sm:$0xff] }
 0x593   : > { %2292 = vrot.lane.b32.xlu0 %v4557_v58, %s5155_s1  ;;  %2108 = vrot.lane.b32.xlu2 %v2090_v2, %s5162_s25  ;;  %v1710_v58 = vstv %s4348_s16  ;;  %v2334_v2 = vmul.f32 %v5264_v17, %v4712_v44 }
 0x594   : > { %2110 = vrot.lane.b32.xlu1 %v2092_v1, %s5162_s25  ;;  %v1722_v40 = vmul.f32 %v1710_v58, %v4382_v35  ;;  %v1723_v36 = vmul.f32 %v1710_v58, %v4460_v0  ;;  %v5260_v35 = vld [vmem:[#allocation23_spill] sm:$0xff]  ;;  %v1724_v58 = vmul.f32 %v1714_v3, %v4445_v21 }
 0x595   : > { %v2359_v15 = vrot.slane %v2334_v2, 2 }
 0x59b   : > { %2286 = vrot.lane.b32.xlu0 %v2269_v38, %s5155_s1  ;;  %2294 = vrot.lane.b32.xlu2 %v2279_v42, %s5155_s1 }
 0x59c   : > { %2284 = vrot.lane.b32.xlu1 %v4595_v60, %s5155_s1  ;;  %v5259_v60 = vld [vmem:[#allocation31_spill] sm:$0xff] }
 0x59d   : > { %v1785_v19 = vpop.permute.xlu2 %1784 }
 0x59e   : > { %v1802_v12 = vadd.f32 %v1785_v19, %v4530_v62  ;;  %v2238_v62 = vmul.f32 %v5260_v35, %v4712_v44 }
 0x59f   : > { %v1777_v50 = vpop.permute.xlu0 %1776 }
 0x5a0   : > { %v1798_v59 = vadd.f32 %v1777_v50, %v1722_v40  ;;  %v2263_v20 = vrot.slane %v2238_v62, 2 }
 0x5a2   : > { %v2264_v53 = vsel %vm920_vm4, %v5261_v10, %v2263_v20 }
 0x5a3   : > { %2388 = vrot.lane.b32.xlu0 %v5256_v45, %s5162_s25  ;;  %2288 = vrot.lane.b32.xlu2 %v5259_v60, %s5155_s1 }
 0x5a4   : > { %2290 = vrot.lane.b32.xlu1 %v2274_v28, %s5155_s1 }
 0x5a5   : > { %v1779_v8 = vpop.permute.xlu2 %1778 }
 0x5a6   : > { %v1799_v23 = vadd.f32 %v1779_v8, %v1723_v36 }
 0x5ab   : > { %2282 = vrot.lane.b32.xlu0 %v2264_v53, %s5155_s1  ;;  %2390 = vrot.lane.b32.xlu2 %v5262_v29, %s5162_s25 }
 0x5ac   : > { %2280 = vrot.lane.b32.xlu1 %v4657_v63, %s5155_s1  ;;  %s5270_s1 = smov 64  }
 0x5ad   : > { %v1853_v0 = vpop.permute.xlu2 %1852 }
 0x5ae   : > { %v1870_v27 = vadd.f32 %v1853_v0, %v1802_v12 }
 0x5b0   : > { %v1946_v44 = vadd.f32 %v4737_v6, %v1870_v27 }
 0x5b3   : > { %2384 = vrot.lane.b32.xlu0 %v4660_v13, %s5162_s25  ;;  %2380 = vrot.lane.b32.xlu2 %v4677_v41, %s5162_s25  ;;  %v5266_v41 = vrot.slane %v4681_v33, 2  ;;  %v1720_v33 = vmul.f32 %v1706_v34, %v4500_v51 }
 0x5b4   : > { %2382 = vrot.lane.b32.xlu1 %v5263_v25, %s5162_s25 }
 0x5b5   : > { %v1787_v1 = vpop.permute.xlu1 %1786  ;;  %v1775_v63 = vpop.permute.xlu2 %1774  ;;  %v2360_v42 = vsel %vm920_vm4, %v5266_v41, %v2359_v15 }
 0x5b6   : > { %v1803_v24 = vadd.f32 %v1787_v1, %v5265_v11  ;;  %v1797_v56 = vadd.f32 %v1775_v63, %v1721_v26 }
 0x5b7   : > { %v1783_v13 = vpop.permute.xlu0 %1782 }
 0x5b8   : > { %v1801_v38 = vadd.f32 %v1783_v13, %v1725_v43 }
 0x5bb   : > { %2378 = vrot.lane.b32.xlu0 %v2360_v42, %s5162_s25  ;;  %2386 = vrot.lane.b32.xlu2 %v5267_v49, %s5162_s25 }
 0x5bc   : > { %2376 = vrot.lane.b32.xlu1 %v4717_v14, %s5162_s25 }
 0x5bd   : > { %v1781_v5 = vpop.permute.xlu1 %1780  ;;  %v1849_v19 = vpop.permute.xlu2 %1848 }
 0x5be   : > { %v1800_v22 = vadd.f32 %v1781_v5, %v1724_v58 }
 0x5c0   : > { %v1868_v12 = vadd.f32 %v1849_v19, %v1800_v22 }
 0x5c2   : > { %v1944_v6 = vadd.f32 %v4759_v48, %v1868_v12 }
 0x5c5   : > { %v1843_v40 = vpop.permute.xlu2 %1842  ;;  %v1773_v50 = vpop.permute.xlu0 %1772 }
 0x5c6   : > { %v1855_v7 = vpop.permute.xlu1 %1854  ;;  %v1865_v45 = vadd.f32 %v1843_v40, %v1797_v56  ;;  %v1796_v47 = vadd.f32 %v1773_v50, %v1720_v33 }
 0x5c7   : > { %v1871_v52 = vadd.f32 %v1855_v7, %v1803_v24 }
 0x5c8   : > { %v1941_v0 = vadd.f32 %v4764_v32, %v1865_v45 }
 0x5c9   : > { %v1947_v28 = vadd.f32 %v4740_v30, %v1871_v52 }
 0x5cd   : > { %v2017_v60 = vpop.permute.xlu2 %2016  ;;  %v1847_v14 = vpop.permute.xlu0 %1846 }
 0x5ce   : > { %v1845_v36 = vpop.permute.xlu1 %1844  ;;  %v1867_v21 = vadd.f32 %v1847_v14, %v1799_v23 }
 0x5cf   : > { %v1866_v35 = vadd.f32 %v1845_v36, %v1798_v59 }
 0x5d0   : > { %v1943_v62 = vadd.f32 %v4756_v55, %v1867_v21 }
 0x5d1   : > { %v1942_v8 = vadd.f32 %v4725_v4, %v1866_v35 }
 0x5d3   : > { %v2038_v51 = vadd.f32 %v2017_v60, %v1942_v8 }
 0x5d5   : > { %v2023_v20 = vpop.permute.xlu2 %2022  ;;  %v1841_v10 = vpop.permute.xlu0 %1840 }
 0x5d6   : > { %v1851_v53 = vpop.permute.xlu1 %1850  ;;  %v1864_v29 = vadd.f32 %v1841_v10, %v1796_v47 }
 0x5d7   : > { %v1869_v27 = vadd.f32 %v1851_v53, %v1801_v38 }
 0x5d8   : > { %v1940_v30 = vadd.f32 %v4745_v16, %v1864_v29 }
 0x5d9   : > { %v1945_v48 = vadd.f32 %v4734_v39, %v1869_v27 }
 0x5dd   : > { %v2013_v34 = vpop.permute.xlu2 %2012  ;;  %v2027_v25 = vpop.permute.xlu0 %2026 }
 0x5de   : > { %v2025_v23 = vpop.permute.xlu1 %2024  ;;  %v2043_v59 = vadd.f32 %v2027_v25, %v1947_v28  ;;  %v2036_v41 = vadd.f32 %v2013_v34, %v1940_v30 }
 0x5df   : > { %v2042_v26 = vadd.f32 %v2025_v23, %v1946_v44  ;;  %v2041_v44 = vadd.f32 %v2023_v20, %v1945_v48 }
 0x5e5   : > { %v2115_v55 = vpop.permute.xlu2 %2114  ;;  %v2021_v17 = vpop.permute.xlu0 %2020 }
 0x5e6   : > { %v2019_v4 = vpop.permute.xlu1 %2018  ;;  %v2040_v58 = vadd.f32 %v2021_v17, %v1944_v6 }
 0x5e7   : > { %v2039_v2 = vadd.f32 %v2019_v4, %v1943_v62 }
 0x5e9   : > { %v2135_v24 = vadd.f32 %v2115_v55, %v2039_v2 }
 0x5eb   : > { %v2211_v39 = vadd.f32 %v4801_v37, %v2135_v24 }
 0x5ed   : > { %v2109_v3 = vpop.permute.xlu2 %2108  ;;  %v2123_v1 = vpop.permute.xlu0 %2122 }
 0x5ee   : > { %v2121_v63 = vpop.permute.xlu1 %2120  ;;  %v2139_v11 = vadd.f32 %v2123_v1, %v2043_v59  ;;  %v2132_v49 = vadd.f32 %v2109_v3, %v2036_v41  ;;  %v5268_v3 = vld [vmem:[#allocation26_spill] sm:$0xff] }
 0x5ef   : > { %v2138_v32 = vadd.f32 %v2121_v63, %v2042_v26 }
 0x5f0   : > { %v2215_v56 = vadd.f32 %v4771_v31, %v2139_v11  ;;  %v2208_v31 = vadd.f32 %v4805_v61, %v2132_v49 }
 0x5f1   : > { %v2214_v16 = vadd.f32 %v4782_v46, %v2138_v32 }
 0x5f5   : > { %v2295_v43 = vpop.permute.xlu2 %2294  ;;  %v2113_v13 = vpop.permute.xlu0 %2112 }
 0x5f6   : > { %v2015_v38 = vpop.permute.xlu1 %2014  ;;  %v2134_v15 = vadd.f32 %v2113_v13, %v2038_v51  ;;  %v2311_v10 = vadd.f32 %v2295_v43, %v2215_v56 }
 0x5f7   : > { %v2037_v40 = vadd.f32 %v2015_v38, %v1941_v0 }
 0x5f8   : > { %v2210_v42 = vadd.f32 %v4794_v57, %v2134_v15 }
 0x5fd   : > { %v2289_v5 = vpop.permute.xlu2 %2288  ;;  %v2119_v19 = vpop.permute.xlu0 %2118 }
 0x5fe   : > { %v2117_v22 = vpop.permute.xlu1 %2116  ;;  %v2137_v12 = vadd.f32 %v2119_v19, %v2041_v44 }
 0x5ff   : > { %v2136_v33 = vadd.f32 %v2117_v22, %v2040_v58 }
 0x600   : > { %v2213_v46 = vadd.f32 %v4787_v54, %v2137_v12 }
 0x601   : > { %v2212_v37 = vadd.f32 %v4779_v18, %v2136_v33 }
 0x603   : > { %v2308_v34 = vadd.f32 %v2289_v5, %v2212_v37 }
 0x605   : > { %v2293_v50 = vpop.permute.xlu0 %2292  ;;  %v2391_v47 = vpop.permute.xlu2 %2390 }
 0x606   : > { %v2111_v7 = vpop.permute.xlu1 %2110  ;;  %v2310_v36 = vadd.f32 %v2293_v50, %v2214_v16  ;;  %v2407_v53 = vadd.f32 %v2391_v47, %v2311_v10 }
 0x607   : > { %v2133_v45 = vadd.f32 %v2111_v7, %v2037_v40 }
 0x608   : > { %v2476_v30 = vrot.slane %v2407_v53, 4 }
 0x609   : > { %v2209_v57 = vadd.f32 %v4813_v9, %v2133_v45 }
 0x60d   : > { %v2287_v52 = vpop.permute.xlu0 %2286  ;;  %v2381_v60 = vpop.permute.xlu2 %2380 }
 0x60e   : > { %v2285_v28 = vpop.permute.xlu1 %2284  ;;  %v2307_v9 = vadd.f32 %v2287_v52, %v2211_v39 }
 0x60f   : > { %v2306_v6 = vadd.f32 %v2285_v28, %v2210_v42 }
 0x611   : > { %v2402_v14 = vadd.f32 %v2381_v60, %v2306_v6  ;;  %v5269_v6 = vld [vmem:[#allocation24_spill] sm:$0xff] }
 0x613   : > { %v2422_v61 = vrot.slane %v2402_v14, 4 }
 0x615   : > { %v2389_v21 = vpop.permute.xlu0 %2388  ;;  %v2387_v25 = vpop.permute.xlu2 %2386 }
 0x616   : > { %v2291_v35 = vpop.permute.xlu1 %2290  ;;  %v2406_v62 = vadd.f32 %v2389_v21, %v2310_v36 }
 0x617   : > { %v2309_v0 = vadd.f32 %v2291_v35, %v2213_v46 }
 0x618   : > { %v2420_v54 = vrot.slane %v2406_v62, 4  ;;  %v2423_v18 = vsel %vm1150_vm5, %v2406_v62, %v2422_v61 }
 0x619   : > { %v2405_v26 = vadd.f32 %v2387_v25, %v2309_v0  ;;  %v2431_v13 = vperm.slane %v2423_v18, %v5268_v3 }
 0x61a   : > { %v2421_v8 = vsel %vm1150_vm5, %v2420_v54, %v2402_v14 }
 0x61b   : > { %v2464_v11 = vrot.slane %v2405_v26, 4  ;;  %v2427_v24 = vperm.slane %v2421_v8, %v5268_v3  ;;  %v2444_v7 = vrot.slane %v2431_v13, 4 }
 0x61d   : > { %v2283_v51 = vpop.permute.xlu0 %2282  ;;  %v2432_v58 = vrot.slane %v2427_v24, 4 }
 0x61e   : > { %v2281_v20 = vpop.permute.xlu1 %2280  ;;  %v2305_v4 = vadd.f32 %v2283_v51, %v2209_v57 }
 0x61f   : > { %v2304_v2 = vadd.f32 %v2281_v20, %v2208_v31 }
 0x625   : > { %v2385_v29 = vpop.permute.xlu0 %2384 }
 0x626   : > { %v2383_v27 = vpop.permute.xlu1 %2382  ;;  %v2404_v17 = vadd.f32 %v2385_v29, %v2308_v34 }
 0x627   : > { %v2403_v48 = vadd.f32 %v2383_v27, %v2307_v9 }
 0x628   : > { %v2408_v39 = vrot.slane %v2404_v17, 4 }
 0x629   : > { %v2477_v23 = vsel %vm1150_vm5, %v2476_v30, %v2403_v48  ;;  %v2478_v59 = vrot.slane %v2403_v48, 4 }
 0x62a   : > { %v2483_v1 = vperm.slane %v2477_v23, %v5268_v3 }
 0x62b   : > { %v2479_v55 = vsel %vm1150_vm5, %v2407_v53, %v2478_v59 }
 0x62c   : > { %v2487_v32 = vperm.slane %v2479_v55, %v5268_v3  ;;  %v2488_v41 = vrot.slane %v2483_v1, 4 }
 0x62d   : > { %v2379_v63 = vpop.permute.xlu0 %2378 }
 0x62e   : > { %v2377_v56 = vpop.permute.xlu1 %2376  ;;  %v2401_v16 = vadd.f32 %v2379_v63, %v2305_v4  ;;  %v2500_v5 = vrot.slane %v2487_v32, 4 }
 0x62f   : > { %v2400_v43 = vadd.f32 %v2377_v56, %v2304_v2 }
 0x630   : > { %v2465_v38 = vsel %vm1150_vm5, %v2464_v11, %v2401_v16  ;;  %v2466_v15 = vrot.slane %v2401_v16, 4 }
 0x631   : > { %v2409_v42 = vsel %vm1150_vm5, %v2408_v39, %v2400_v43  ;;  %v2410_v49 = vrot.slane %v2400_v43, 4  ;;  %v2471_v44 = vperm.slane %v2465_v38, %v5268_v3 }
 0x632   : > { %v2415_v19 = vperm.slane %v2409_v42, %v5268_v3  ;;  %v2467_v22 = vsel %vm1150_vm5, %v2405_v26, %v2466_v15 }
 0x633   : > { %v2411_v12 = vsel %vm1150_vm5, %v2404_v17, %v2410_v49  ;;  %v2475_v31 = vperm.slane %v2467_v22, %v5268_v3  ;;  %v2490_v33 = vrot.slane %v2471_v44, 4  ;;  %v2489_v46 = vsel %vm1150_vm5, %v2488_v41, %v2471_v44  ;;  %v1629_v22 = vld [vmem:[%s5066_s6] sm:$0xff] }
 0x634   : > { %v2419_v37 = vperm.slane %v2411_v12, %v5268_v3  ;;  %v2434_v40 = vrot.slane %v2415_v19, 4  ;;  %v2433_v50 = vsel %vm1150_vm5, %v2432_v58, %v2415_v19  ;;  %v2495_v51 = vperm.slane %v2489_v46, %v5269_v6 }
 0x635   : > { %v2502_v45 = vrot.slane %v2475_v31, 4  ;;  %v2501_v47 = vsel %vm1150_vm5, %v2500_v5, %v2475_v31  ;;  %v2491_v57 = vsel %vm1150_vm5, %v2483_v1, %v2490_v33  ;;  %v2439_v8 = vperm.slane %v2433_v50, %v5269_v6 }
 0x636   : > { %v2446_v52 = vrot.slane %v2419_v37, 4  ;;  %v2435_v28 = vsel %vm1150_vm5, %v2427_v24, %v2434_v40  ;;  %v2507_v60 = vperm.slane %v2501_v47, %v5269_v6  ;;  %v2499_v14 = vperm.slane %v2491_v57, %v5269_v6 }
 0x637   : > { %v2443_v36 = vperm.slane %v2435_v28, %v5269_v6  ;;  %v2445_v21 = vsel %vm1150_vm5, %v2444_v7, %v2419_v37  ;;  %v2503_v35 = vsel %vm1150_vm5, %v2487_v32, %v2502_v45  ;;  %v2456_v10 = vrot.slane %v2439_v8, 4  ;;  %v1630_v28 = vld [vmem:[%s5067_s7] sm:$0xff] }
 0x638   : > { %2561 = vrot.lane.b32.xlu1 %v2507_v60, %s5270_s1  ;;  %2553 = vrot.lane.b32.xlu2 %v2499_v14, %s5271_s2  ;;  %v2447_v61 = vsel %vm1150_vm5, %v2431_v13, %v2446_v52  ;;  %v2514_v62 = vrot.slane %v2499_v14, 4  ;;  %v2451_v18 = vperm.slane %v2445_v21, %v5269_v6  ;;  %v2512_v53 = vrot.slane %v2495_v51, 4 }
 0x639   : > { %2525 = vrot.lane.b32.xlu0 %v2443_v36, %s5271_s2  ;;  %v2455_v54 = vperm.slane %v2447_v61, %v5269_v6  ;;  %v2457_v29 = vsel %vm1150_vm5, 0.0, %v2456_v10  ;;  %v2516_v30 = vrot.slane %v2507_v60, 4  ;;  %v2458_v48 = vrot.slane %v2443_v36, 4  ;;  %v1631_v60 = vld [vmem:[%s5068_s8] sm:$0xff] }
 0x63a   : > { %v2515_v20 = vsel %vm1150_vm5, 0.0, %v2514_v62  ;;  %v2460_v9 = vrot.slane %v2451_v18, 4  ;;  %v2513_v0 = vsel %vm1150_vm5, 0.0, %v2512_v53  ;;  %v2511_v25 = vperm.slane %v2503_v35, %v5269_v6 }
 0x63b   : > { %v2517_v34 = vsel %vm1150_vm5, 0.0, %v2516_v30  ;;  %v2459_v23 = vsel %vm1150_vm5, 0.0, %v2458_v48  ;;  %v2462_v59 = vrot.slane %v2455_v54, 4  ;;  %v3176_v6 = vmov 2048.0  }
 0x63c   : > { %v2461_v27 = vsel %vm1150_vm5, 0.0, %v2460_v9  ;;  %v2518_v26 = vrot.slane %v2511_v25, 4  ;;  %3057 = vrcp.f32 %v3176_v6 }
 0x63d   : > { %v2463_v55 = vsel %vm1150_vm5, 0.0, %v2462_v59 }
 0x63e   : > { %v2519_v17 = vsel %vm1150_vm5, 0.0, %v2518_v26 }
 0x640   : > { %2541 = vrot.lane.b32.xlu1 %v2455_v54, %s5272_s3  ;;  %2533 = vrot.lane.b32.xlu2 %v2451_v18, %s5270_s1  ;;  %s5279_s1 = sld [smem:[#allocation42_spill]] }
 0x641   : > { %2557 = vrot.lane.b32.xlu0 %v2515_v20, %s5273_s4 }
 0x642   : > { %v3058_v14 = vpop.eup %3057 }
 0x643   : > { %v2662_v36 = vmul.f32 2048.0, %v3058_v14  ;;  %vm2666_vm1 = vweird.f32 %v3058_v14 }
 0x645   : > { %v2663_v35 = vsub.f32 1.0, %v2662_v36 }
 0x646   : > { %s2728_s2 = scalar_lea.hbm %s5279_s1, %s2826_s11  ;;  %s3111_s0 = scalar_lea.hbm %s5279_s1, 32 }
 0x647   : > { %v2664_v20 = vmul.f32 %v3058_v14, %v2663_v35 }
 0x648   : > { %2521 = vrot.lane.b32.xlu2 %v2457_v29, %s5274_s5  ;;  %2549 = vrot.lane.b32.xlu1 %v2513_v0, %s5274_s5 }
 0x649   : > { %2537 = vrot.lane.b32.xlu0 %v2461_v27, %s5275_s9  ;;  %v2665_v0 = vadd.f32 %v3058_v14, %v2664_v20 }
 0x650   : > { %2565 = vrot.lane.b32.xlu2 %v2517_v34, %s5275_s9  ;;  %2529 = vrot.lane.b32.xlu1 %v2459_v23, %s5273_s4  ;;  %v2667_v34 = vsel %vm2666_vm1, %v3058_v14, %v2665_v0  ;;  %s352_s4 = scalar_lea.vmem [#allocation7], %s2811_s17  ;;  %s2732_s9 = sshll.u32 %s2728_s2, 4  ;;  %s2733_s9 = int_to_ptr.hbm [resolvable:$true] %s2732_s9 }
 0x651   : > { %2569 = vrot.lane.b32.xlu0 %v2511_v25, %s5272_s3  ;;  %s2730_s5 = sshll.u32 %s352_s4, 4  ;;  %s3105_s14 = sshra.s32 %s2733_s9, 4  ;;  %s2731_s5 = int_to_ptr.vmem [resolvable:$true] %s2730_s5  ;;  %s3106_s14 = int_to_ptr.hbm [resolvable:$true] %s3105_s14 }
 0x652   : > { %s3107_s25 = scalar_lea.hbm %s3106_s14, 16  ;;  %p3112_p0 = scmp.lt.s32.totalorder %s3106_s14, %s5279_s1 }
 0x653   : > { %p3108_p6 = scmp.ne.s32.totalorder %s3106_s14, %s3107_s25  ;;  %p3113_p1 = scmp.lt.s32.totalorder %s3111_s0, %s3107_s25 }
 0x655   : > { %p3109_p9 = pnand %p3108_p6, %p3277_p11  ;;  %p3114_p3 = por %p3113_p1, %p3112_p0 }
 0x657   : > { %p3110_p13 = pneg %p3109_p9 }
 0x658   : > { %2545 = vrot.lane.b32.xlu2 %v2463_v55, %s5276_s21  ;;  %2573 = vrot.lane.b32.xlu1 %v2519_v17, %s5276_s21  ;;  %s2717_s21 = scalar_lea.sflag [#allocation6], %s5277_s15 }
 0x659   : > { %p3115_p4 = pnand %p3114_p3, %p3110_p13 }
 0x660   : > { %2702 = vperm.xlu1 %3052, %v1630_v28  }
 0x668   : > { %2709 = vperm.xlu1 %3052, %v1631_v60  }
 0x692   : > { %v2554_v4 = vpop.permute.xlu2 %2553 }
 0x69a   : > { %v2534_v2 = vpop.permute.xlu2 %2533 }
 0x6a2   : > { %v2522_v63 = vpop.permute.xlu2 %2521 }
 0x6a3   : > { %v2576_v13 = vsel %vm1318_vm6, %v2439_v8, %v2522_v63 }
 0x6aa   : > { %v2562_v3 = vpop.permute.xlu1 %2561  ;;  %v2566_v56 = vpop.permute.xlu2 %2565 }
 0x6ab   : > { %v2526_v1 = vpop.permute.xlu0 %2525 }
 0x6ac   : > { %v2577_v38 = vsel %vm1320_vm7, %v2576_v13, %v2526_v1 }
 0x6b2   : > { %v2542_v11 = vpop.permute.xlu1 %2541  ;;  %v2546_v58 = vpop.permute.xlu2 %2545 }
 0x6b3   : > { %v2558_v24 = vpop.permute.xlu0 %2557 }
 0x6ba   : > { %v2550_v32 = vpop.permute.xlu1 %2549 }
 0x6bb   : > { %v2583_v16 = vsel %vm1318_vm6, %v2495_v51, %v2550_v32  ;;  %v2538_v39 = vpop.permute.xlu0 %2537 }
 0x6bc   : > { %v2584_v43 = vsel %vm1320_vm7, %v2583_v16, %v2554_v4 }
 0x6bd   : > { %v2585_v41 = vsel %vm1322_vm8, %v2584_v43, %v2558_v24 }
 0x6be   : > { %v2586_v5 = vsel %vm1324_vm9, %v2585_v41, %v2562_v3 }
 0x6bf   : > { %v2587_v33 = vsel %vm1326_vm10, %v2586_v5, %v2566_v56 }
 0x6c2   : > { %v2530_v15 = vpop.permute.xlu1 %2529 }
 0x6c3   : > { %v2578_v42 = vsel %vm1322_vm8, %v2577_v38, %v2530_v15  ;;  %v2570_v12 = vpop.permute.xlu0 %2569 }
 0x6c4   : > { %v2579_v49 = vsel %vm1324_vm9, %v2578_v42, %v2534_v2  ;;  %v2588_v46 = vsel %vm1328_vm12, %v2587_v33, %v2570_v12 }
 0x6c5   : > { %v2580_v44 = vsel %vm1326_vm10, %v2579_v49, %v2538_v39 }
 0x6c6   : > { %v2581_v19 = vsel %vm1328_vm12, %v2580_v44, %v2542_v11 }
 0x6c7   : > { %v2582_v31 = vsel %vm1330_vm11, %v2581_v19, %v2546_v58 }
 0x6c8   : > { %2816 = vmatpush.msk.msra.mxu2 %vm1343_vm13, %v2582_v31 }
 0x6c9   : > { %2817 = vmatmul.msk.f32.vlgmr.msra.gmra.mxu2 %vm1339_vm14, %v1629_v22 }
 0x6ca   : > { %v2574_v37 = vpop.permute.xlu1 %2573 }
 0x6cb   : > { %v2589_v40 = vsel %vm1330_vm11, %v2588_v46, %v2574_v37 }
 0x6cc   : > { %2818 = vmatpush.msk.msra.mxu3 %vm1343_vm13, %v2589_v40 }
 0x6cd   : > { %2819 = vmatmul.msk.f32.vlgmr.msra.gmra.mxu3 %vm1339_vm14, %v1629_v22 }
 0x6d2   : > { %v2703_v3 = vpop.permute.xlu1 %2702 }
 0x6da   : > { %v2710_v43 = vpop.permute.xlu1 %2709 }
 0x74c   : > { %v5008_v50 = vpop.f32.mrf.mxu2 }
 0x74d   : > { %v2649_v7 = vmul.f32 %v5008_v50, %v5008_v50 }
 0x750   : > { %v5012_v45 = vpop.f32.mrf.mxu3 }
 0x751   : > { %v2639_v47 = vadd.f32 %v5012_v45, %v5008_v50  ;;  %v2650_v57 = vmul.f32 %v5012_v45, %v5012_v45 }
 0x753   : > { %v2651_v52 = vadd.f32 %v2650_v57, %v2649_v7  ;;  %2640 = vadd.xlane.f32.xlu0 %v2639_v47 }
 0x755   : > { %2652 = vadd.xlane.f32.xlu2 %v2651_v52 }
 0x7c6   : > { %v2641_v21 = vpop.xlane.xlu0 %2640 }
 0x7c7   : > { %v2642_v61 = vrot.slane %v2641_v21, 4 }
 0x7c8   : > { %v2653_v62 = vpop.xlane.xlu2 %2652 }
 0x7c9   : > { %v2643_v54 = vadd.f32 %v2642_v61, %v2641_v21  ;;  %v2654_v18 = vrot.slane %v2653_v62, 4 }
 0x7cb   : > { %v2644_v8 = vrot.slane %v2643_v54, 2  ;;  %v2655_v51 = vadd.f32 %v2654_v18, %v2653_v62 }
 0x7cd   : > { %v2645_v10 = vadd.f32 %v2644_v8, %v2643_v54  ;;  %v2656_v53 = vrot.slane %v2655_v51, 2 }
 0x7cf   : > { %v2657_v9 = vadd.f32 %v2656_v53, %v2655_v51  ;;  %v2646_v29 = vrot.slane %v2645_v10, 1 }
 0x7d1   : > { %v2647_v27 = vadd.f32 %v2646_v29, %v2645_v10  ;;  %v2658_v30 = vrot.slane %v2657_v9, 1 }
 0x7d3   : > { %2979 = vpush %v2647_v27  ;;  %v2659_v48 = vadd.f32 %v2658_v30, %v2657_v9 }
 0x7d5   : > { %2981 = vpush %v2659_v48 }
 0x7d6   : > { %2983 = vpush %v2667_v34 }
 0x804   : > { %s2980_s16 = spop %2979 }
 0x806   : > { %s2982_s19 = spop %2981 }
 0x807   : > { %s2984_s27 = spop %2983 }
 0x808   : > { %s2669_s30 = smul.f32 %s2984_s27, %s2980_s16 }
 0x809   : > { %s2678_s26 = smul.f32 %s2984_s27, %s2982_s19 }
 0x80a   : > { %s2679_s20 = smul.f32 %s2669_s30, %s2669_s30  ;;  %v2694_v1 = vstv %s2669_s30 }
 0x80b   : > { %v2695_v63 = vsub.f32 %v5008_v50, %v2694_v1  ;;  %v2696_v11 = vsub.f32 %v5012_v45, %v2694_v1 }
 0x80c   : > { %s2680_s28 = ssub.f32 %s2678_s26, %s2679_s20 }
 0x80e   : > { %s2681_s29 = sadd.f32 1e-05, %s2680_s28 }
 0x810   : > { %v2682_v25 = vstv %s2681_s29 }
 0x811   : > { %3059 = vrsqrt.f32 %v2682_v25  ;;  %vm2689_vm4 = vweird.f32 %v2682_v25 }
 0x817   : > { %v3060_v23 = vpop.eup %3059 }
 0x818   : > { %v2684_v59 = vmul.f32 %v3060_v23, %v2682_v25  ;;  %vm2690_vm3 = vweird.f32 %v3060_v23 }
 0x819   : > { %vm2691_vm5 = vmor %vm2689_vm4, %vm2690_vm3 }
 0x81a   : > { %v2685_v26 = vmul.f32 %v3060_v23, %v2684_v59 }
 0x81c   : > { %v2686_v55 = vmul.f32 0.5, %v2685_v26 }
 0x81e   : > { %v2687_v17 = vsub.f32 1.5, %v2686_v55 }
 0x820   : > { %v2688_v4 = vmul.f32 %v3060_v23, %v2687_v17 }
 0x822   : > { %v2692_v2 = vsel %vm2691_vm5, %v3060_v23, %v2688_v4 }
 0x823   : > { %2985 = vpush %v2692_v2 }
 0x854   : > { %s2986_s13 = spop %2985 }
 0x855   : > { %v2697_v24 = vstv %s2986_s13 }
 0x856   : > { %v2698_v32 = vmul.f32 %v2697_v24, %v2695_v63  ;;  %v2699_v56 = vmul.f32 %v2697_v24, %v2696_v11 }
 0x858   : > { %v2705_v16 = vmul.f32 %v2703_v3, %v2698_v32  ;;  %v2706_v39 = vmul.f32 %v2703_v3, %v2699_v56 }
 0x85a   : > { %v2712_v13 = vadd.f32 %v2710_v43, %v2705_v16  ;;  %v2713_v38 = vadd.f32 %v2710_v43, %v2706_v39 }
 0x85c   : > { %2714 = vst [vmem:[%s352_s4] sm:$0xff] %v2712_v13 }
 0x85d   : > { %2715 = vst [vmem:[%s352_s4 + $0x8] sm:$0xff] %v2713_v38 }
 0x85e   : > { %3118 = shalt.err (!%p3115_p4)
}
 0x85f   : > { %2989 = dma.vmem_to_hbm [thread:$0]  (%p3277_p11), %s2731_s5, 256, %s2733_s9, %s2717_s21  }
 0x860 PF: > { %s5281_s19 = sld [smem:[#allocation10_spill]] }
 0x861   : > { %s5283_s30 = sld [smem:[#allocation13_spill]] }
 0x866   : > { %s2744_s26 = sand.u32 1, %s5281_s19  }
 0x867   : > { %p5284_p7 = scmp.ge.s32.totalorder %s5283_s30, 2  ;;  %s2745_s20 = scalar_lea.sflag [#allocation6], %s2744_s26 }
 0x869   : > { %p2996_p5 = pnand %p5284_p7, %p3281_p12 }
 0x86b   : > { %p2997_p8 = pneg %p2996_p5 }
 0x86d   : > { %3140 = dma.done.wait (%p2997_p8), %s2745_s20, 256  }
 0x86e   : > { %3142 = vsyncadd (%p2997_p8), %s2745_s20, 4294967040  ;;  %s5285_s12 = sld [smem:[#allocation15_spill]] }
 0x86f   : > { %s5286_s30 = sld [smem:[#allocation11_spill]] }
 0x870   : > { %s5287_s10 = sld [smem:[#allocation12_spill]] }
 0x871   : > { %s5288_s11 = sld [smem:[#allocation16_spill]] }
 0x874   : > { %p22_p10 = scmp.ge.s32.totalorder %s5285_s12, 4  }
 0x876   :  { %24 = sbr.rel (!%p22_p10) target bundleno = 13 (0xd), region = 101 }
 0x87b   :  { %2751 = vsyncpa [#allocation5], 1 }
 0x87c   :  { %2753 = vsyncpa [#allocation5 + $0x1], 1 }
 0x87d   :  { %2754 = vsyncpa [#allocation6], 1 }
 0x87e   :  { %2756 = vsyncpa [#allocation6 + $0x1], 1 }

</bundles_post_ra>
